<compile_context>
chip_gen: v5e
topology: v5e:2x2
jax: 0.10.0
libtpu: 0.0.40
codegen_flags: <defaults>
</compile_context>

<pallas_src>
import numpy as np
import jax
import jax.numpy as jnp
from jax import lax
from jax.experimental import pallas as pl
from jax.experimental.pallas import tpu as pltpu


# -------------------- fused Pallas kernel (B_TILE samples per grid step) --------------------

def _rtpnet_kernel(x_ref, a1_ref, b1_ref, r1_ref, c1_ref,
                   a2_ref, b2_ref, r2_ref, c2_ref,
                   wcat_ref, mask_ref, csum_ref, rsum_ref, fcb_ref, o_ref):
    f32 = jnp.float32

    # Per-step input: B_TILE samples with their 116 width-rows flattened together.
    xm = x_ref[...].astype(jnp.bfloat16)                 # (B*116, 68)   [w, h], bf16
    m1 = xm.shape[0] - 4                                  # conv1 output rows (B*116 - 4)

    # ---- conv1: ONE bf16 banded contraction (K = 5*68 = 340), f32 accumulate ----
    # lhs1[m, dw*68 + h] = xm[m + dw, h];  y1[m, c*64 + h'] = relu(conv1[c, h', m] + b1[c])
    # (rows m crossing a sample boundary are garbage but are never selected below).
    lhs1 = jnp.concatenate([xm[dw:dw + m1, :] for dw in range(5)], axis=1)      # (m1, 340)
    y1 = jnp.dot(lhs1, a1_ref[...], preferred_element_type=f32)
    y1 = jnp.maximum(y1 + b1_ref[...], 0.0)                                     # (m1, 384)

    # ---- pool1: MaxPool2d(4, 4) = 3 row-shifted maxes + block-diag row selector
    #             + 3 lane-shifted maxes + per-channel column selector (exact 0/1) ----
    rf = jnp.maximum(jnp.maximum(y1[0:m1 - 3], y1[1:m1 - 2]),
                     jnp.maximum(y1[2:m1 - 1], y1[3:m1]))                       # (m1-3, 384)
    rp = jnp.dot(r1_ref[...], rf, preferred_element_type=f32)                   # (28B, 384)
    cf = jnp.maximum(jnp.maximum(rp[:, 0:381], rp[:, 1:382]),
                     jnp.maximum(rp[:, 2:383], rp[:, 3:384]))                   # (28B, 381)
    mt = jnp.dot(cf, c1_ref[...], preferred_element_type=f32)                   # (28B, 96)

    # ---- conv2: ONE bf16 banded contraction (K = 5*96 = 480), f32 accumulate ----
    mt16 = mt.astype(jnp.bfloat16)
    m2 = mt16.shape[0] - 4                                                       # 28B - 4
    lhs2 = jnp.concatenate([mt16[dw:dw + m2, :] for dw in range(5)], axis=1)    # (m2, 480)
    y2 = jnp.dot(lhs2, a2_ref[...], preferred_element_type=f32)
    y2 = jnp.maximum(y2 + b2_ref[...], 0.0)                                     # (m2, 192)

    # ---- pool2 (same structure) ----
    rf2 = jnp.maximum(jnp.maximum(y2[0:m2 - 3], y2[1:m2 - 2]),
                      jnp.maximum(y2[2:m2 - 1], y2[3:m2]))                      # (m2-3, 192)
    rp2 = jnp.dot(r2_ref[...], rf2, preferred_element_type=f32)                 # (6B, 192)
    cf2 = jnp.maximum(jnp.maximum(rp2[:, 0:189], rp2[:, 1:190]),
                      jnp.maximum(rp2[:, 2:191], rp2[:, 3:192]))                # (6B, 189)
    pooled = jnp.dot(cf2, c2_ref[...], preferred_element_type=f32)              # (6B, 48)

    # ---- flatten + nn.Threshold(0, 0) + rtp.Linear(288, 12) (weights pre-pruned) ----
    # TODO(synk): rtp.Linear / rtp.NPConv2d sources unavailable; assumed semantics =
    # standard VALID conv, and Linear prunes weights with |W| <= threshold at runtime.
    p = jnp.where(pooled > 0.0, pooled, 0.0)                                    # Threshold(0,0)
    pm = jnp.dot(p, wcat_ref[...], preferred_element_type=f32)                  # (6B, 72)
    sel = jnp.dot(pm * mask_ref[...], csum_ref[...],
                  preferred_element_type=f32)                                   # (6B, 12)
    out = jnp.dot(rsum_ref[...], sel, preferred_element_type=f32) + fcb_ref[...]  # (B, 12)
    o_ref[...] = out


# -------------------- host-side constant selectors / band matrices --------------------

# Shifted identities used to scatter conv weights into banded contraction matrices.
_D1 = np.stack([np.eye(68, 64, -d, dtype=np.float32) for d in range(5)])  # (5, 68, 64)
_E2 = np.stack([np.eye(16, 12, -d, dtype=np.float32) for d in range(5)])  # (5, 16, 12)


def _selectors(bt):
    """0/1 pooling / fc selector matrices for a given samples-per-step b_tile."""
    r1 = np.zeros((28 * bt, 116 * bt - 7), np.float32)   # pool1 row subsample (block-diag)
    r2 = np.zeros((6 * bt, 28 * bt - 7), np.float32)     # pool2 row subsample (block-diag)
    for s in range(bt):
        r1[s * 28 + np.arange(28), s * 116 + 4 * np.arange(28)] = 1.0
        r2[s * 6 + np.arange(6), s * 28 + 4 * np.arange(6)] = 1.0
    c1 = np.zeros((381, 96), np.float32)                  # pool1 per-channel column subsample
    for c in range(6):
        c1[c * 64 + 4 * np.arange(16), c * 16 + np.arange(16)] = 1.0
    c2 = np.zeros((189, 48), np.float32)                  # pool2 per-channel column subsample
    for o in range(16):
        c2[o * 12 + 4 * np.arange(3), o * 3 + np.arange(3)] = 1.0
    # fc helpers: block-diagonal mask, column-block sum, per-sample row sum.
    fcmask = np.tile(np.kron(np.eye(6, dtype=np.float32),
                             np.ones((1, 12), np.float32)), (bt, 1))      # (6bt, 72)
    csum = np.tile(np.eye(12, dtype=np.float32), (6, 1))                  # (72, 12)
    rsum = np.kron(np.eye(bt, dtype=np.float32),
                   np.ones((1, 6), np.float32))                           # (bt, 6bt)
    return r1, c1, r2, c2, fcmask, csum, rsum


def rtpnet_forward(x, params, threshold, b_tile=None):
    w1, b1, w2, b2, fw, fb = params
    n = x.shape[0]

    # Samples per grid step, stacked along the MXU M axis (review item 3).  Must be even
    # so the flattened (b_tile*116, 68) input block keeps 8-row sublane divisibility.
    if b_tile is None:
        b_tile = next((b for b in (8, 6, 4, 2) if n % b == 0), min(8, n + (n % 2)))
    n_pad = -(-n // b_tile) * b_tile

    # ---- O(weight-size) host-side packing (constants under jit) ----
    xt = jnp.transpose(x[:, 0, :, :], (0, 2, 1))                       # (n, 116, 68)  [w, h]
    if n_pad != n:
        xt = jnp.concatenate([xt, jnp.zeros((n_pad - n, 116, 68), xt.dtype)], axis=0)
    xm = xt.reshape(n_pad * 116, 68)                                   # rows merged per sample

    # Banded conv weights, fused over the 5 kernel columns, stored bf16 (items 1 + 2).
    # a1[dw*68 + h, c*64 + h'] = w1[c, 0, h - h', dw]
    a1 = jnp.einsum('cde,dph->epch', w1.reshape(6, 5, 5),
                    jnp.asarray(_D1)).reshape(340, 384).astype(jnp.bfloat16)
    # a2[dw*96 + c*16 + r, o*12 + i] = w2[o, c, r - i, dw]
    a2 = jnp.einsum('ocde,dri->ecroi', w2,
                    jnp.asarray(_E2)).reshape(480, 192).astype(jnp.bfloat16)
    b1r = jnp.repeat(b1, 64).reshape(1, 384)
    b2r = jnp.repeat(b2, 12).reshape(1, 192)

    # fc1: runtime pruning hoisted out of the kernel (item 8), then packed so that
    # wcat[o*3 + a, b*12 + k] = Wpruned[k, o*18 + a*6 + b]  (b = pooled width index).
    fwp = jnp.where(jnp.abs(fw) > threshold, fw, 0.0)
    wcat = jnp.transpose(fwp.reshape(12, 16, 3, 6), (1, 2, 3, 0)).reshape(48, 72)
    fcb = fb.reshape(1, 12)

    r1, c1, r2, c2, fcmask, csum, rsum = _selectors(b_tile)

    out = pl.pallas_call(
        _rtpnet_kernel,
        out_shape=jax.ShapeDtypeStruct((n_pad, 12), jnp.float32),
        grid=(n_pad // b_tile,),
        in_specs=[
            pl.BlockSpec((b_tile * 116, 68), lambda i: (i, 0)),   # images (merged rows)
            pl.BlockSpec((340, 384), lambda i: (0, 0)),           # conv1 band weights (bf16)
            pl.BlockSpec((1, 384), lambda i: (0, 0)),             # conv1 bias (repeated)
            pl.BlockSpec(r1.shape, lambda i: (0, 0)),             # pool1 row selector
            pl.BlockSpec((381, 96), lambda i: (0, 0)),            # pool1 col selector
            pl.BlockSpec((480, 192), lambda i: (0, 0)),           # conv2 band weights (bf16)
            pl.BlockSpec((1, 192), lambda i: (0, 0)),             # conv2 bias (repeated)
            pl.BlockSpec(r2.shape, lambda i: (0, 0)),             # pool2 row selector
            pl.BlockSpec((189, 48), lambda i: (0, 0)),            # pool2 col selector
            pl.BlockSpec((48, 72), lambda i: (0, 0)),             # fc weight (packed, pruned)
            pl.BlockSpec(fcmask.shape, lambda i: (0, 0)),         # fc block-diagonal mask
            pl.BlockSpec((72, 12), lambda i: (0, 0)),             # fc column-block sum
            pl.BlockSpec(rsum.shape, lambda i: (0, 0)),           # fc per-sample row sum
            pl.BlockSpec((1, 12), lambda i: (0, 0)),              # fc bias
        ],
        out_specs=pl.BlockSpec((b_tile, 12), lambda i: (i, 0)),
        compiler_params=pltpu.CompilerParams(
            dimension_semantics=("parallel",)),
    )(xm, a1, b1r, jnp.asarray(r1), jnp.asarray(c1),
      a2, b2r, jnp.asarray(r2), jnp.asarray(c2),
      wcat, jnp.asarray(fcmask), jnp.asarray(csum), jnp.asarray(rsum), fcb)
    return out[:n]


# -------------------- pure-JAX references (for verification) --------------------

def _pool(xx):
    return lax.reduce_window(xx, -jnp.inf, lax.max, (1, 1, 4, 4), (1, 1, 4, 4), "VALID")


def reference_forward(x, params, threshold):
    """Full-f32 (HIGHEST) reference."""
    w1, b1, w2, b2, fw, fb = params

    def conv(xx, w, b):
        y = lax.conv_general_dilated(
            xx, w, window_strides=(1, 1), padding="VALID",
            dimension_numbers=("NCHW", "OIHW", "NCHW"),
            precision=lax.Precision.HIGHEST)
        return y + b[None, :, None, None]

    y = _pool(jax.nn.relu(conv(x, w1, b1)))
    y = _pool(jax.nn.relu(conv(y, w2, b2)))
    f = y.reshape(y.shape[0], -1)
    f = jnp.where(f > 0.0, f, 0.0)
    wm = jnp.where(jnp.abs(fw) > threshold, fw, 0.0)
    return jnp.dot(f, wm.T, precision=lax.Precision.HIGHEST) + fb[None, :]


def reference_forward_bf16(x, params, threshold):
    """Precision-matched reference: bf16 conv operands, f32 accumulation (as the kernel)."""
    w1, b1, w2, b2, fw, fb = params

    def conv(xx, w, b):
        y = lax.conv_general_dilated(
            xx.astype(jnp.bfloat16), w.astype(jnp.bfloat16),
            window_strides=(1, 1), padding="VALID",
            dimension_numbers=("NCHW", "OIHW", "NCHW"),
            preferred_element_type=jnp.float32)
        return y + b[None, :, None, None]

    y = _pool(jax.nn.relu(conv(x, w1, b1)))
    y = _pool(jax.nn.relu(conv(y, w2, b2)))
    f = y.reshape(y.shape[0], -1)
    f = jnp.where(f > 0.0, f, 0.0)
    wm = jnp.where(jnp.abs(fw) > threshold, fw, 0.0)
    return jnp.dot(f, wm.T, precision=lax.Precision.HIGHEST) + fb[None, :]


if __name__ == "__main__":
    key = jax.random.PRNGKey(0)
    k1, k2, k3, k4, k5, k6, kx = jax.random.split(key, 7)
    params = (
        0.2 * jax.random.normal(k1, (6, 1, 5, 5), jnp.float32),   # conv1 weight
        0.1 * jax.random.normal(k2, (6,), jnp.float32),           # conv1 bias
        0.1 * jax.random.normal(k3, (16, 6, 5, 5), jnp.float32),  # conv2 weight
        0.1 * jax.random.normal(k4, (16,), jnp.float32),          # conv2 bias
        0.1 * jax.random.normal(k5, (12, 288), jnp.float32),      # fc1 weight
        0.1 * jax.random.normal(k6, (12,), jnp.float32),          # fc1 bias
    )
    # Spatial size chosen so flatten(...) == 288 = 16 * 3 * 6, matching fc1(288, 12).
    x = jax.random.normal(kx, (2, 1, 68, 116), jnp.float32)
    threshold = 0.05

    fwd = jax.jit(rtpnet_forward)
    out = jax.block_until_ready(fwd(x, params, threshold))

    assert out.shape == (2, 12)
    assert bool(jnp.all(jnp.isfinite(out)))

    # Primary structural check: precision-matched reference (bf16 conv operands,
    # f32 accumulation, exactly what the kernel computes) -> tight tolerance.
    ref_matched = reference_forward_bf16(x, params, threshold)
    np.testing.assert_allclose(np.asarray(out), np.asarray(ref_matched),
                               rtol=2e-3, atol=2e-3)

    # Sanity bound vs. the full-f32 reference: the only difference is bf16 MXU operand
    # rounding through the two conv layers (a few 1e-2 absolute at the logits here).
    ref_f32 = reference_forward(x, params, threshold)
    np.testing.assert_allclose(np.asarray(out), np.asarray(ref_f32),
                               rtol=2e-2, atol=1e-1)

    print("KERNEL_OK")
</pallas_src>

<mosaic_0001>
module attributes {stable_mosaic.version = 11 : i64} {
  func.func @_rtpnet_kernel(%arg0: i32, %arg1: memref<232x68xf32, #tpu.memory_space<vmem>>, %arg2: memref<340x384xbf16, #tpu.memory_space<vmem>>, %arg3: memref<1x384xf32, #tpu.memory_space<vmem>>, %arg4: memref<56x225xf32, #tpu.memory_space<vmem>>, %arg5: memref<381x96xf32, #tpu.memory_space<vmem>>, %arg6: memref<480x192xbf16, #tpu.memory_space<vmem>>, %arg7: memref<1x192xf32, #tpu.memory_space<vmem>>, %arg8: memref<12x49xf32, #tpu.memory_space<vmem>>, %arg9: memref<189x48xf32, #tpu.memory_space<vmem>>, %arg10: memref<48x72xf32, #tpu.memory_space<vmem>>, %arg11: memref<12x72xf32, #tpu.memory_space<vmem>>, %arg12: memref<72x12xf32, #tpu.memory_space<vmem>>, %arg13: memref<2x12xf32, #tpu.memory_space<vmem>>, %arg14: memref<1x12xf32, #tpu.memory_space<vmem>>, %arg15: memref<2x12xf32, #tpu.memory_space<vmem>>) attributes {dimension_semantics = [#tpu.dimension_semantics<parallel>], iteration_bounds = array<i64: 1>, scalar_prefetch = 0 : i64, scratch_operands = 0 : i64, tpu.core_type = #tpu.core_type<tc>, window_params = [{transform_indices = @transform_0, window_bounds = array<i64: 232, 68>}, {pipeline_mode = #tpu.pipeline_mode<synchronous>, transform_indices = @transform_1, window_bounds = array<i64: 340, 384>}, {pipeline_mode = #tpu.pipeline_mode<synchronous>, transform_indices = @transform_2, window_bounds = array<i64: 1, 384>}, {pipeline_mode = #tpu.pipeline_mode<synchronous>, transform_indices = @transform_3, window_bounds = array<i64: 56, 225>}, {pipeline_mode = #tpu.pipeline_mode<synchronous>, transform_indices = @transform_4, window_bounds = array<i64: 381, 96>}, {pipeline_mode = #tpu.pipeline_mode<synchronous>, transform_indices = @transform_5, window_bounds = array<i64: 480, 192>}, {pipeline_mode = #tpu.pipeline_mode<synchronous>, transform_indices = @transform_6, window_bounds = array<i64: 1, 192>}, {pipeline_mode = #tpu.pipeline_mode<synchronous>, transform_indices = @transform_7, window_bounds = array<i64: 12, 49>}, {pipeline_mode = #tpu.pipeline_mode<synchronous>, transform_indices = @transform_8, window_bounds = array<i64: 189, 48>}, {pipeline_mode = #tpu.pipeline_mode<synchronous>, transform_indices = @transform_9, window_bounds = array<i64: 48, 72>}, {pipeline_mode = #tpu.pipeline_mode<synchronous>, transform_indices = @transform_10, window_bounds = array<i64: 12, 72>}, {pipeline_mode = #tpu.pipeline_mode<synchronous>, transform_indices = @transform_11, window_bounds = array<i64: 72, 12>}, {pipeline_mode = #tpu.pipeline_mode<synchronous>, transform_indices = @transform_12, window_bounds = array<i64: 2, 12>}, {pipeline_mode = #tpu.pipeline_mode<synchronous>, transform_indices = @transform_13, window_bounds = array<i64: 1, 12>}, {transform_indices = @transform_14, window_bounds = array<i64: 2, 12>}]} {
    %c0 = arith.constant 0 : index
    %c0_0 = arith.constant 0 : index
    %0 = vector.load %arg1[%c0, %c0_0] : memref<232x68xf32, #tpu.memory_space<vmem>>, vector<232x68xf32>
    %1 = arith.truncf %0 : vector<232x68xf32> to vector<232x68xbf16>
    %2 = vector.extract_strided_slice %1 {offsets = [0, 0], sizes = [228, 68], strides = [1, 1]} : vector<232x68xbf16> to vector<228x68xbf16>
    %3 = vector.extract_strided_slice %1 {offsets = [1, 0], sizes = [228, 68], strides = [1, 1]} : vector<232x68xbf16> to vector<228x68xbf16>
    %4 = vector.extract_strided_slice %1 {offsets = [2, 0], sizes = [228, 68], strides = [1, 1]} : vector<232x68xbf16> to vector<228x68xbf16>
    %5 = vector.extract_strided_slice %1 {offsets = [3, 0], sizes = [228, 68], strides = [1, 1]} : vector<232x68xbf16> to vector<228x68xbf16>
    %6 = vector.extract_strided_slice %1 {offsets = [4, 0], sizes = [228, 68], strides = [1, 1]} : vector<232x68xbf16> to vector<228x68xbf16>
    %7 = tpu.concatenate %2, %3, %4, %5, %6 in 1 : vector<228x68xbf16>, vector<228x68xbf16>, vector<228x68xbf16>, vector<228x68xbf16>, vector<228x68xbf16> -> vector<228x340xbf16>
    %c0_1 = arith.constant 0 : index
    %c0_2 = arith.constant 0 : index
    %8 = vector.load %arg2[%c0_1, %c0_2] : memref<340x384xbf16, #tpu.memory_space<vmem>>, vector<340x384xbf16>
    %cst = arith.constant dense<0.000000e+00> : vector<228x384xf32>
    %9 = tpu.matmul %7, %8, %cst {dimension_numbers = #tpu.dot_dimension_numbers<[1], [0], [0], [1], [0, 0, 1, 1], [], []>} : vector<228x340xbf16>, vector<340x384xbf16>, vector<228x384xf32> -> vector<228x384xf32>
    %c0_3 = arith.constant 0 : index
    %c0_4 = arith.constant 0 : index
    %10 = vector.load %arg3[%c0_3, %c0_4] : memref<1x384xf32, #tpu.memory_space<vmem>>, vector<1x384xf32>
    %11 = vector.broadcast %10 : vector<1x384xf32> to vector<228x384xf32>
    %12 = arith.addf %9, %11 : vector<228x384xf32>
    %cst_5 = arith.constant 0.000000e+00 : f32
    %13 = vector.broadcast %cst_5 : f32 to vector<228x384xf32>
    %14 = arith.maximumf %12, %13 : vector<228x384xf32>
    %15 = vector.extract_strided_slice %14 {offsets = [0, 0], sizes = [225, 384], strides = [1, 1]} : vector<228x384xf32> to vector<225x384xf32>
    %16 = vector.extract_strided_slice %14 {offsets = [1, 0], sizes = [225, 384], strides = [1, 1]} : vector<228x384xf32> to vector<225x384xf32>
    %17 = arith.maximumf %15, %16 : vector<225x384xf32>
    %18 = vector.extract_strided_slice %14 {offsets = [2, 0], sizes = [225, 384], strides = [1, 1]} : vector<228x384xf32> to vector<225x384xf32>
    %19 = vector.extract_strided_slice %14 {offsets = [3, 0], sizes = [225, 384], strides = [1, 1]} : vector<228x384xf32> to vector<225x384xf32>
    %20 = arith.maximumf %18, %19 : vector<225x384xf32>
    %21 = arith.maximumf %17, %20 : vector<225x384xf32>
    %c0_6 = arith.constant 0 : index
    %c0_7 = arith.constant 0 : index
    %22 = vector.load %arg4[%c0_6, %c0_7] : memref<56x225xf32, #tpu.memory_space<vmem>>, vector<56x225xf32>
    %cst_8 = arith.constant dense<0.000000e+00> : vector<56x384xf32>
    %23 = tpu.matmul %22, %21, %cst_8 {dimension_numbers = #tpu.dot_dimension_numbers<[1], [0], [0], [1], [0, 0, 1, 1], [], []>} : vector<56x225xf32>, vector<225x384xf32>, vector<56x384xf32> -> vector<56x384xf32>
    %24 = vector.extract_strided_slice %23 {offsets = [0, 0], sizes = [56, 381], strides = [1, 1]} : vector<56x384xf32> to vector<56x381xf32>
    %25 = vector.extract_strided_slice %23 {offsets = [0, 1], sizes = [56, 381], strides = [1, 1]} : vector<56x384xf32> to vector<56x381xf32>
    %26 = arith.maximumf %24, %25 : vector<56x381xf32>
    %27 = vector.extract_strided_slice %23 {offsets = [0, 2], sizes = [56, 381], strides = [1, 1]} : vector<56x384xf32> to vector<56x381xf32>
    %28 = vector.extract_strided_slice %23 {offsets = [0, 3], sizes = [56, 381], strides = [1, 1]} : vector<56x384xf32> to vector<56x381xf32>
    %29 = arith.maximumf %27, %28 : vector<56x381xf32>
    %30 = arith.maximumf %26, %29 : vector<56x381xf32>
    %c0_9 = arith.constant 0 : index
    %c0_10 = arith.constant 0 : index
    %31 = vector.load %arg5[%c0_9, %c0_10] : memref<381x96xf32, #tpu.memory_space<vmem>>, vector<381x96xf32>
    %cst_11 = arith.constant dense<0.000000e+00> : vector<56x96xf32>
    %32 = tpu.matmul %30, %31, %cst_11 {dimension_numbers = #tpu.dot_dimension_numbers<[1], [0], [0], [1], [0, 0, 1, 1], [], []>} : vector<56x381xf32>, vector<381x96xf32>, vector<56x96xf32> -> vector<56x96xf32>
    %33 = arith.truncf %32 : vector<56x96xf32> to vector<56x96xbf16>
    %34 = vector.extract_strided_slice %33 {offsets = [0, 0], sizes = [52, 96], strides = [1, 1]} : vector<56x96xbf16> to vector<52x96xbf16>
    %35 = vector.extract_strided_slice %33 {offsets = [1, 0], sizes = [52, 96], strides = [1, 1]} : vector<56x96xbf16> to vector<52x96xbf16>
    %36 = vector.extract_strided_slice %33 {offsets = [2, 0], sizes = [52, 96], strides = [1, 1]} : vector<56x96xbf16> to vector<52x96xbf16>
    %37 = vector.extract_strided_slice %33 {offsets = [3, 0], sizes = [52, 96], strides = [1, 1]} : vector<56x96xbf16> to vector<52x96xbf16>
    %38 = vector.extract_strided_slice %33 {offsets = [4, 0], sizes = [52, 96], strides = [1, 1]} : vector<56x96xbf16> to vector<52x96xbf16>
    %39 = tpu.concatenate %34, %35, %36, %37, %38 in 1 : vector<52x96xbf16>, vector<52x96xbf16>, vector<52x96xbf16>, vector<52x96xbf16>, vector<52x96xbf16> -> vector<52x480xbf16>
    %c0_12 = arith.constant 0 : index
    %c0_13 = arith.constant 0 : index
    %40 = vector.load %arg6[%c0_12, %c0_13] : memref<480x192xbf16, #tpu.memory_space<vmem>>, vector<480x192xbf16>
    %cst_14 = arith.constant dense<0.000000e+00> : vector<52x192xf32>
    %41 = tpu.matmul %39, %40, %cst_14 {dimension_numbers = #tpu.dot_dimension_numbers<[1], [0], [0], [1], [0, 0, 1, 1], [], []>} : vector<52x480xbf16>, vector<480x192xbf16>, vector<52x192xf32> -> vector<52x192xf32>
    %c0_15 = arith.constant 0 : index
    %c0_16 = arith.constant 0 : index
    %42 = vector.load %arg7[%c0_15, %c0_16] : memref<1x192xf32, #tpu.memory_space<vmem>>, vector<1x192xf32>
    %43 = vector.broadcast %42 : vector<1x192xf32> to vector<52x192xf32>
    %44 = arith.addf %41, %43 : vector<52x192xf32>
    %cst_17 = arith.constant 0.000000e+00 : f32
    %45 = vector.broadcast %cst_17 : f32 to vector<52x192xf32>
    %46 = arith.maximumf %44, %45 : vector<52x192xf32>
    %47 = vector.extract_strided_slice %46 {offsets = [0, 0], sizes = [49, 192], strides = [1, 1]} : vector<52x192xf32> to vector<49x192xf32>
    %48 = vector.extract_strided_slice %46 {offsets = [1, 0], sizes = [49, 192], strides = [1, 1]} : vector<52x192xf32> to vector<49x192xf32>
    %49 = arith.maximumf %47, %48 : vector<49x192xf32>
    %50 = vector.extract_strided_slice %46 {offsets = [2, 0], sizes = [49, 192], strides = [1, 1]} : vector<52x192xf32> to vector<49x192xf32>
    %51 = vector.extract_strided_slice %46 {offsets = [3, 0], sizes = [49, 192], strides = [1, 1]} : vector<52x192xf32> to vector<49x192xf32>
    %52 = arith.maximumf %50, %51 : vector<49x192xf32>
    %53 = arith.maximumf %49, %52 : vector<49x192xf32>
    %c0_18 = arith.constant 0 : index
    %c0_19 = arith.constant 0 : index
    %54 = vector.load %arg8[%c0_18, %c0_19] : memref<12x49xf32, #tpu.memory_space<vmem>>, vector<12x49xf32>
    %cst_20 = arith.constant dense<0.000000e+00> : vector<12x192xf32>
    %55 = tpu.matmul %54, %53, %cst_20 {dimension_numbers = #tpu.dot_dimension_numbers<[1], [0], [0], [1], [0, 0, 1, 1], [], []>} : vector<12x49xf32>, vector<49x192xf32>, vector<12x192xf32> -> vector<12x192xf32>
    %56 = vector.extract_strided_slice %55 {offsets = [0, 0], sizes = [12, 189], strides = [1, 1]} : vector<12x192xf32> to vector<12x189xf32>
    %57 = vector.extract_strided_slice %55 {offsets = [0, 1], sizes = [12, 189], strides = [1, 1]} : vector<12x192xf32> to vector<12x189xf32>
    %58 = arith.maximumf %56, %57 : vector<12x189xf32>
    %59 = vector.extract_strided_slice %55 {offsets = [0, 2], sizes = [12, 189], strides = [1, 1]} : vector<12x192xf32> to vector<12x189xf32>
    %60 = vector.extract_strided_slice %55 {offsets = [0, 3], sizes = [12, 189], strides = [1, 1]} : vector<12x192xf32> to vector<12x189xf32>
    %61 = arith.maximumf %59, %60 : vector<12x189xf32>
    %62 = arith.maximumf %58, %61 : vector<12x189xf32>
    %c0_21 = arith.constant 0 : index
    %c0_22 = arith.constant 0 : index
    %63 = vector.load %arg9[%c0_21, %c0_22] : memref<189x48xf32, #tpu.memory_space<vmem>>, vector<189x48xf32>
    %cst_23 = arith.constant dense<0.000000e+00> : vector<12x48xf32>
    %64 = tpu.matmul %62, %63, %cst_23 {dimension_numbers = #tpu.dot_dimension_numbers<[1], [0], [0], [1], [0, 0, 1, 1], [], []>} : vector<12x189xf32>, vector<189x48xf32>, vector<12x48xf32> -> vector<12x48xf32>
    %cst_24 = arith.constant 0.000000e+00 : f32
    %65 = vector.broadcast %cst_24 : f32 to vector<12x48xf32>
    %66 = arith.cmpf ogt, %64, %65 : vector<12x48xf32>
    %cst_25 = arith.constant 0.000000e+00 : f32
    %67 = vector.broadcast %cst_25 : f32 to vector<12x48xf32>
    %68 = arith.select %66, %64, %67 : vector<12x48xi1>, vector<12x48xf32>
    %c0_26 = arith.constant 0 : index
    %c0_27 = arith.constant 0 : index
    %69 = vector.load %arg10[%c0_26, %c0_27] : memref<48x72xf32, #tpu.memory_space<vmem>>, vector<48x72xf32>
    %cst_28 = arith.constant dense<0.000000e+00> : vector<12x72xf32>
    %70 = tpu.matmul %68, %69, %cst_28 {dimension_numbers = #tpu.dot_dimension_numbers<[1], [0], [0], [1], [0, 0, 1, 1], [], []>} : vector<12x48xf32>, vector<48x72xf32>, vector<12x72xf32> -> vector<12x72xf32>
    %c0_29 = arith.constant 0 : index
    %c0_30 = arith.constant 0 : index
    %71 = vector.load %arg11[%c0_29, %c0_30] : memref<12x72xf32, #tpu.memory_space<vmem>>, vector<12x72xf32>
    %72 = arith.mulf %70, %71 : vector<12x72xf32>
    %c0_31 = arith.constant 0 : index
    %c0_32 = arith.constant 0 : index
    %73 = vector.load %arg12[%c0_31, %c0_32] : memref<72x12xf32, #tpu.memory_space<vmem>>, vector<72x12xf32>
    %cst_33 = arith.constant dense<0.000000e+00> : vector<12x12xf32>
    %74 = tpu.matmul %72, %73, %cst_33 {dimension_numbers = #tpu.dot_dimension_numbers<[1], [0], [0], [1], [0, 0, 1, 1], [], []>} : vector<12x72xf32>, vector<72x12xf32>, vector<12x12xf32> -> vector<12x12xf32>
    %c0_34 = arith.constant 0 : index
    %c0_35 = arith.constant 0 : index
    %75 = vector.load %arg13[%c0_34, %c0_35] : memref<2x12xf32, #tpu.memory_space<vmem>>, vector<2x12xf32>
    %cst_36 = arith.constant dense<0.000000e+00> : vector<2x12xf32>
    %76 = tpu.matmul %75, %74, %cst_36 {dimension_numbers = #tpu.dot_dimension_numbers<[1], [0], [0], [1], [0, 0, 1, 1], [], []>} : vector<2x12xf32>, vector<12x12xf32>, vector<2x12xf32> -> vector<2x12xf32>
    %c0_37 = arith.constant 0 : index
    %c0_38 = arith.constant 0 : index
    %77 = vector.load %arg14[%c0_37, %c0_38] : memref<1x12xf32, #tpu.memory_space<vmem>>, vector<1x12xf32>
    %78 = vector.broadcast %77 : vector<1x12xf32> to vector<2x12xf32>
    %79 = arith.addf %76, %78 : vector<2x12xf32>
    %c0_39 = arith.constant 0 : index
    %c0_40 = arith.constant 0 : index
    %80 = vector.load %arg15[%c0_39, %c0_40] : memref<2x12xf32, #tpu.memory_space<vmem>>, vector<2x12xf32>
    tpu.vector_store %arg15[%c0_39, %c0_40], %79 {strides = array<i32>} : memref<2x12xf32, #tpu.memory_space<vmem>>, vector<2x12xf32>,
    return
  }
  func.func @transform_0(%arg0: i32) -> (i32, i32) {
    %c0_i32 = arith.constant 0 : i32
    %c0_i32_0 = arith.constant 0 : i32
    return %arg0, %c0_i32 : i32, i32
  }
  func.func @transform_1(%arg0: i32) -> (i32, i32) {
    %c0_i32 = arith.constant 0 : i32
    %c0_i32_0 = arith.constant 0 : i32
    %c0_i32_1 = arith.constant 0 : i32
    return %c0_i32, %c0_i32_0 : i32, i32
  }
  func.func @transform_2(%arg0: i32) -> (i32, i32) {
    %c0_i32 = arith.constant 0 : i32
    %c0_i32_0 = arith.constant 0 : i32
    %c0_i32_1 = arith.constant 0 : i32
    return %c0_i32, %c0_i32_0 : i32, i32
  }
  func.func @transform_3(%arg0: i32) -> (i32, i32) {
    %c0_i32 = arith.constant 0 : i32
    %c0_i32_0 = arith.constant 0 : i32
    %c0_i32_1 = arith.constant 0 : i32
    return %c0_i32, %c0_i32_0 : i32, i32
  }
  func.func @transform_4(%arg0: i32) -> (i32, i32) {
    %c0_i32 = arith.constant 0 : i32
    %c0_i32_0 = arith.constant 0 : i32
    %c0_i32_1 = arith.constant 0 : i32
    return %c0_i32, %c0_i32_0 : i32, i32
  }
  func.func @transform_5(%arg0: i32) -> (i32, i32) {
    %c0_i32 = arith.constant 0 : i32
    %c0_i32_0 = arith.constant 0 : i32
    %c0_i32_1 = arith.constant 0 : i32
    return %c0_i32, %c0_i32_0 : i32, i32
  }
  func.func @transform_6(%arg0: i32) -> (i32, i32) {
    %c0_i32 = arith.constant 0 : i32
    %c0_i32_0 = arith.constant 0 : i32
    %c0_i32_1 = arith.constant 0 : i32
    return %c0_i32, %c0_i32_0 : i32, i32
  }
  func.func @transform_7(%arg0: i32) -> (i32, i32) {
    %c0_i32 = arith.constant 0 : i32
    %c0_i32_0 = arith.constant 0 : i32
    %c0_i32_1 = arith.constant 0 : i32
    return %c0_i32, %c0_i32_0 : i32, i32
  }
  func.func @transform_8(%arg0: i32) -> (i32, i32) {
    %c0_i32 = arith.constant 0 : i32
    %c0_i32_0 = arith.constant 0 : i32
    %c0_i32_1 = arith.constant 0 : i32
    return %c0_i32, %c0_i32_0 : i32, i32
  }
  func.func @transform_9(%arg0: i32) -> (i32, i32) {
    %c0_i32 = arith.constant 0 : i32
    %c0_i32_0 = arith.constant 0 : i32
    %c0_i32_1 = arith.constant 0 : i32
    return %c0_i32, %c0_i32_0 : i32, i32
  }
  func.func @transform_10(%arg0: i32) -> (i32, i32) {
    %c0_i32 = arith.constant 0 : i32
    %c0_i32_0 = arith.constant 0 : i32
    %c0_i32_1 = arith.constant 0 : i32
    return %c0_i32, %c0_i32_0 : i32, i32
  }
  func.func @transform_11(%arg0: i32) -> (i32, i32) {
    %c0_i32 = arith.constant 0 : i32
    %c0_i32_0 = arith.constant 0 : i32
    %c0_i32_1 = arith.constant 0 : i32
    return %c0_i32, %c0_i32_0 : i32, i32
  }
  func.func @transform_12(%arg0: i32) -> (i32, i32) {
    %c0_i32 = arith.constant 0 : i32
    %c0_i32_0 = arith.constant 0 : i32
    %c0_i32_1 = arith.constant 0 : i32
    return %c0_i32, %c0_i32_0 : i32, i32
  }
  func.func @transform_13(%arg0: i32) -> (i32, i32) {
    %c0_i32 = arith.constant 0 : i32
    %c0_i32_0 = arith.constant 0 : i32
    %c0_i32_1 = arith.constant 0 : i32
    return %c0_i32, %c0_i32_0 : i32, i32
  }
  func.func @transform_14(%arg0: i32) -> (i32, i32) {
    %c0_i32 = arith.constant 0 : i32
    %c0_i32_0 = arith.constant 0 : i32
    return %arg0, %c0_i32 : i32, i32
  }
}

</mosaic_0001>

<bundles_post_ra>
// kernel: rtpnet_forward.1
= control target key start
LH: loop header
LB: loop body
LE: loop exit
PB: predicated region body
PF: predicated region fallthrough
CT: control target
= control target key end

     0   :  { %s9601_s0 = inlined_call_operand.vmem [shape: f32[232,68], index: 0, kind: input, shape index: {}]   ;;  %s9602_s1 = inlined_call_operand.vmem [shape: bf16[340,384], index: 1, kind: input, shape index: {}]   ;;  %s9603_s2 = inlined_call_operand.vmem [shape: f32[1,384], index: 2, kind: input, shape index: {}]   ;;  %s9604_s3 = inlined_call_operand.vmem [shape: f32[56,225], index: 3, kind: input, shape index: {}]   ;;  %s9605_s4 = inlined_call_operand.vmem [shape: f32[381,96], index: 4, kind: input, shape index: {}]   ;;  %s9606_s5 = inlined_call_operand.vmem [shape: bf16[480,192], index: 5, kind: input, shape index: {}]   ;;  %s9607_s6 = inlined_call_operand.vmem [shape: f32[1,192], index: 6, kind: input, shape index: {}]   ;;  %s9608_s7 = inlined_call_operand.vmem [shape: f32[12,49], index: 7, kind: input, shape index: {}]   ;;  %s9609_s8 = inlined_call_operand.vmem [shape: f32[189,48], index: 8, kind: input, shape index: {}]   ;;  %s9610_s9 = inlined_call_operand.vmem [shape: f32[48,72], index: 9, kind: input, shape index: {}]   ;;  %s9611_s10 = inlined_call_operand.vmem [shape: f32[12,72], index: 10, kind: input, shape index: {}]   ;;  %s9612_s11 = inlined_call_operand.vmem [shape: f32[72,12], index: 11, kind: input, shape index: {}]   ;;  %s9613_s12 = inlined_call_operand.vmem [shape: f32[2,12], index: 12, kind: input, shape index: {}]   ;;  %s9614_s13 = inlined_call_operand.vmem [shape: f32[1,12], index: 13, kind: input, shape index: {}]   ;;  %s9615_s14 = inlined_call_operand.hbm [shape: f32[2,12], index: 14, kind: output, shape index: {}]  }
   0x1   :  { %v51_v0 = vld [vmem:[%s9601_s0 + $0x10] sm:$0xff]  ;;  %v52_v1 = vld [vmem:[%s9601_s0 + $0x18] sm:$0xff]  ;;  %v53_v2 = vld [vmem:[%s9601_s0 + $0x20] sm:$0xff] }
   0x2   :  { %v54_v3 = vld [vmem:[%s9601_s0 + $0x28] sm:$0xff]  ;;  %v80_v4 = vpack.c.bf16 %v51_v0, %v51_v0  ;;  %v81_v5 = vpack.c.bf16 %v52_v1, %v52_v1  ;;  %v82_v6 = vpack.c.bf16 %v53_v2, %v53_v2  ;;  %v49_v7 = vld [vmem:[%s9601_s0] sm:$0xff]  ;;  %v55_v12 = vld [vmem:[%s9601_s0 + $0x30] sm:$0xff] }
   0x3   :  { %v50_v8 = vld [vmem:[%s9601_s0 + $0x8] sm:$0xff]  ;;  %v83_v9 = vpack.c.bf16 %v54_v3, %v54_v3  ;;  %v78_v10 = vpack.c.bf16 %v49_v7, %v49_v7  ;;  %v56_v13 = vld [vmem:[%s9601_s0 + $0x38] sm:$0xff]  ;;  %v57_v14 = vld [vmem:[%s9601_s0 + $0x40] sm:$0xff]  ;;  %v84_v19 = vpack.c.bf16 %v55_v12, %v55_v12 }
   0x4   :  { %v79_v11 = vpack.c.bf16 %v50_v8, %v50_v8  ;;  %v138_v15 = vunpack.c.l.b16 %v80_v4  ;;  %v139_v16 = vunpack.c.l.b16 %v81_v5  ;;  %v140_v17 = vunpack.c.l.b16 %v82_v6  ;;  %v58_v18 = vld [vmem:[%s9601_s0 + $0x48] sm:$0xff] }
   0x5   :  { %v141_v20 = vunpack.c.l.b16 %v83_v9  ;;  %v136_v21 = vunpack.c.l.b16 %v78_v10  ;;  %v85_v23 = vpack.c.bf16 %v56_v13, %v56_v13  ;;  %v86_v25 = vpack.c.bf16 %v57_v14, %v57_v14 }
   0x6   :  { %v137_v22 = vunpack.c.l.b16 %v79_v11  ;;  %v5739_v24 = vpack.c.b16 %v139_v16, %v138_v15 }
   0x7   :  { %19 = vsyncpa [#allocation3], 0  ;;  %v5741_v26 = vpack.c.b16 %v141_v20, %v140_v17  ;;  %vm390_vm0 = vsmask.f32 6400  ;;  %v87_v28 = vpack.c.bf16 %v58_v18, %v58_v18  ;;  %v59_v29 = vld [vmem:[%s9601_s0 + $0x50] sm:$0xff]  ;;  %v142_v32 = vunpack.c.l.b16 %v84_v19  ;;  %v60_v41 = vld [vmem:[%s9601_s0 + $0x58] sm:$0xff] }
   0x8   :  { %v5743_v27 = vpack.c.b16 %v137_v22, %v136_v21  ;;  %v189_v30 = vshll.u32 %v5739_v24, 16  ;;  %v193_v31 = vshrl.u32 %v5739_v24, 16  ;;  %v143_v33 = vunpack.c.l.b16 %v85_v23  ;;  %v61_v47 = vld [vmem:[%s9601_s0 + $0x60] sm:$0xff]  ;;  %v62_v48 = vld [vmem:[%s9601_s0 + $0x68] sm:$0xff]  ;;  %s5624_s25 = smov 76   ;;  %v63_v9 = vld [vmem:[%s9601_s0 + $0x70] sm:$0xff] }
   0x9   :  { %v197_v34 = vshll.u32 %v5741_v26, 16  ;;  %v201_v35 = vshrl.u32 %v5741_v26, 16  ;;  %v144_v40 = vunpack.c.l.b16 %v86_v25  ;;  %v88_v42 = vpack.c.bf16 %v59_v29, %v59_v29  ;;  %v64_v10 = vld [vmem:[%s9601_s0 + $0x78] sm:$0xff]  ;;  %s5625_s30 = smov 16   ;;  %s5626_s26 = smov 8  }
   0xa   :  { %v182_v36 = vshrl.u32 %v5743_v27, 16  ;;  %v184_v37 = vshll.u32 %v5743_v27, 16  ;;  %v394_v38 = vrot.slane %v193_v31, 1  ;;  %v395_v39 = vrot.slane %v189_v30, 2  ;;  %s5627_s27 = smov 68   ;;  %s5628_s18 = smov 127  }
   0xb   :  { %v398_v43 = vrot.slane %v201_v35, 1  ;;  %v399_v44 = vrot.slane %v197_v34, 2  ;;  %vm480_vm1 = vcmask 1045504   ;;  %v482_v50 = vrot.slane %v5739_v24, 2  ;;  %s5631_s29 = smov 64   ;;  %s5632_s23 = smov 32  }
   0xc   :  { %v391_v45 = vrot.slane %v182_v36, 1  ;;  %v392_v46 = vrot.slane %v184_v37, 2  ;;  %v396_v49 = vor.u32 %v395_v39, %v394_v38  ;;  %v145_v51 = vunpack.c.l.b16 %v87_v28 }
   0xd   :  { %v400_v52 = vor.u32 %v399_v44, %v398_v43  ;;  %v5776_v54 = vpack.c.b16 %v143_v33, %v142_v32  ;;  %v89_v55 = vpack.c.bf16 %v60_v41, %v60_v41  ;;  %v484_v56 = vrot.slane %v5741_v26, 2  ;;  %v65_v32 = vld [vmem:[%s9601_s0 + $0x80] sm:$0xff]  ;;  %v67_v41 = vld [vmem:[%s9601_s0 + $0x90] sm:$0xff] }
   0xe   :  { %v393_v53 = vor.u32 %v392_v46, %v391_v45  ;;  %v5779_v57 = vpack.c.b16 %v145_v51, %v144_v40  ;;  %v90_v58 = vpack.c.bf16 %v61_v47, %v61_v47  ;;  %v91_v59 = vpack.c.bf16 %v62_v48, %v62_v48  ;;  %v66_v40 = vld [vmem:[%s9601_s0 + $0x88] sm:$0xff] }
   0xf   :  { %v401_v60 = vsel %vm390_vm0, %v396_v49, %v400_v52  ;;  %v205_v62 = vshll.u32 %v5776_v54, 16  ;;  %v146_v63 = vunpack.c.l.b16 %v88_v42  ;;  %v481_v0 = vrot.slane %v5743_v27, 2  ;;  %v68_v42 = vld [vmem:[%s9601_s0 + $0x98] sm:$0xff] }
  0x10   :  { %v397_v61 = vsel %vm390_vm0, %v393_v53, %v396_v49  ;;  %452 = vrot.lane.b32.xlu1 %v401_v60, %s5624_s25  ;;  %v209_v1 = vshrl.u32 %v5776_v54, 16  ;;  %v213_v2 = vshll.u32 %v5779_v57, 16  ;;  %v217_v3 = vshrl.u32 %v5779_v57, 16 }
  0x11   :  { %450 = vrot.lane.b32.xlu0 %v397_v61, %s5624_s25  ;;  %v403_v4 = vrot.slane %v205_v62, 2  ;;  %v147_v5 = vunpack.c.l.b16 %v89_v55  ;;  %v148_v6 = vunpack.c.l.b16 %v90_v58  ;;  %v149_v7 = vunpack.c.l.b16 %v91_v59 }
  0x12   :  { %v402_v8 = vrot.slane %v209_v1, 1  ;;  %v485_v12 = vsel %vm480_vm1, %v482_v50, %v484_v56  ;;  %v483_v13 = vsel %vm480_vm1, %v481_v0, %v482_v50  ;;  %v406_v16 = vrot.slane %v217_v3, 1  ;;  %v70_v0 = vld [vmem:[%s9601_s0 + $0xa8] sm:$0xff] }
  0x13   :  { %v5800_v11 = vpack.c.b16 %v147_v5, %v146_v63  ;;  %v5804_v15 = vpack.c.b16 %v149_v7, %v148_v6  ;;  %v407_v17 = vrot.slane %v213_v2, 2  ;;  %v92_v18 = vpack.c.bf16 %v63_v9, %v63_v9  ;;  %v69_v63 = vld [vmem:[%s9601_s0 + $0xa0] sm:$0xff] }
  0x14   :  { %v404_v14 = vor.u32 %v403_v4, %v402_v8  ;;  %v93_v19 = vpack.c.bf16 %v64_v10, %v64_v10  ;;  %v486_v21 = vrot.slane %v5776_v54, 2  ;;  %v488_v22 = vrot.slane %v5779_v57, 2 }
  0x15   :  { %v225_v23 = vshrl.u32 %v5800_v11, 16  ;;  %v221_v25 = vshll.u32 %v5800_v11, 16  ;;  %v229_v28 = vshll.u32 %v5804_v15, 16  ;;  %v233_v29 = vshrl.u32 %v5804_v15, 16 }
  0x16   :  { %v405_v20 = vsel %vm390_vm0, %v400_v52, %v404_v14  ;;  %v408_v33 = vor.u32 %v407_v17, %v406_v16  ;;  %v150_v38 = vunpack.c.l.b16 %v92_v18  ;;  %v151_v39 = vunpack.c.l.b16 %v93_v19 }
  0x17   :  { %454 = vrot.lane.b32.xlu2 %v405_v20, %s5624_s25  ;;  %v489_v43 = vsel %vm480_vm1, %v486_v21, %v488_v22  ;;  %v410_v44 = vrot.slane %v225_v23, 1  ;;  %v487_v45 = vsel %vm480_vm1, %v484_v56, %v486_v21  ;;  %v94_v46 = vpack.c.bf16 %v65_v32, %v65_v32 }
  0x18   :  { %512 = vrot.lane.b32.xlu1 %v485_v12, %s5625_s30  ;;  %v411_v47 = vrot.slane %v221_v25, 2  ;;  %v414_v48 = vrot.slane %v233_v29, 1  ;;  %v415_v49 = vrot.slane %v229_v28, 2  ;;  %v95_v50 = vpack.c.bf16 %v66_v40, %v66_v40 }
  0x19   :  { %510 = vrot.lane.b32.xlu0 %v483_v13, %s5625_s30  ;;  %v409_v51 = vsel %vm390_vm0, %v404_v14, %v408_v33  ;;  %v5843_v52 = vpack.c.b16 %v151_v39, %v150_v38  ;;  %v96_v53 = vpack.c.bf16 %v67_v41, %v67_v41  ;;  %v97_v55 = vpack.c.bf16 %v68_v42, %v68_v42  ;;  %v72_v42 = vld [vmem:[%s9601_s0 + $0xb8] sm:$0xff] }
  0x1a   :  { %v490_v58 = vrot.slane %v5800_v11, 2  ;;  %v412_v56 = vor.u32 %v411_v47, %v410_v44  ;;  %v416_v59 = vor.u32 %v415_v49, %v414_v48  ;;  %v152_v60 = vunpack.c.l.b16 %v94_v46  ;;  %v74_v44 = vld [vmem:[%s9601_s0 + $0xc8] sm:$0xff] }
  0x1b   :  { %v153_v61 = vunpack.c.l.b16 %v95_v50  ;;  %v237_v4 = vshll.u32 %v5843_v52, 16  ;;  %v241_v5 = vshrl.u32 %v5843_v52, 16  ;;  %v154_v6 = vunpack.c.l.b16 %v96_v53 }
  0x1c   :  { %v155_v7 = vunpack.c.l.b16 %v97_v55  ;;  %v98_v8 = vpack.c.bf16 %v69_v63, %v69_v63  ;;  %v99_v9 = vpack.c.bf16 %v70_v0, %v70_v0  ;;  %v491_v10 = vsel %vm480_vm1, %v488_v22, %v490_v58 }
  0x1d   :  { %v413_v12 = vsel %vm390_vm0, %v408_v33, %v412_v56  ;;  %v5859_v13 = vpack.c.b16 %v153_v61, %v152_v60  ;;  %v417_v14 = vsel %vm390_vm0, %v412_v56, %v416_v59  ;;  %v418_v16 = vrot.slane %v241_v5, 1  ;;  %v71_v33 = vld [vmem:[%s9601_s0 + $0xb0] sm:$0xff] }
  0x1e   :  { %v419_v17 = vrot.slane %v237_v4, 2  ;;  %v5866_v18 = vpack.c.b16 %v155_v7, %v154_v6  ;;  %v492_v19 = vrot.slane %v5804_v15, 2  ;;  %v494_v20 = vrot.slane %v5843_v52, 2 }
  0x1f   :  { %514 = vrot.lane.b32.xlu2 %v487_v45, %s5625_s30  ;;  %v156_v21 = vunpack.c.l.b16 %v98_v8  ;;  %v157_v22 = vunpack.c.l.b16 %v99_v9  ;;  %v245_v32 = vshll.u32 %v5859_v13, 16  ;;  %v249_v39 = vshrl.u32 %v5859_v13, 16 }
  0x20   :  { %516 = vrot.lane.b32.xlu1 %v489_v43, %s5625_s30  ;;  %v420_v38 = vor.u32 %v419_v17, %v418_v16  ;;  %v253_v40 = vshll.u32 %v5866_v18, 16  ;;  %v257_v41 = vshrl.u32 %v5866_v18, 16  ;;  %v73_v43 = vld [vmem:[%s9601_s0 + $0xc0] sm:$0xff]  ;;  %v495_v45 = vsel %vm480_vm1, %v492_v19, %v494_v20 }
  0x21   :  { %456 = vrot.lane.b32.xlu0 %v409_v51, %s5624_s25  ;;  %v493_v46 = vsel %vm480_vm1, %v490_v58, %v492_v19  ;;  %v5891_v47 = vpack.c.b16 %v157_v22, %v156_v21  ;;  %v100_v48 = vpack.c.bf16 %v71_v33, %v71_v33  ;;  %v423_v49 = vrot.slane %v245_v32, 2 }
  0x22   :  { %v101_v50 = vpack.c.bf16 %v72_v42, %v72_v42  ;;  %v102_v51 = vpack.c.bf16 %v73_v43, %v73_v43  ;;  %v103_v53 = vpack.c.bf16 %v74_v44, %v74_v44  ;;  %v421_v55 = vsel %vm390_vm0, %v416_v59, %v420_v38 }
  0x23   :  { %v422_v56 = vrot.slane %v249_v39, 1  ;;  %v426_v60 = vrot.slane %v257_v41, 1  ;;  %v427_v58 = vrot.slane %v253_v40, 2  ;;  %v261_v61 = vshll.u32 %v5891_v47, 16 }
  0x24   :  { %v265_v63 = vshrl.u32 %v5891_v47, 16  ;;  %v158_v59 = vunpack.c.l.b16 %v100_v48  ;;  %v159_v0 = vunpack.c.l.b16 %v101_v50  ;;  %v160_v6 = vunpack.c.l.b16 %v102_v51 }
  0x25   :  { %v161_v7 = vunpack.c.l.b16 %v103_v53  ;;  %v424_v8 = vor.u32 %v423_v49, %v422_v56  ;;  %v428_v9 = vor.u32 %v427_v58, %v426_v60  ;;  %v431_v19 = vrot.slane %v261_v61, 2  ;;  %v77_v60 = vld [vmem:[%s9601_s0 + $0xe0] sm:$0xff] }
  0x26   :  { %v430_v17 = vrot.slane %v265_v63, 1  ;;  %v5919_v21 = vpack.c.b16 %v159_v0, %v158_v59  ;;  %v186_v58 = vrot.slane %v184_v37, 1  ;;  %v191_v37 = vrot.slane %v189_v30, 1 }
  0x27   :  { %458 = vrot.lane.b32.xlu2 %v413_v12, %s5624_s25  ;;  %v75_v12 = vld [vmem:[%s9601_s0 + $0xd0] sm:$0xff]  ;;  %v425_v16 = vsel %vm390_vm0, %v420_v38, %v424_v8  ;;  %v5921_v22 = vpack.c.b16 %v161_v7, %v160_v6  ;;  %v429_v33 = vsel %vm390_vm0, %v424_v8, %v428_v9  ;;  %v500_v38 = vrot.slane %v5891_v47, 2 }
  0x28   :  { %460 = vrot.lane.b32.xlu1 %v417_v14, %s5624_s25  ;;  %v76_v14 = vld [vmem:[%s9601_s0 + $0xd8] sm:$0xff]  ;;  %v104_v43 = vpack.c.bf16 %v75_v12, %v75_v12  ;;  %v269_v48 = vshll.u32 %v5919_v21, 16  ;;  %v273_v49 = vshrl.u32 %v5919_v21, 16  ;;  %v187_v12 = vor.u32 %v186_v58, %v182_v36 }
  0x29   :  { %518 = vrot.lane.b32.xlu0 %v491_v10, %s5625_s30  ;;  %v496_v10 = vrot.slane %v5859_v13, 2  ;;  %v105_v44 = vpack.c.bf16 %v76_v14, %v76_v14  ;;  %v281_v50 = vshrl.u32 %v5921_v22, 16  ;;  %vm180_vm2 = vsmask.f32 7424 }
  0x2a   :  { %v162_v51 = vunpack.c.l.b16 %v104_v43  ;;  %v434_v0 = vrot.slane %v273_v49, 1  ;;  %v435_v6 = vrot.slane %v269_v48, 2  ;;  %v5958_v14 = vsel %vm180_vm2, %v187_v12, %v191_v37 }
  0x2b   :  { %v497_v42 = vsel %vm480_vm1, %v494_v20, %v496_v10  ;;  %v277_v20 = vshll.u32 %v5921_v22, 16  ;;  %v163_v53 = vunpack.c.l.b16 %v105_v44  ;;  %v438_v7 = vrot.slane %v281_v50, 1 }
  0x2c   :  { %v207_v36 = vrot.slane %v205_v62, 1  ;;  %v436_v30 = vor.u32 %v435_v6, %v434_v0  ;;  %vm1163_vm3 = vcmask 1041408   ;;  %vm330_vm4 = vcmask 1046528  }
  0x2d   :  { %v439_v8 = vrot.slane %v277_v20, 2  ;;  %vm663_vm5 = vcmask 130048   ;;  %vm1132_vm6 = vcmask 687104   ;;  %vm586_vm7 = vcmask 64512  }
  0x2e   :  { %vm540_vm8 = vcmask 556032   ;;  %vm617_vm9 = vcmask 621568   ;;  %vm2909_vm10 = vcmask 1040384   ;;  %vm2887_vm11 = vcmask 793600  }
  0x2f   :  { %520 = vrot.lane.b32.xlu2 %v493_v46, %s5625_s30  ;;  %v432_v46 = vor.u32 %v431_v19, %v430_v17  ;;  %v199_v17 = vrot.slane %v197_v34, 1  ;;  %v440_v19 = vor.u32 %v439_v8, %v438_v7  ;;  %v211_v7 = vor.u32 %v209_v1, %v207_v36 }
  0x30   :  { %522 = vrot.lane.b32.xlu1 %v495_v45, %s5625_s30  ;;  %v498_v45 = vrot.slane %v5866_v18, 2  ;;  %v215_v8 = vrot.slane %v213_v2, 1  ;;  %v195_v2 = vor.u32 %v193_v31, %v191_v37  ;;  %vm3210_vm12 = vcmask 1039360  }
  0x31   :  { %462 = vrot.lane.b32.xlu0 %v421_v55, %s5624_s25  ;;  %v433_v59 = vsel %vm390_vm0, %v428_v9, %v432_v46  ;;  %v106_v9 = vpack.c.bf16 %v77_v60, %v77_v60  ;;  %v203_v44 = vor.u32 %v201_v35, %v199_v17  ;;  %v441_v34 = vsel %vm390_vm0, %v436_v30, %v440_v19 }
  0x32   :  { %v501_v55 = vsel %vm480_vm1, %v498_v45, %v500_v38  ;;  %v499_v56 = vsel %vm480_vm1, %v496_v10, %v498_v45  ;;  %v5950_v10 = vpack.c.b16 %v163_v53, %v162_v51  ;;  %v437_v45 = vsel %vm390_vm0, %v432_v46, %v436_v30  ;;  %v778_v30 = vld [vmem:[%s9602_s1 + $0x1f8] sm:$0x33] }
  0x33   :  { %v164_v43 = vunpack.c.l.b16 %v106_v9  ;;  %v5973_v51 = vsel %vm180_vm2, %v203_v44, %v207_v36  ;;  %v504_v35 = vrot.slane %v5921_v22, 2  ;;  %v1000_v1 = vunpack.c.l.b16 %v778_v30 }
  0x34   :  { %v506_v46 = vrot.slane %v5950_v10, 2  ;;  %v223_v36 = vrot.slane %v221_v25, 1  ;;  %vm3457_vm13 = vcmask 1044480   ;;  %vm3435_vm14 = vcmask 1022976  }
  0x35   :  { %vm3330_vm15 = vcmask 1031168  }
  0x36   :  { %v507_v0 = vsel %vm480_vm1, %v504_v35, %v506_v46 }
  0x37   :  { %464 = vrot.lane.b32.xlu2 %v425_v16, %s5624_s25  ;;  %v502_v16 = vrot.slane %v5919_v21, 2 }
  0x38   :  { %466 = vrot.lane.b32.xlu1 %v429_v33, %s5624_s25  ;;  %v285_v33 = vshll.u32 %v5950_v10, 16 }
  0x39   :  { %524 = vrot.lane.b32.xlu0 %v497_v42, %s5625_s30  ;;  %v289_v42 = vshrl.u32 %v5950_v10, 16  ;;  %v503_v53 = vsel %vm480_vm1, %v500_v38, %v502_v16 }
  0x3b   :  { %v442_v62 = vrot.slane %v289_v42, 1 }
  0x3f   :  { %526 = vrot.lane.b32.xlu2 %v499_v56, %s5625_s30  ;;  %v5981_v56 = vpack.c.b16 %v164_v43, %v164_v43  ;;  %v231_v43 = vrot.slane %v229_v28, 1  ;;  %v5036_v28 = vld [vmem:[%s9602_s1 + $0x1e0] sm:$0xf] }
  0x40   :  { %528 = vrot.lane.b32.xlu1 %v501_v55, %s5625_s30  ;;  %v443_v55 = vrot.slane %v285_v33, 2 }
  0x41   :  { %468 = vrot.lane.b32.xlu0 %v433_v59, %s5624_s25  ;;  %v293_v38 = vshll.u32 %v5981_v56, 16  ;;  %v297_v58 = vshrl.u32 %v5981_v56, 16  ;;  %v505_v59 = vsel %vm480_vm1, %v502_v16, %v504_v35  ;;  %v6003_v16 = vsel %vm180_vm2, %v211_v7, %v215_v8  ;;  %v5444_v35 = vld [vmem:[%s9602_s1 + $0x1d0] sm:$0xf0] }
  0x42   :  { %v444_v60 = vor.u32 %v443_v55, %v442_v62  ;;  %v5024_v55 = vld [vmem:[%s9602_s1 + $0x1c8] sm:$0xf]  ;;  %v239_v7 = vrot.slane %v237_v4, 1  ;;  %v5000_v4 = vld [vmem:[%s9602_s1 + $0x198] sm:$0xf] }
  0x43   :  { %v446_v12 = vrot.slane %v297_v58, 1  ;;  %v447_v9 = vrot.slane %v293_v38, 2 }
  0x44   :  { %v445_v6 = vsel %vm390_vm0, %v440_v19, %v444_v60  ;;  %v508_v19 = vrot.slane %v5981_v56, 2 }
  0x45   :  { %v448_v44 = vor.u32 %v447_v9, %v446_v12  ;;  %v5012_v12 = vld [vmem:[%s9602_s1 + $0x1b0] sm:$0xf]  ;;  %v5441_v9 = vld [vmem:[%s9602_s1 + $0x1b8] sm:$0xf0] }
  0x46   :  { %v509_v25 = vsel %vm480_vm1, %v506_v46, %v508_v19  ;;  %v331_v46 = vrot.slane %v5743_v27, 1 }
  0x47   :  { %470 = vrot.lane.b32.xlu2 %v437_v45, %s5624_s25  ;;  %v1066_v45 = vpack.c.b16 %v1000_v1, %v1000_v1  ;;  %v449_v62 = vsel %vm390_vm0, %v444_v60, %v448_v44  ;;  %v332_v60 = vrot.slane %v5739_v24, 1  ;;  %v5013_v1 = vor.u32 %v5441_v9, %v5012_v12 }
  0x48   :  { %472 = vrot.lane.b32.xlu1 %v441_v34, %s5624_s25  ;;  %v200_v34 = vsel %vm180_vm2, %v195_v2, %v199_v17  ;;  %v5447_v17 = vld [vmem:[%s9602_s1 + $0x1e8] sm:$0xf0]  ;;  %v5438_v2 = vld [vmem:[%s9602_s1 + $0x1a0] sm:$0xf0] }
  0x49   :  { %530 = vrot.lane.b32.xlu0 %v503_v53, %s5625_s30  ;;  %v227_v53 = vor.u32 %v225_v23, %v223_v36  ;;  %v1165_v31 = vsel %vm1163_vm3, %v1066_v45, 0  ;;  %v5037_v23 = vor.u32 %v5447_v17, %v5036_v28  ;;  %v344_v28 = vrot.slane %v5843_v52, 1 }
  0x4a   :  { %1341 = vmatpush.bf16.msra.mxu2 %v1165_v31 }
  0x4b   :  { %v232_v37 = vsel %vm180_vm2, %v227_v53, %v231_v43  ;;  %v5435_v53 = vld [vmem:[%s9602_s1 + $0x188] sm:$0xf0] }
  0x4e   :  { %1342 = vmatpush.bf16.msra.mxu2 %v5037_v23 }
  0x4f   :  { %532 = vrot.lane.b32.xlu2 %v505_v59, %s5625_s30  ;;  %v5025_v59 = vor.u32 %v5444_v35, %v5024_v55  ;;  %v247_v55 = vrot.slane %v245_v32, 1 }
  0x50   :  { %534 = vrot.lane.b32.xlu1 %v507_v0, %s5625_s30  ;;  %v333_v0 = vsel %vm330_vm4, %v331_v46, %v332_v60  ;;  %v255_v46 = vrot.slane %v253_v40, 1 }
  0x51   :  { %474 = vrot.lane.b32.xlu0 %v445_v6, %s5624_s25  ;;  %v235_v6 = vor.u32 %v233_v29, %v231_v43  ;;  %v334_v29 = vrot.slane %v5741_v26, 1  ;;  %v5001_v43 = vor.u32 %v5438_v2, %v5000_v4  ;;  %v251_v35 = vor.u32 %v249_v39, %v247_v55  ;;  %v4978_v4 = vld [vmem:[%s9602_s1 + $0x174] sm:$0xf0] }
  0x52   :  { %1343 = vmatpush.bf16.msra.mxu2 %v5025_v59  ;;  %v350_v39 = vrot.slane %v5891_v47, 1  ;;  %v259_v40 = vor.u32 %v257_v41, %v255_v46 }
  0x53   :  { %v240_v30 = vsel %vm180_vm2, %v235_v6, %v239_v7  ;;  %v335_v45 = vsel %vm330_vm4, %v332_v60, %v334_v29  ;;  %v346_v60 = vrot.slane %v5859_v13, 1  ;;  %v256_v6 = vsel %vm180_vm2, %v251_v35, %v255_v46 }
  0x55   :  { %v347_v12 = vsel %vm330_vm4, %v344_v28, %v346_v60 }
  0x56   :  { %1344 = vmatpush.bf16.msra.mxu2 %v5013_v1 }
  0x57   :  { %476 = vrot.lane.b32.xlu2 %v449_v62, %s5624_s25 }
  0x58   :  { %478 = vrot.lane.b32.xlu1 %v448_v44, %s5624_s25 }
  0x59   :  { %536 = vrot.lane.b32.xlu0 %v509_v25, %s5625_s30  ;;  %v342_v25 = vrot.slane %v5804_v15, 1 }
  0x5a   :  { %1345 = vmatpush.bf16.msra.mxu2 %v5001_v43 }
  0x5f   :  { %538 = vrot.lane.b32.xlu2 %v508_v19, %s5625_s30  ;;  %v219_v19 = vor.u32 %v217_v3, %v215_v8  ;;  %v336_v3 = vrot.slane %v5776_v54, 1  ;;  %v338_v8 = vrot.slane %v5779_v57, 1 }
  0x60   :  { %360 = vrot.lane.b32.xlu1 %v333_v0, %s5626_s26 }
  0x61   :  { %300 = vrot.lane.b32.xlu0 %v5958_v14, %s5627_s27  ;;  %v224_v44 = vsel %vm180_vm2, %v219_v19, %v223_v36  ;;  %v4988_v14 = vld [vmem:[%s9602_s1 + $0x180] sm:$0xf]  ;;  %v337_v36 = vsel %vm330_vm4, %v334_v29, %v336_v3  ;;  %v339_v31 = vsel %vm330_vm4, %v336_v3, %v338_v8  ;;  %v5431_v29 = vld [vmem:[%s9602_s1 + $0x16c] sm:$0xf] }
  0x62   :  { %v4989_v62 = vor.u32 %v5435_v53, %v4988_v14  ;;  %v4981_v19 = vor.u32 %v5431_v29, %v4978_v4  ;;  %v287_v4 = vrot.slane %v285_v33, 1 }
  0x64   :  { %1346 = vmatpush.bf16.msra.mxu2 %v4989_v62  ;;  %v279_v62 = vrot.slane %v277_v20, 1  ;;  %v4882_v20 = vld [vmem:[%s9602_s1 + $0xb4] sm:$0xf0] }
  0x66   :  { %v283_v29 = vor.u32 %v281_v50, %v279_v62  ;;  %v5401_v50 = vld [vmem:[%s9602_s1 + $0x7c] sm:$0xf] }
  0x67   :  { %302 = vrot.lane.b32.xlu2 %v200_v34, %s5627_s27 }
  0x68   :  { %304 = vrot.lane.b32.xlu1 %v5973_v51, %s5627_s27  ;;  %v340_v51 = vrot.slane %v5800_v11, 1  ;;  %1505 = vmatpush.bf16.msrb.mxu2 %v4981_v19 }
  0x69   :  { %362 = vrot.lane.b32.xlu0 %v335_v45, %s5626_s26 }
  0x6a   :  { %v341_v34 = vsel %vm330_vm4, %v338_v8, %v340_v51  ;;  %v343_v23 = vsel %vm330_vm4, %v340_v51, %v342_v25  ;;  %v4976_v51 = vld [vmem:[%s9602_s1 + $0x168] sm:$0xf] }
  0x6f   :  { %364 = vrot.lane.b32.xlu2 %v337_v36, %s5626_s26  ;;  %v4880_v36 = vld [vmem:[%s9602_s1 + $0xa8] sm:$0xf] }
  0x70   :  { %366 = vrot.lane.b32.xlu1 %v339_v31, %s5626_s26 }
  0x71   :  { %306 = vrot.lane.b32.xlu0 %v6003_v16, %s5627_s27  ;;  %v6093_v17 = vpop.permute.xlu2 %454  ;;  %v345_v16 = vsel %vm330_vm4, %v342_v25, %v344_v28 }
  0x77   :  { %308 = vrot.lane.b32.xlu2 %v224_v44, %s5627_s27  ;;  %v271_v44 = vrot.slane %v269_v48, 1  ;;  %v352_v48 = vrot.slane %v5919_v21, 1 }
  0x78   :  { %310 = vrot.lane.b32.xlu1 %v232_v37, %s5627_s27  ;;  %v243_v37 = vor.u32 %v241_v5, %v239_v7  ;;  %v348_v5 = vrot.slane %v5866_v18, 1  ;;  %v263_v7 = vrot.slane %v261_v61, 1 }
  0x79   :  { %368 = vrot.lane.b32.xlu0 %v341_v34, %s5626_s26  ;;  %v6116_v9 = vpop.permute.xlu2 %514  ;;  %v275_v53 = vor.u32 %v273_v49, %v271_v44  ;;  %v5407_v49 = vld [vmem:[%s9602_s1 + $0xac] sm:$0xf]  ;;  %v5432_v34 = vld [vmem:[%s9602_s1 + $0x170] sm:$0xf0]  ;;  %v353_v46 = vsel %vm330_vm4, %v350_v39, %v352_v48 }
  0x7a   :  { %v248_v0 = vsel %vm180_vm2, %v243_v37, %v247_v55  ;;  %v349_v41 = vsel %vm330_vm4, %v346_v60, %v348_v5  ;;  %v351_v61 = vsel %vm330_vm4, %v348_v5, %v350_v39  ;;  %v264_v43 = vsel %vm180_vm2, %v259_v40, %v263_v7  ;;  %v5405_v55 = vld [vmem:[%s9602_s1 + $0x98] sm:$0xf0]  ;;  %v5404_v37 = vld [vmem:[%s9602_s1 + $0x94] sm:$0xf] }
  0x7b   :  { %v267_v14 = vor.u32 %v265_v63, %v263_v7  ;;  %v5408_v63 = vld [vmem:[%s9602_s1 + $0xb0] sm:$0xf0]  ;;  %v4885_v28 = vor.u32 %v5407_v49, %v4882_v20  ;;  %v280_v35 = vsel %vm180_vm2, %v275_v53, %v279_v62  ;;  %v354_v7 = vrot.slane %v5921_v22, 1  ;;  %v4952_v53 = vld [vmem:[%s9602_s1 + $0x138] sm:$0xf] }
  0x7c   :  { %v4881_v31 = vor.u32 %v5408_v63, %v4880_v36  ;;  %v5426_v62 = vld [vmem:[%s9602_s1 + $0x140] sm:$0xf0]  ;;  %v4844_v49 = vld [vmem:[%s9602_s1 + $0x60] sm:$0xf] }
  0x7d   :  { %v272_v25 = vsel %vm180_vm2, %v267_v14, %v271_v44  ;;  %1422 = vmatpush.bf16.msra.mxu3 %v4885_v28  ;;  %v4858_v14 = vld [vmem:[%s9602_s1 + $0x84] sm:$0xf0]  ;;  %v355_v36 = vsel %vm330_vm4, %v352_v48, %v354_v7  ;;  %v4953_v63 = vor.u32 %v5426_v62, %v4952_v53  ;;  %v5398_v20 = vld [vmem:[%s9602_s1 + $0x64] sm:$0xf]  ;;  %v4940_v28 = vld [vmem:[%s9602_s1 + $0x120] sm:$0xf] }
  0x7e   :  { %1173 = vmatpush.bf16.msra.mxu0 %v4881_v31  ;;  %v5399_v31 = vld [vmem:[%s9602_s1 + $0x68] sm:$0xf0]  ;;  %v5392_v53 = vld [vmem:[%s9602_s1 + $0x34] sm:$0xf] }
  0x7f   :  { %370 = vrot.lane.b32.xlu2 %v343_v23, %s5626_s26  ;;  %v4977_v23 = vor.u32 %v5432_v34, %v4976_v51  ;;  %v288_v34 = vsel %vm180_vm2, %v283_v29, %v287_v4  ;;  %v4845_v48 = vor.u32 %v5399_v31, %v4844_v49  ;;  %v5420_v29 = vld [vmem:[%s9602_s1 + $0x110] sm:$0xf0] }
  0x80   :  { %372 = vrot.lane.b32.xlu1 %v345_v16, %s5626_s26  ;;  %v4868_v16 = vld [vmem:[%s9602_s1 + $0x90] sm:$0xf] }
  0x81   :  { %312 = vrot.lane.b32.xlu0 %v240_v30, %s5627_s27  ;;  %v6146_v45 = vpop.permute.xlu2 %458  ;;  %v4869_v60 = vor.u32 %v5405_v55, %v4868_v16  ;;  %1256 = vmatpush.bf16.msra.mxu1 %v4977_v23  ;;  %v5423_v23 = vld [vmem:[%s9602_s1 + $0x128] sm:$0xf0] }
  0x82   :  { %v6109_v59 = vpop.permute.xlu1 %452  ;;  %v4941_v55 = vor.u32 %v5423_v23, %v4940_v28  ;;  %v5390_v28 = vld [vmem:[%s9602_s1 + $0x20] sm:$0xf0]  ;;  %v5389_v23 = vld [vmem:[%s9602_s1 + $0x1c] sm:$0xf] }
  0x83   :  { %v6111_v32 = vpop.permute.xlu0 %450  ;;  %1174 = vmatpush.bf16.msra.mxu0 %v4869_v60 }
  0x87   :  { %314 = vrot.lane.b32.xlu2 %v248_v0, %s5627_s27  ;;  %v4870_v0 = vld [vmem:[%s9602_s1 + $0x9c] sm:$0xf0] }
  0x88   :  { %316 = vrot.lane.b32.xlu1 %v256_v6, %s5627_s27  ;;  %v4964_v6 = vld [vmem:[%s9602_s1 + $0x150] sm:$0xf]  ;;  %v4873_v5 = vor.u32 %v5404_v37, %v4870_v0  ;;  %v295_v37 = vrot.slane %v293_v38, 1  ;;  %v5396_v38 = vld [vmem:[%s9602_s1 + $0x50] sm:$0xf0] }
  0x89   :  { %374 = vrot.lane.b32.xlu0 %v347_v12, %s5626_s26  ;;  %v5429_v12 = vld [vmem:[%s9602_s1 + $0x158] sm:$0xf0]  ;;  %v6204_v39 = vpop.permute.xlu2 %520 }
  0x8a   :  { %v6127_v30 = vpop.permute.xlu1 %512  ;;  %v4965_v40 = vor.u32 %v5429_v12, %v4964_v6  ;;  %1423 = vmatpush.bf16.msra.mxu3 %v4873_v5  ;;  %v4832_v6 = vld [vmem:[%s9602_s1 + $0x48] sm:$0xf] }
  0x8b   :  { %v511_v1 = vpop.permute.xlu0 %510  ;;  %v6228_v33 = vsel %vm663_vm5, %v6109_v59, %v6127_v30  ;;  %v4861_v30 = vor.u32 %v5401_v50, %v4858_v14  ;;  %v4833_v5 = vor.u32 %v5396_v38, %v4832_v6  ;;  %v5393_v14 = vld [vmem:[%s9602_s1 + $0x38] sm:$0xf0]  ;;  %v5414_v6 = vld [vmem:[%s9602_s1 + $0xe0] sm:$0xf0] }
  0x8c   :  { %v6137_v2 = vsel %vm663_vm5, %v6111_v32, %v511_v1  ;;  %v356_v1 = vrot.slane %v5950_v10, 1  ;;  %1257 = vmatpush.bf16.msra.mxu1 %v4965_v40  ;;  %9681 = vst [vmem:[#allocation6_spill] sm:$0xff] %v6228_v33  ;;  %v4834_v40 = vld [vmem:[%s9602_s1 + $0x54] sm:$0xf0] }
  0x8d   :  { %9680 = vst [vmem:[#allocation5_spill] sm:$0xff] %v6137_v2  ;;  %5046 = vmatmul.msk.bf16.vlgmr.msra.gmra.mxu2 %vm1132_vm6, %v6137_v2 }
  0x8e   :  { %v357_v51 = vsel %vm330_vm4, %v354_v7, %v356_v1  ;;  %1424 = vmatpush.bf16.msra.mxu3 %v4861_v30  ;;  %v4928_v7 = vld [vmem:[%s9602_s1 + $0x108] sm:$0xf]  ;;  %v5428_v30 = vld [vmem:[%s9602_s1 + $0x154] sm:$0xf] }
  0x8f   :  { %376 = vrot.lane.b32.xlu2 %v349_v41, %s5626_s26  ;;  %v4929_v50 = vor.u32 %v5420_v29, %v4928_v7 }
  0x90   :  { %378 = vrot.lane.b32.xlu1 %v351_v61, %s5626_s26  ;;  %v4856_v61 = vld [vmem:[%s9602_s1 + $0x78] sm:$0xf]  ;;  %1258 = vmatpush.bf16.msra.mxu1 %v4953_v63  ;;  %v4966_v63 = vld [vmem:[%s9602_s1 + $0x15c] sm:$0xf0] }
  0x91   :  { %318 = vrot.lane.b32.xlu0 %v264_v43, %s5627_s27  ;;  %v5402_v43 = vld [vmem:[%s9602_s1 + $0x80] sm:$0xf0]  ;;  %v6283_v12 = vpop.permute.xlu2 %464  ;;  %v4969_v31 = vor.u32 %v5428_v30, %v4966_v63 }
  0x92   :  { %v6158_v3 = vpop.permute.xlu1 %516  ;;  %v4857_v44 = vor.u32 %v5402_v43, %v4856_v61 }
  0x93   :  { %v6160_v8 = vpop.permute.xlu0 %456  ;;  %1506 = vmatpush.bf16.msrb.mxu2 %v4969_v31  ;;  %v5425_v31 = vld [vmem:[%s9602_s1 + $0x13c] sm:$0xf] }
  0x94   :  { %1175 = vmatpush.bf16.msra.mxu0 %v4857_v44  ;;  %1259 = vmatpush.bf16.msra.mxu1 %v4941_v55  ;;  %v4820_v44 = vld [vmem:[%s9602_s1 + $0x30] sm:$0xf] }
  0x95   :  { %v4821_v62 = vor.u32 %v5393_v14, %v4820_v44 }
  0x97   :  { %320 = vrot.lane.b32.xlu2 %v272_v25, %s5627_s27  ;;  %v4846_v25 = vld [vmem:[%s9602_s1 + $0x6c] sm:$0xf0] }
  0x98   :  { %322 = vrot.lane.b32.xlu1 %v280_v35, %s5627_s27  ;;  %v4849_v16 = vor.u32 %v5398_v20, %v4846_v25  ;;  %v291_v35 = vor.u32 %v289_v42, %v287_v4  ;;  %1176 = vmatpush.bf16.msra.mxu0 %v4845_v48  ;;  %v5395_v42 = vld [vmem:[%s9602_s1 + $0x4c] sm:$0xf]  ;;  %v299_v4 = vor.u32 %v297_v58, %v295_v37  ;;  %v5417_v20 = vld [vmem:[%s9602_s1 + $0xf8] sm:$0xf0]  ;;  %v4808_v25 = vld [vmem:[%s9602_s1 + $0x18] sm:$0xf] }
  0x99   :  { %380 = vrot.lane.b32.xlu0 %v353_v46, %s5626_s26  ;;  %v358_v46 = vrot.slane %v5981_v56, 1  ;;  %v4837_v43 = vor.u32 %v5395_v42, %v4834_v40  ;;  %1260 = vmatpush.bf16.msra.mxu1 %v4929_v50  ;;  %v4809_v55 = vor.u32 %v5390_v28, %v4808_v25  ;;  %v5386_v40 = vld [vmem:[%s9602_s1 + $0x4] sm:$0xf]  ;;  %v6365_v7 = vpop.permute.xlu2 %526 }
  0x9a   :  { %v6212_v19 = vpop.permute.xlu1 %460  ;;  %1425 = vmatpush.bf16.msra.mxu3 %v4849_v16  ;;  %v296_v61 = vsel %vm180_vm2, %v291_v35, %v295_v37  ;;  %v6343_v16 = vsel %vm663_vm5, %v6093_v17, %v6116_v9  ;;  %v4810_v37 = vld [vmem:[%s9602_s1 + $0x24] sm:$0xf0]  ;;  %v4904_v35 = vld [vmem:[%s9602_s1 + $0xd8] sm:$0xf]  ;;  %v4796_v9 = vld [vmem:[%s9602_s1] sm:$0xf] }
  0x9b   :  { %v6214_v41 = vpop.permute.xlu0 %518  ;;  %v359_v58 = vsel %vm330_vm4, %v356_v1, %v358_v46  ;;  %v4916_v1 = vld [vmem:[%s9602_s1 + $0xf0] sm:$0xf]  ;;  %v4813_v38 = vor.u32 %v5389_v23, %v4810_v37  ;;  %v4905_v42 = vor.u32 %v5414_v6, %v4904_v35 }
  0x9c   :  { %1177 = vmatpush.bf16.msra.mxu0 %v4833_v5  ;;  %v5387_v5 = vld [vmem:[%s9602_s1 + $0x8] sm:$0xf0] }
  0x9d   :  { %5047 = vmatmul.msk.bf16.gmra.mxu2 %vm1132_vm6, %v6228_v33  ;;  %v4797_v29 = vor.u32 %v5387_v5, %v4796_v9 }
  0x9e   :  { %1426 = vmatpush.bf16.msra.mxu3 %v4837_v43  ;;  %v5411_v43 = vld [vmem:[%s9602_s1 + $0xc8] sm:$0xf0] }
  0x9f   :  { %382 = vrot.lane.b32.xlu2 %v355_v36, %s5626_s26  ;;  %v4822_v36 = vld [vmem:[%s9602_s1 + $0x3c] sm:$0xf0] }
  0xa0   :  { %384 = vrot.lane.b32.xlu1 %v357_v51, %s5626_s26  ;;  %v4825_v49 = vor.u32 %v5392_v53, %v4822_v36  ;;  %v4917_v51 = vor.u32 %v5417_v20, %v4916_v1  ;;  %1178 = vmatpush.bf16.msra.mxu0 %v4821_v62  ;;  %v6388_v62 = vsel %vm663_vm5, %v6160_v8, %v6158_v3  ;;  %v4954_v3 = vld [vmem:[%s9602_s1 + $0x144] sm:$0xf0] }
  0xa1   :  { %324 = vrot.lane.b32.xlu0 %v288_v34, %s5627_s27  ;;  %v4957_v1 = vor.u32 %v5425_v31, %v4954_v3  ;;  %v6411_v20 = vsel %vm663_vm5, %v6146_v45, %v6214_v41  ;;  %v5419_v31 = vld [vmem:[%s9602_s1 + $0x10c] sm:$0xf] }
  0xa2   :  { %v6270_v60 = vpop.permute.xlu1 %522  ;;  %1427 = vmatpush.bf16.msra.mxu3 %v4825_v49  ;;  %1261 = vmatpush.bf16.msra.mxu1 %v4917_v51 }
  0xa3   :  { %v6272_v0 = vpop.permute.xlu0 %462  ;;  %1507 = vmatpush.bf16.msrb.mxu2 %v4957_v1 }
  0xa4   :  { %1179 = vmatpush.bf16.msra.mxu0 %v4809_v55 }
  0xa6   :  { %1428 = vmatpush.bf16.msra.mxu3 %v4813_v38  ;;  %1262 = vmatpush.bf16.msra.mxu1 %v4905_v42  ;;  %v6438_v38 = vsel %vm663_vm5, %v6212_v19, %v6204_v39  ;;  %v5422_v39 = vld [vmem:[%s9602_s1 + $0x124] sm:$0xf] }
  0xa7   :  { %326 = vrot.lane.b32.xlu2 %v296_v61, %s5627_s27  ;;  %v4892_v61 = vld [vmem:[%s9602_s1 + $0xc0] sm:$0xf]  ;;  %9682 = vst [vmem:[#allocation7_spill] sm:$0xff] %v6438_v38 }
  0xa8   :  { %328 = vrot.lane.b32.xlu1 %v299_v4, %s5627_s27  ;;  %v4798_v4 = vld [vmem:[%s9602_s1 + $0xc] sm:$0xf0]  ;;  %v4893_v44 = vor.u32 %v5411_v43, %v4892_v61  ;;  %1180 = vmatpush.bf16.msra.mxu0 %v4797_v29  ;;  %v6463_v29 = vsel %vm663_vm5, %v6272_v0, %v6270_v60  ;;  %s5633_s27 = smov [#allocation2]  }
  0xa9   :  { %386 = vrot.lane.b32.xlu0 %v359_v58, %s5626_s26  ;;  %v4801_v50 = vor.u32 %v5386_v40, %v4798_v4  ;;  %v6383_v58 = vpop.permute.xlu2 %470  ;;  %v4942_v40 = vld [vmem:[%s9602_s1 + $0x12c] sm:$0xf0]  ;;  %9683 = vst [vmem:[#allocation8_spill] sm:$0xff] %v6463_v29 }
  0xaa   :  { %v6327_v34 = vpop.permute.xlu1 %466  ;;  %1263 = vmatpush.bf16.msra.mxu1 %v4893_v44 }
  0xab   :  { %v6329_v48 = vpop.permute.xlu0 %524  ;;  %1429 = vmatpush.bf16.msra.mxu3 %v4801_v50 }
  0xac   :  { %v6482_v60 = vsel %vm663_vm5, %v6283_v12, %v6329_v48 }
  0xad   :  { %5048 = vmatmul.msk.bf16.gmra.mxu2 %vm1132_vm6, %v6343_v16  ;;  %9684 = vst [vmem:[#allocation9_spill] sm:$0xff] %v6482_v60 }
  0xaf   :  { %388 = vrot.lane.b32.xlu2 %v358_v46, %s5626_s26 }
  0xb1   :  { %v6396_v46 = vpop.permute.xlu2 %532 }
  0xb2   :  { %v6379_v14 = vpop.permute.xlu1 %528 }
  0xb3   :  { %v6381_v53 = vpop.permute.xlu0 %468 }
  0xb9   :  { %v6417_v28 = vpop.permute.xlu2 %476 }
  0xba   :  { %v6390_v36 = vpop.permute.xlu1 %472 }
  0xbb   :  { %v6392_v30 = vpop.permute.xlu0 %530 }
  0xbd   :  { %5049 = vmatmul.msk.bf16.gmra.mxu2 %vm1132_vm6, %v6388_v62 }
  0xc1   :  { %v6433_v6 = vpop.permute.xlu2 %538 }
  0xc2   :  { %v6398_v63 = vpop.permute.xlu1 %534 }
  0xc3   :  { %v6400_v49 = vpop.permute.xlu0 %474 }
  0xc9   :  { %v303_v42 = vpop.permute.xlu2 %302 }
  0xca   :  { %v6413_v51 = vpop.permute.xlu1 %478 }
  0xcb   :  { %v6415_v25 = vpop.permute.xlu0 %536 }
  0xcd   :  { %5050 = vmatmul.msk.bf16.gmra.mxu2 %vm1132_vm6, %v6411_v20 }
  0xd2   :  { %v361_v23 = vpop.permute.xlu1 %360 }
  0xd3   :  { %v301_v55 = vpop.permute.xlu0 %300 }
  0xd4   :  { %v588_v37 = vsel %vm586_vm7, %v301_v55, %v361_v23  ;;  %v6424_v41 = vsel %vm540_vm8, %v5743_v27, %v301_v55  ;;  %v6507_v55 = vsel %vm663_vm5, %v6327_v34, %v6365_v7 }
  0xd5   :  { %1181 = vmatmul.bf16.vlgmr.msra.gmra.mxu0 %v6424_v41  ;;  %1430 = vmatmul.bf16.vlgmr.msra.gmra.mxu3 %v6424_v41  ;;  %v6430_v35 = vsel %vm617_vm9, %v588_v37, %v6111_v32  ;;  %v6445_v32 = vsel %vm540_vm8, %v5739_v24, %v303_v42  ;;  %v4945_v24 = vor.u32 %v5422_v39, %v4942_v40 }
  0xd6   :  { %1264 = vmatmul.bf16.vlgmr.msra.gmra.mxu1 %v6430_v35  ;;  %9685 = vst [vmem:[#allocation10_spill] sm:$0xff] %v6507_v55  ;;  %v6530_v39 = vsel %vm663_vm5, %v6381_v53, %v6379_v14 }
  0xd7   :  { %1508 = vmatpush.bf16.msrb.mxu2 %v4945_v24  ;;  %9687 = vst [vmem:[#allocation12_spill] sm:$0xff] %v6530_v39 }
  0xda   :  { %v305_v4 = vpop.permute.xlu1 %304 }
  0xdb   :  { %v363_v27 = vpop.permute.xlu0 %362  ;;  %v6470_v43 = vsel %vm540_vm8, %v5741_v26, %v305_v4 }
  0xdc   :  { %v590_v9 = vsel %vm586_vm7, %v303_v42, %v363_v27 }
  0xdd   :  { %5051 = vmatmul.msk.bf16.gmra.mxu2 %vm1132_vm6, %v6438_v38  ;;  %v6451_v5 = vsel %vm617_vm9, %v590_v9, %v6109_v59  ;;  %v365_v59 = vpop.permute.xlu2 %364 }
  0xde   :  { %v592_v61 = vsel %vm586_vm7, %v305_v4, %v365_v59  ;;  %v4918_v59 = vld [vmem:[%s9602_s1 + $0xfc] sm:$0xf0] }
  0xdf   :  { %v6476_v50 = vsel %vm617_vm9, %v592_v61, %v6093_v17  ;;  %v4930_v17 = vld [vmem:[%s9602_s1 + $0x114] sm:$0xf0] }
  0xe0   :  { %v4933_v3 = vor.u32 %v5419_v31, %v4930_v17  ;;  %v6559_v31 = vsel %vm663_vm5, %v6383_v58, %v6392_v30 }
  0xe1   :  { %9689 = vst [vmem:[#allocation14_spill] sm:$0xff] %v6559_v31 }
  0xe2   :  { %v367_v26 = vpop.permute.xlu1 %366  ;;  %1509 = vmatpush.bf16.msrb.mxu2 %v4933_v3 }
  0xe3   :  { %v307_v44 = vpop.permute.xlu0 %306 }
  0xe4   :  { %v594_v1 = vsel %vm586_vm7, %v307_v44, %v367_v26  ;;  %v6495_v48 = vsel %vm540_vm8, %v5776_v54, %v307_v44 }
  0xe5   :  { %1186 = vmatmul.bf16.gmra.mxu0 %v6445_v32  ;;  %1435 = vmatmul.bf16.gmra.mxu3 %v6445_v32  ;;  %v6501_v23 = vsel %vm617_vm9, %v594_v1, %v6160_v8  ;;  %v309_v27 = vpop.permute.xlu2 %308 }
  0xe6   :  { %1269 = vmatmul.bf16.gmra.mxu1 %v6451_v5  ;;  %v6516_v8 = vsel %vm540_vm8, %v5779_v57, %v309_v27 }
  0xe7   :  { %9686 = vst [vmem:[#allocation11_spill] sm:$0xff] %v6516_v8 }
  0xea   :  { %v311_v40 = vpop.permute.xlu1 %310 }
  0xeb   :  { %v369_v54 = vpop.permute.xlu0 %368  ;;  %v6545_v14 = vsel %vm540_vm8, %v5800_v11, %v311_v40 }
  0xec   :  { %v596_v42 = vsel %vm586_vm7, %v309_v27, %v369_v54  ;;  %9688 = vst [vmem:[#allocation13_spill] sm:$0xff] %v6545_v14  ;;  %v6582_v27 = vsel %vm663_vm5, %v6390_v36, %v6396_v46  ;;  %v4906_v46 = vld [vmem:[%s9602_s1 + $0xe4] sm:$0xf0] }
  0xed   :  { %5052 = vmatmul.msk.bf16.gmra.mxu2 %vm1132_vm6, %v6463_v29  ;;  %v6522_v7 = vsel %vm617_vm9, %v596_v42, %v6146_v45  ;;  %v371_v57 = vpop.permute.xlu2 %370  ;;  %v5416_v45 = vld [vmem:[%s9602_s1 + $0xf4] sm:$0xf]  ;;  %9691 = vst [vmem:[#allocation16_spill] sm:$0xff] %v6582_v27 }
  0xee   :  { %v4921_v4 = vor.u32 %v5416_v45, %v4918_v59  ;;  %v598_v61 = vsel %vm586_vm7, %v311_v40, %v371_v57  ;;  %v5413_v45 = vld [vmem:[%s9602_s1 + $0xdc] sm:$0xf] }
  0xef   :  { %v6551_v26 = vsel %vm617_vm9, %v598_v61, %v6212_v19  ;;  %v4909_v59 = vor.u32 %v5413_v45, %v4906_v46  ;;  %v6611_v61 = vsel %vm663_vm5, %v6400_v49, %v6398_v63 }
  0xf0   :  { %1510 = vmatpush.bf16.msrb.mxu2 %v4921_v4  ;;  %9693 = vst [vmem:[#allocation18_spill] sm:$0xff] %v6611_v61 }
  0xf2   :  { %v373_v11 = vpop.permute.xlu1 %372 }
  0xf3   :  { %v313_v17 = vpop.permute.xlu0 %312 }
  0xf4   :  { %v600_v1 = vsel %vm586_vm7, %v313_v17, %v373_v11  ;;  %v6568_v19 = vsel %vm540_vm8, %v5804_v15, %v313_v17  ;;  %1511 = vmatpush.bf16.msrb.mxu2 %v4909_v59  ;;  %v6616_v11 = vld [vmem:[%s9603_s2] sm:$0x7] }
  0xf5   :  { %1191 = vmatmul.bf16.gmra.mxu0 %v6470_v43  ;;  %1440 = vmatmul.bf16.gmra.mxu3 %v6470_v43  ;;  %9690 = vst [vmem:[#allocation15_spill] sm:$0xff] %v6568_v19  ;;  %v6574_v30 = vsel %vm617_vm9, %v600_v1, %v6272_v0  ;;  %v315_v15 = vpop.permute.xlu2 %314  ;;  %v6621_v1 = vperm.slane %v6616_v11, 0 }
  0xf6   :  { %1274 = vmatmul.bf16.gmra.mxu1 %v6476_v50  ;;  %v6591_v0 = vsel %vm540_vm8, %v5843_v52, %v315_v15 }
  0xf7   :  { %9692 = vst [vmem:[#allocation17_spill] sm:$0xff] %v6591_v0 }
  0xfa   :  { %v317_v17 = vpop.permute.xlu1 %316 }
  0xfb   :  { %v375_v42 = vpop.permute.xlu0 %374  ;;  %v6628_v63 = vsel %vm540_vm8, %v5859_v13, %v317_v17  ;;  %v5410_v13 = vld [vmem:[%s9602_s1 + $0xc4] sm:$0xf] }
  0xfc   :  { %v602_v40 = vsel %vm586_vm7, %v315_v15, %v375_v42  ;;  %9694 = vst [vmem:[#allocation19_spill] sm:$0xff] %v6628_v63 }
  0xfd   :  { %5053 = vmatmul.msk.bf16.gmra.mxu2 %vm1132_vm6, %v6482_v60  ;;  %v6603_v4 = vsel %vm617_vm9, %v602_v40, %v6283_v12  ;;  %v377_v12 = vpop.permute.xlu2 %376 }
  0xfe   :  { %v604_v42 = vsel %vm586_vm7, %v317_v17, %v377_v12  ;;  %v4894_v17 = vld [vmem:[%s9602_s1 + $0xcc] sm:$0xf0] }
 0x105   :  { %1196 = vmatmul.bf16.gmra.mxu0 %v6495_v48  ;;  %1445 = vmatmul.bf16.gmra.mxu3 %v6495_v48 }
 0x106   :  { %1279 = vmatmul.bf16.gmra.mxu1 %v6501_v23 }
 0x10d   :  { %5054 = vmatmul.msk.bf16.gmra.mxu2 %vm1132_vm6, %v6507_v55 }
 0x110   :  { %v6511_v37 = vpop.f32.mrf.mxu2 }
 0x115   :  { %1201 = vmatmul.bf16.gmra.mxu0 %v6516_v8  ;;  %1450 = vmatmul.bf16.gmra.mxu3 %v6516_v8 }
 0x116   :  { %1284 = vmatmul.bf16.gmra.mxu1 %v6522_v7 }
 0x118   :  { %v6525_v9 = vpop.f32.mrf.mxu2 }
 0x11d   :  { %5055 = vmatmul.msk.bf16.gmra.mxu2 %vm1132_vm6, %v6530_v39  ;;  %v319_v39 = vpop.permute.xlu0 %318 }
 0x120   :  { %v6534_v24 = vpop.f32.mrf.mxu2 }
 0x125   :  { %1206 = vmatmul.bf16.gmra.mxu0 %v6545_v14  ;;  %1455 = vmatmul.bf16.gmra.mxu3 %v6545_v14 }
 0x126   :  { %1289 = vmatmul.bf16.gmra.mxu1 %v6551_v26 }
 0x128   :  { %v6554_v44 = vpop.f32.mrf.mxu2 }
 0x12d   :  { %5056 = vmatmul.msk.bf16.gmra.mxu2 %vm1132_vm6, %v6559_v31  ;;  %v379_v31 = vpop.permute.xlu1 %378 }
 0x130   :  { %v6563_v3 = vpop.f32.mrf.mxu2 }
 0x135   :  { %1211 = vmatmul.bf16.gmra.mxu0 %v6568_v19  ;;  %1460 = vmatmul.bf16.gmra.mxu3 %v6568_v19 }
 0x136   :  { %1294 = vmatmul.bf16.gmra.mxu1 %v6574_v30 }
 0x138   :  { %v6577_v54 = vpop.f32.mrf.mxu2 }
 0x13d   :  { %5057 = vmatmul.msk.bf16.gmra.mxu2 %vm1132_vm6, %v6582_v27 }
 0x140   :  { %v6586_v57 = vpop.f32.mrf.mxu2 }
 0x145   :  { %1216 = vmatmul.bf16.gmra.mxu0 %v6591_v0  ;;  %1465 = vmatmul.bf16.gmra.mxu3 %v6591_v0  ;;  %v606_v0 = vsel %vm586_vm7, %v319_v39, %v379_v31 }
 0x146   :  { %1299 = vmatmul.bf16.gmra.mxu1 %v6603_v4 }
 0x148   :  { %v6606_v52 = vpop.f32.mrf.mxu2 }
 0x14d   :  { %5058 = vmatmul.msk.bf16.gmra.mxu2 %vm1132_vm6, %v6611_v61  ;;  %v6635_v61 = vsel %vm617_vm9, %v604_v42, %v6327_v34  ;;  %v6652_v34 = vsel %vm663_vm5, %v6417_v28, %v6415_v25 }
 0x14e   :  { %9695 = vst [vmem:[#allocation20_spill] sm:$0xff] %v6652_v34 }
 0x150   :  { %v6623_v15 = vpop.f32.mrf.mxu2 }
 0x152   :  { %v1182_v40 = vpop.f32.mrf.mxu0 }
 0x153   :  { %v1183_v45 = vadd.f32 %v1182_v40, %v6621_v1  ;;  %v1265_v46 = vpop.f32.mrf.mxu1 }
 0x155   :  { %v1266_v59 = vadd.f32 %v1265_v46, %v1183_v45  ;;  %1221 = vmatmul.bf16.gmra.mxu0 %v6628_v63  ;;  %1470 = vmatmul.bf16.gmra.mxu3 %v6628_v63  ;;  %v4897_v46 = vor.u32 %v5410_v13, %v4894_v17 }
 0x156   :  { %1304 = vmatmul.bf16.gmra.mxu1 %v6635_v61 }
 0x157   :  { %v1349_v12 = vadd.f32 %v6511_v37, %v1266_v59  ;;  %1512 = vmatpush.bf16.msrb.mxu2 %v4897_v46 }
 0x158   :  { %v6645_v40 = vpop.f32.mrf.mxu2  ;;  %v6647_v45 = vpop.f32.mrf.mxu3 }
 0x159   :  { %v1920_v63 = vmax.f32 %v1349_v12, 0.0 }
 0x15a   :  { %v1184_v42 = vpop.f32.mrf.mxu0 }
 0x15b   :  { %v1185_v37 = vadd.f32 %v1184_v42, %v6621_v1  ;;  %v1267_v59 = vpop.f32.mrf.mxu1  ;;  %v6665_v42 = vsel %vm540_vm8, %v5866_v18, %v319_v39 }
 0x15c   :  { %9697 = vst [vmem:[#allocation22_spill] sm:$0xff] %v6665_v42 }
 0x15d   :  { %v1268_v27 = vadd.f32 %v1267_v59, %v1185_v37  ;;  %5059 = vmatmul.msk.bf16.gmra.mxu2 %vm1132_vm6, %v6652_v34  ;;  %v2095_v37 = vrot.slane %v1920_v63, 1 }
 0x15f   :  { %v1351_v55 = vadd.f32 %v6525_v9, %v1268_v27 }
 0x160   :  { %v6658_v13 = vpop.f32.mrf.mxu2  ;;  %v6660_v17 = vpop.f32.mrf.mxu3 }
 0x161   :  { %9696 = vst [vmem:[#allocation21_spill] sm:$0xff] %v6660_v17  ;;  %v1923_v25 = vmax.f32 %v1351_v55, 0.0  ;;  %v6672_v55 = vsel %vm617_vm9, %v606_v0, %v6381_v53 }
 0x162   :  { %v1187_v46 = vpop.f32.mrf.mxu0  ;;  %9698 = vst [vmem:[#allocation23_spill] sm:$0xff] %v6672_v55 }
 0x163   :  { %v2096_v59 = vrot.slane %v1923_v25, 1  ;;  %v1188_v34 = vadd.f32 %v1187_v46, %v6621_v1  ;;  %v1270_v60 = vpop.f32.mrf.mxu1 }
 0x165   :  { %v1271_v12 = vadd.f32 %v1270_v60, %v1188_v34  ;;  %1226 = vmatmul.bf16.gmra.mxu0 %v6665_v42  ;;  %1475 = vmatmul.bf16.gmra.mxu3 %v6665_v42  ;;  %v2097_v9 = vsel %vm330_vm4, %v2095_v37, %v2096_v59  ;;  %v6686_v34 = vsel %vm663_vm5, %v6413_v51, %v6433_v6  ;;  %vm3684_vm5 = vcmask 785408  }
 0x166   :  { %1309 = vmatmul.bf16.gmra.mxu1 %v6672_v55  ;;  %v6676_v18 = vmax.f32 %v1920_v63, %v2097_v9  ;;  %9701 = vst [vmem:[#allocation26_spill] sm:$0xff] %v6686_v34  ;;  %v381_v9 = vpop.permute.xlu0 %380 }
 0x167   :  { %v1354_v39 = vadd.f32 %v6534_v24, %v1271_v12  ;;  %v321_v12 = vpop.permute.xlu2 %320 }
 0x168   :  { %9699 = vst [vmem:[#allocation24_spill] sm:$0xff] %v6676_v18  ;;  %v6679_v31 = vpop.f32.mrf.mxu2  ;;  %v6681_v27 = vpop.f32.mrf.mxu3 }
 0x169   :  { %9700 = vst [vmem:[#allocation25_spill] sm:$0xff] %v6681_v27  ;;  %v1926_v60 = vmax.f32 %v1354_v39, 0.0 }
 0x16a   :  { %v1189_v53 = vpop.f32.mrf.mxu0 }
 0x16b   :  { %v2104_v0 = vrot.slane %v1926_v60, 1  ;;  %v1190_v46 = vadd.f32 %v1189_v53, %v6621_v1  ;;  %v1272_v37 = vpop.f32.mrf.mxu1  ;;  %v2528_v53 = vrot.slane %v6676_v18, 2 }
 0x16d   :  { %v1273_v42 = vadd.f32 %v1272_v37, %v1190_v46  ;;  %5060 = vmatmul.msk.bf16.gmra.mxu2 %vm1132_vm6, %v6686_v34  ;;  %v2105_v24 = vsel %vm330_vm4, %v2096_v59, %v2104_v0  ;;  %v608_v37 = vsel %vm586_vm7, %v321_v12, %v381_v9 }
 0x16e   :  { %v6692_v63 = vmax.f32 %v1923_v25, %v2105_v24  ;;  %v6704_v25 = vsel %vm540_vm8, %v5891_v47, %v321_v12  ;;  %v6716_v9 = vsel %vm617_vm9, %v608_v37, %v6383_v58 }
 0x16f   :  { %v1356_v39 = vadd.f32 %v6554_v44, %v1273_v42  ;;  %9704 = vst [vmem:[#allocation29_spill] sm:$0xff] %v6704_v25 }
 0x170   :  { %9702 = vst [vmem:[#allocation27_spill] sm:$0xff] %v6692_v63  ;;  %v6695_v19 = vpop.f32.mrf.mxu2  ;;  %v6697_v6 = vpop.f32.mrf.mxu3  ;;  %v2529_v29 = vrot.slane %v6692_v63, 2 }
 0x171   :  { %9703 = vst [vmem:[#allocation28_spill] sm:$0xff] %v6697_v6  ;;  %v1929_v46 = vmax.f32 %v1356_v39, 0.0 }
 0x172   :  { %v1192_v34 = vpop.f32.mrf.mxu0  ;;  %v6707_v59 = vsel %vm480_vm1, %v2528_v53, %v2529_v29  ;;  %9706 = vst [vmem:[#allocation31_spill] sm:$0xff] %v6716_v9 }
 0x173   :  { %9705 = vst [vmem:[#allocation30_spill] sm:$0xff] %v6707_v59  ;;  %v2110_v44 = vrot.slane %v1929_v46, 1  ;;  %v1193_v42 = vadd.f32 %v1192_v34, %v6621_v1  ;;  %v1275_v24 = vpop.f32.mrf.mxu1 }
 0x175   :  { %v1276_v14 = vadd.f32 %v1275_v24, %v1193_v42  ;;  %1231 = vmatmul.bf16.gmra.mxu0 %v6704_v25  ;;  %1480 = vmatmul.bf16.gmra.mxu3 %v6704_v25  ;;  %v2111_v47 = vsel %vm330_vm4, %v2104_v0, %v2110_v44 }
 0x176   :  { %1314 = vmatmul.bf16.gmra.mxu1 %v6716_v9  ;;  %v6720_v12 = vmax.f32 %v1926_v60, %v2111_v47  ;;  %v4984_v60 = vld [vmem:[%s9602_s1 + $0x170] sm:$0xf]  ;;  %v383_v9 = vpop.permute.xlu2 %382 }
 0x177   :  { %v1359_v34 = vadd.f32 %v6563_v3, %v1276_v14  ;;  %v5433_v14 = vld [vmem:[%s9602_s1 + $0x178] sm:$0xf0] }
 0x178   :  { %9707 = vst [vmem:[#allocation32_spill] sm:$0xff] %v6720_v12  ;;  %v6723_v39 = vpop.f32.mrf.mxu2  ;;  %v6725_v53 = vpop.f32.mrf.mxu3  ;;  %v2537_v42 = vrot.slane %v6720_v12, 2  ;;  %v4985_v47 = vor.u32 %v5433_v14, %v4984_v60 }
 0x179   :  { %9708 = vst [vmem:[#allocation33_spill] sm:$0xff] %v6725_v53  ;;  %v1932_v24 = vmax.f32 %v1359_v34, 0.0 }
 0x17a   :  { %v1194_v6 = vpop.f32.mrf.mxu0  ;;  %v6729_v25 = vsel %vm480_vm1, %v2529_v29, %v2537_v42  ;;  %1754 = vmatpush.bf16.msrb.mxu3 %v4985_v47 }
 0x17b   :  { %9709 = vst [vmem:[#allocation34_spill] sm:$0xff] %v6729_v25  ;;  %v2116_v58 = vrot.slane %v1932_v24, 1  ;;  %v1195_v0 = vadd.f32 %v1194_v6, %v6621_v1  ;;  %v1277_v37 = vpop.f32.mrf.mxu1  ;;  %v323_v6 = vpop.permute.xlu1 %322 }
 0x17c   :  { %v325_v25 = vpop.permute.xlu0 %324 }
 0x17d   :  { %v1278_v34 = vadd.f32 %v1277_v37, %v1195_v0  ;;  %1513 = vmatmul.bf16.vlgmr.msrb.gmra.mxu2 %v6430_v35  ;;  %v2117_v29 = vsel %vm330_vm4, %v2110_v44, %v2116_v58  ;;  %v610_v0 = vsel %vm586_vm7, %v323_v6, %v383_v9  ;;  %v6756_v44 = vsel %vm540_vm8, %v5919_v21, %v323_v6 }
 0x17e   :  { %v6742_v53 = vmax.f32 %v1929_v46, %v2117_v29  ;;  %9711 = vst [vmem:[#allocation36_spill] sm:$0xff] %v6756_v44  ;;  %v6772_v21 = vsel %vm617_vm9, %v610_v0, %v6390_v36  ;;  %v5409_v29 = vld [vmem:[%s9602_s1 + $0xb8] sm:$0xf0]  ;;  %v4972_v0 = vld [vmem:[%s9602_s1 + $0x158] sm:$0xf] }
 0x17f   :  { %v6745_v38 = vadd.f32 %v6577_v54, %v1278_v34  ;;  %v779_v34 = vld [vmem:[%s9602_s1 + $0x200] sm:$0x3]  ;;  %9713 = vst [vmem:[#allocation38_spill] sm:$0xff] %v6772_v21 }
 0x180   :  { %v6747_v55 = vpop.f32.mrf.mxu2  ;;  %v6749_v27 = vpop.f32.mrf.mxu3  ;;  %v2543_v3 = vrot.slane %v6742_v53, 2 }
 0x181   :  { %9710 = vst [vmem:[#allocation35_spill] sm:$0xff] %v6749_v27  ;;  %v1935_v37 = vmax.f32 %v6745_v38, 0.0  ;;  %v4888_v38 = vld [vmem:[%s9602_s1 + $0xb0] sm:$0xf] }
 0x182   :  { %v1197_v60 = vpop.f32.mrf.mxu0  ;;  %v6759_v46 = vsel %vm480_vm1, %v2537_v42, %v2543_v3  ;;  %v1002_v42 = vunpack.c.l.b16 %v779_v34 }
 0x183   :  { %9712 = vst [vmem:[#allocation37_spill] sm:$0xff] %v6759_v46  ;;  %v2122_v54 = vrot.slane %v1935_v37, 1  ;;  %v1198_v14 = vadd.f32 %v1197_v60, %v6621_v1  ;;  %v1280_v47 = vpop.f32.mrf.mxu1  ;;  %v4889_v60 = vor.u32 %v5409_v29, %v4888_v38  ;;  %v5596_v29 = vld [vmem:[%s9602_s1 + $0x1f8] sm:$0x33]  ;;  %v385_v18 = vpop.permute.xlu1 %384 }
 0x184   :  { %v1068_v9 = vpack.c.b16 %v1002_v42, %v1002_v42 }
 0x185   :  { %v1281_v6 = vadd.f32 %v1280_v47, %v1198_v14  ;;  %1236 = vmatmul.bf16.gmra.mxu0 %v6756_v44  ;;  %1485 = vmatmul.bf16.gmra.mxu3 %v6756_v44  ;;  %v2123_v27 = vsel %vm330_vm4, %v2116_v58, %v2122_v54  ;;  %v5430_v14 = vld [vmem:[%s9602_s1 + $0x160] sm:$0xf0] }
 0x186   :  { %1319 = vmatmul.bf16.gmra.mxu1 %v6772_v21  ;;  %v6781_v59 = vmax.f32 %v1932_v24, %v2123_v27  ;;  %v1171_v34 = vsel %vm1163_vm3, %v1068_v9, 0  ;;  %v4973_v27 = vor.u32 %v5430_v14, %v4972_v0  ;;  %v5406_v24 = vld [vmem:[%s9602_s1 + $0xa0] sm:$0xf0] }
 0x187   :  { %v6784_v36 = vadd.f32 %v6586_v57, %v1281_v6  ;;  %1671 = vmatpush.bf16.msrb.mxu1 %v4889_v60  ;;  %v4876_v57 = vld [vmem:[%s9602_s1 + $0x98] sm:$0xf]  ;;  %1839 = vmatpush.bf16.msra.mxu2 %v1171_v34  ;;  %v1001_v6 = vunpack.c.h.b16 %v5596_v29  ;;  %v4960_v34 = vld [vmem:[%s9602_s1 + $0x140] sm:$0xf]  ;;  %v5403_v29 = vld [vmem:[%s9602_s1 + $0x88] sm:$0xf0] }
 0x188   :  { %v6792_v47 = vpop.f32.mrf.mxu2  ;;  %v6794_v58 = vpop.f32.mrf.mxu3  ;;  %v2549_v38 = vrot.slane %v6781_v59, 2  ;;  %v4877_v9 = vor.u32 %v5406_v24, %v4876_v57  ;;  %1755 = vmatpush.bf16.msrb.mxu3 %v4973_v27  ;;  %v5427_v57 = vld [vmem:[%s9602_s1 + $0x148] sm:$0xf0]  ;;  %v4864_v24 = vld [vmem:[%s9602_s1 + $0x80] sm:$0xf] }
 0x189   :  { %9714 = vst [vmem:[#allocation39_spill] sm:$0xff] %v6794_v58  ;;  %v9650_v42 = vmax.f32 %v6784_v36, 0.0  ;;  %v1067_v58 = vpack.c.b16 %v1001_v6, %v1001_v6  ;;  %v4961_v27 = vor.u32 %v5427_v57, %v4960_v34 }
 0x18a   :  { %v1199_v60 = vpop.f32.mrf.mxu0  ;;  %v6809_v0 = vsel %vm480_vm1, %v2543_v3, %v2549_v38 }
 0x18b   :  { %v2128_v14 = vrot.slane %v9650_v42, 1  ;;  %v1200_v44 = vadd.f32 %v1199_v60, %v6621_v1  ;;  %v1282_v21 = vpop.f32.mrf.mxu1  ;;  %1672 = vmatpush.bf16.msrb.mxu1 %v4877_v9  ;;  %v1168_v9 = vsel %vm1163_vm3, %v1067_v58, 0  ;;  %v4865_v60 = vor.u32 %v5403_v29, %v4864_v24  ;;  %v5400_v24 = vld [vmem:[%s9602_s1 + $0x70] sm:$0xf0] }
 0x18c   :  { %1590 = vmatpush.bf16.msrb.mxu0 %v1168_v9  ;;  %1756 = vmatpush.bf16.msrb.mxu3 %v4961_v27  ;;  %v4852_v27 = vld [vmem:[%s9602_s1 + $0x68] sm:$0xf]  ;;  %v612_v29 = vsel %vm586_vm7, %v325_v25, %v385_v18  ;;  %v5443_v18 = vld [vmem:[%s9602_s1 + $0x1cc] sm:$0xf]  ;;  %vm3697_vm3 = vcmask 523264  }
 0x18d   :  { %v1283_v6 = vadd.f32 %v1282_v21, %v1200_v44  ;;  %1518 = vmatmul.bf16.gmra.mxu2 %v6451_v5  ;;  %v2129_v42 = vsel %vm330_vm4, %v2122_v54, %v2128_v14  ;;  %v5446_v44 = vld [vmem:[%s9602_s1 + $0x1e4] sm:$0xf]  ;;  %v5038_v21 = vld [vmem:[%s9602_s1 + $0x1ec] sm:$0xf0]  ;;  %v4948_v54 = vld [vmem:[%s9602_s1 + $0x128] sm:$0xf] }
 0x18e   :  { %v6831_v34 = vmax.f32 %v1935_v37, %v2129_v42  ;;  %v5041_v42 = vor.u32 %v5446_v44, %v5038_v21  ;;  %v6862_v44 = vsel %vm540_vm8, %v5921_v22, %v325_v25  ;;  %v5026_v22 = vld [vmem:[%s9602_s1 + $0x1d4] sm:$0xf0]  ;;  %v6876_v25 = vsel %vm617_vm9, %v612_v29, %v6400_v49  ;;  %v5397_v29 = vld [vmem:[%s9602_s1 + $0x58] sm:$0xf0] }
 0x18f   :  { %v6834_v57 = vadd.f32 %v6606_v52, %v1283_v6  ;;  %1673 = vmatpush.bf16.msrb.mxu1 %v4865_v60  ;;  %v5424_v52 = vld [vmem:[%s9602_s1 + $0x130] sm:$0xf0]  ;;  %v4853_v60 = vor.u32 %v5400_v24, %v4852_v27  ;;  %9716 = vst [vmem:[#allocation41_spill] sm:$0xff] %v6862_v44 }
 0x190   :  { %v6845_v58 = vpop.f32.mrf.mxu2  ;;  %v6847_v37 = vpop.f32.mrf.mxu3  ;;  %v4949_v9 = vor.u32 %v5424_v52, %v4948_v54  ;;  %1591 = vmatpush.bf16.msrb.mxu0 %v5041_v42  ;;  %v2555_v21 = vrot.slane %v6831_v34, 2  ;;  %9717 = vst [vmem:[#allocation42_spill] sm:$0xff] %v6876_v25  ;;  %v5029_v54 = vor.u32 %v5443_v18, %v5026_v22  ;;  %v5421_v42 = vld [vmem:[%s9602_s1 + $0x118] sm:$0xf0]  ;;  %v4840_v52 = vld [vmem:[%s9602_s1 + $0x50] sm:$0xf] }
 0x191   :  { %9715 = vst [vmem:[#allocation40_spill] sm:$0xff] %v6847_v37  ;;  %v9655_v6 = vmax.f32 %v6834_v57, 0.0  ;;  %v9718_v18 = vmax.f32 %v6784_v36, 0.0  ;;  %v5440_v22 = vld [vmem:[%s9602_s1 + $0x1b4] sm:$0xf] }
 0x192   :  { %v1202_v3 = vpop.f32.mrf.mxu0  ;;  %1757 = vmatpush.bf16.msrb.mxu3 %v4949_v9  ;;  %v6888_v27 = vsel %vm480_vm1, %v2549_v38, %v2555_v21  ;;  %v4924_v36 = vld [vmem:[%s9602_s1 + $0xf8] sm:$0xf] }
 0x193   :  { %v2134_v37 = vrot.slane %v9655_v6, 1  ;;  %v1203_v63 = vadd.f32 %v1202_v3, %v6621_v1  ;;  %v1285_v46 = vpop.f32.mrf.mxu1  ;;  %1674 = vmatpush.bf16.msrb.mxu1 %v4853_v60  ;;  %v4936_v3 = vld [vmem:[%s9602_s1 + $0x110] sm:$0xf]  ;;  %v4841_v60 = vor.u32 %v5397_v29, %v4840_v52  ;;  %v4828_v52 = vld [vmem:[%s9602_s1 + $0x38] sm:$0xf] }
 0x194   :  { %v4937_v49 = vor.u32 %v5421_v42, %v4936_v3  ;;  %1592 = vmatpush.bf16.msrb.mxu0 %v5029_v54  ;;  %v5418_v42 = vld [vmem:[%s9602_s1 + $0x100] sm:$0xf0]  ;;  %v5437_v6 = vld [vmem:[%s9602_s1 + $0x19c] sm:$0xf] }
 0x195   :  { %v1286_v24 = vadd.f32 %v1285_v46, %v1203_v63  ;;  %1241 = vmatmul.bf16.gmra.mxu0 %v6862_v44  ;;  %1490 = vmatmul.bf16.gmra.mxu3 %v6862_v44  ;;  %v2135_v9 = vsel %vm330_vm4, %v2128_v14, %v2134_v37  ;;  %v5014_v14 = vld [vmem:[%s9602_s1 + $0x1bc] sm:$0xf0]  ;;  %v4925_v29 = vor.u32 %v5418_v42, %v4924_v36  ;;  %v5002_v44 = vld [vmem:[%s9602_s1 + $0x1a4] sm:$0xf0] }
 0x196   :  { %1324 = vmatmul.bf16.gmra.mxu1 %v6876_v25  ;;  %v6899_v38 = vmax.f32 %v9718_v18, %v2135_v9  ;;  %1758 = vmatpush.bf16.msrb.mxu3 %v4937_v49  ;;  %v4912_v36 = vld [vmem:[%s9602_s1 + $0xe0] sm:$0xf]  ;;  %v387_v25 = vpop.permute.xlu0 %386 }
 0x197   :  { %v6904_v46 = vadd.f32 %v6623_v15, %v1286_v24  ;;  %1675 = vmatpush.bf16.msrb.mxu1 %v4841_v60  ;;  %v5017_v15 = vor.u32 %v5440_v22, %v5014_v14  ;;  %v5394_v24 = vld [vmem:[%s9602_s1 + $0x40] sm:$0xf0]  ;;  %v4816_v42 = vld [vmem:[%s9602_s1 + $0x20] sm:$0xf] }
 0x198   :  { %v6915_v54 = vpop.f32.mrf.mxu2  ;;  %v6917_v3 = vpop.f32.mrf.mxu3  ;;  %v4829_v9 = vor.u32 %v5394_v24, %v4828_v52  ;;  %v2561_v60 = vrot.slane %v6899_v38, 2 }
 0x199   :  { %9719 = vst [vmem:[#allocation43_spill] sm:$0xff] %v6917_v3  ;;  %v1944_v49 = vmax.f32 %v6904_v46, 0.0  ;;  %1593 = vmatpush.bf16.msrb.mxu0 %v5017_v15  ;;  %v5005_v46 = vor.u32 %v5437_v6, %v5002_v44  ;;  %v5415_v15 = vld [vmem:[%s9602_s1 + $0xe8] sm:$0xf0] }
 0x19a   :  { %v1204_v18 = vpop.f32.mrf.mxu0  ;;  %1759 = vmatpush.bf16.msrb.mxu3 %v4925_v29  ;;  %v6947_v52 = vsel %vm480_vm1, %v2555_v21, %v2561_v60  ;;  %v4913_v29 = vor.u32 %v5415_v15, %v4912_v36  ;;  %v5391_v6 = vld [vmem:[%s9602_s1 + $0x28] sm:$0xf0]  ;;  %v9720_v21 = vmax.f32 %v6834_v57, 0.0 }
 0x19b   :  { %v2140_v22 = vrot.slane %v1944_v49, 1  ;;  %v1205_v14 = vadd.f32 %v1204_v18, %v6621_v1  ;;  %v1287_v63 = vpop.f32.mrf.mxu1  ;;  %1676 = vmatpush.bf16.msrb.mxu1 %v4829_v9  ;;  %v327_v18 = vpop.permute.xlu2 %326  ;;  %v4817_v3 = vor.u32 %v5391_v6, %v4816_v42  ;;  %v4804_v42 = vld [vmem:[%s9602_s1 + $0x8] sm:$0xf] }
 0x19d   :  { %v1288_v24 = vadd.f32 %v1287_v63, %v1205_v14  ;;  %1523 = vmatmul.bf16.gmra.mxu2 %v6476_v50  ;;  %v2141_v44 = vsel %vm330_vm4, %v2134_v37, %v2140_v22  ;;  %1594 = vmatpush.bf16.msrb.mxu0 %v5005_v46  ;;  %v5434_v14 = vld [vmem:[%s9602_s1 + $0x184] sm:$0xf]  ;;  %v4990_v37 = vld [vmem:[%s9602_s1 + $0x18c] sm:$0xf0]  ;;  %v4900_v46 = vld [vmem:[%s9602_s1 + $0xc8] sm:$0xf] }
 0x19e   :  { %v6958_v12 = vmax.f32 %v9720_v21, %v2141_v44  ;;  %1760 = vmatpush.bf16.msrb.mxu3 %v4913_v29  ;;  %v4993_v15 = vor.u32 %v5434_v14, %v4990_v37  ;;  %v614_v29 = vsel %vm586_vm7, %v327_v18, %v387_v25 }
 0x19f   :  { %v1371_v63 = vadd.f32 %v6645_v40, %v1288_v24  ;;  %1677 = vmatpush.bf16.msrb.mxu1 %v4817_v3  ;;  %v5412_v40 = vld [vmem:[%s9602_s1 + $0xd0] sm:$0xf0]  ;;  %v6986_v3 = vsel %vm540_vm8, %v5950_v10, %v327_v18  ;;  %v6992_v8 = vsel %vm617_vm9, %v614_v29, %v6417_v28 }
 0x1a0   :  { %v6970_v36 = vpop.f32.mrf.mxu2  ;;  %v6972_v57 = vpop.f32.mrf.mxu3  ;;  %v5388_v24 = vld [vmem:[%s9602_s1 + $0x10] sm:$0xf0]  ;;  %v4901_v44 = vor.u32 %v5412_v40, %v4900_v46  ;;  %9722 = vst [vmem:[#allocation45_spill] sm:$0xff] %v6986_v3  ;;  %v2567_v14 = vrot.slane %v6958_v12, 2 }
 0x1a1   :  { %9721 = vst [vmem:[#allocation44_spill] sm:$0xff] %v6972_v57  ;;  %v1947_v6 = vmax.f32 %v1371_v63, 0.0  ;;  %v4805_v21 = vor.u32 %v5388_v24, %v4804_v42  ;;  %1595 = vmatpush.bf16.msrb.mxu0 %v4993_v15 }
 0x1a2   :  { %v1207_v9 = vpop.f32.mrf.mxu0  ;;  %1761 = vmatpush.bf16.msrb.mxu3 %v4901_v44  ;;  %9723 = vst [vmem:[#allocation46_spill] sm:$0xff] %v6992_v8  ;;  %v6995_v25 = vsel %vm480_vm1, %v2561_v60, %v2567_v14 }
 0x1a3   :  { %v2146_v37 = vrot.slane %v1947_v6, 1  ;;  %v1208_v57 = vadd.f32 %v1207_v9, %v6621_v1  ;;  %v1290_v17 = vpop.f32.mrf.mxu1  ;;  %1678 = vmatpush.bf16.msrb.mxu1 %v4805_v21 }
 0x1a5   :  { %v1291_v63 = vadd.f32 %v1290_v17, %v1208_v57  ;;  %1246 = vmatmul.bf16.gmra.mxu0 %v6986_v3  ;;  %1495 = vmatmul.bf16.gmra.mxu3 %v6986_v3  ;;  %v2147_v10 = vsel %vm330_vm4, %v2140_v22, %v2146_v37 }
 0x1a6   :  { %1329 = vmatmul.bf16.gmra.mxu1 %v6992_v8  ;;  %v7003_v18 = vmax.f32 %v1944_v49, %v2147_v10  ;;  %v5044_v49 = vld [vmem:[%s9602_s1 + $0x1e8] sm:$0xf]  ;;  %v389_v10 = vpop.permute.xlu2 %388 }
 0x1a7   :  { %v1374_v28 = vadd.f32 %v6658_v13, %v1291_v63  ;;  %v5448_v13 = vld [vmem:[%s9602_s1 + $0x1f0] sm:$0xf0] }
 0x1a8   :  { %v7006_v46 = vpop.f32.mrf.mxu2  ;;  %v7008_v60 = vpop.f32.mrf.mxu3  ;;  %v2573_v17 = vrot.slane %v7003_v18, 2  ;;  %v5045_v44 = vor.u32 %v5448_v13, %v5044_v49 }
 0x1a9   :  { %9724 = vst [vmem:[#allocation47_spill] sm:$0xff] %v7008_v60  ;;  %v1950_v57 = vmax.f32 %v1374_v28, 0.0  ;;  %v329_v28 = vpop.permute.xlu1 %328 }
 0x1aa   :  { %v1209_v15 = vpop.f32.mrf.mxu0  ;;  %v7012_v40 = vsel %vm480_vm1, %v2567_v14, %v2573_v17  ;;  %1840 = vmatpush.bf16.msra.mxu2 %v5045_v44 }
 0x1ab   :  { %v2152_v22 = vrot.slane %v1950_v57, 1  ;;  %v1210_v42 = vadd.f32 %v1209_v15, %v6621_v1  ;;  %v1292_v24 = vpop.f32.mrf.mxu1 }
 0x1ad   :  { %v1293_v21 = vadd.f32 %v1292_v24, %v1210_v42  ;;  %1528 = vmatmul.bf16.gmra.mxu2 %v6501_v23  ;;  %v2153_v14 = vsel %vm330_vm4, %v2146_v37, %v2152_v22  ;;  %v616_v42 = vsel %vm586_vm7, %v329_v28, %v389_v10  ;;  %v7036_v37 = vsel %vm540_vm8, %v5981_v56, %v329_v28 }
 0x1ae   :  { %v7025_v63 = vmax.f32 %v1947_v6, %v2153_v14  ;;  %9726 = vst [vmem:[#allocation49_spill] sm:$0xff] %v7036_v37  ;;  %v7048_v14 = vsel %vm617_vm9, %v616_v42, %v6413_v51  ;;  %vm4713_vm8 = vcmask 588800   ;;  %vm4752_vm9 = vcmask 1043456  }
 0x1af   :  { %v1376_v15 = vadd.f32 %v6679_v31, %v1293_v21  ;;  %9727 = vst [vmem:[#allocation50_spill] sm:$0xff] %v7048_v14 }
 0x1b0   :  { %v7028_v9 = vpop.f32.mrf.mxu2  ;;  %v7030_v3 = vpop.f32.mrf.mxu3  ;;  %v2579_v8 = vrot.slane %v7025_v63, 2 }
 0x1b1   :  { %9725 = vst [vmem:[#allocation48_spill] sm:$0xff] %v7030_v3  ;;  %v1953_v29 = vmax.f32 %v1376_v15, 0.0 }
 0x1b2   :  { %v1212_v24 = vpop.f32.mrf.mxu0  ;;  %v7039_v6 = vsel %vm480_vm1, %v2573_v17, %v2579_v8 }
 0x1b3   :  { %v2158_v49 = vrot.slane %v1953_v29, 1  ;;  %v1213_v31 = vadd.f32 %v1212_v24, %v6621_v1  ;;  %v1295_v13 = vpop.f32.mrf.mxu1 }
 0x1b5   :  { %v1296_v21 = vadd.f32 %v1295_v13, %v1213_v31  ;;  %1251 = vmatmul.bf16.gmra.mxu0 %v7036_v37  ;;  %1500 = vmatmul.bf16.gmra.mxu3 %v7036_v37  ;;  %v2159_v56 = vsel %vm330_vm4, %v2152_v22, %v2158_v49 }
 0x1b6   :  { %1334 = vmatmul.bf16.gmra.mxu1 %v7048_v14  ;;  %v7052_v17 = vmax.f32 %v1950_v57, %v2159_v56 }
 0x1b7   :  { %v1379_v10 = vadd.f32 %v6695_v19, %v1296_v21 }
 0x1b8   :  { %v7055_v28 = vpop.f32.mrf.mxu2  ;;  %v7057_v15 = vpop.f32.mrf.mxu3  ;;  %v2585_v24 = vrot.slane %v7052_v17, 2 }
 0x1b9   :  { %9728 = vst [vmem:[#allocation51_spill] sm:$0xff] %v7057_v15  ;;  %v1956_v31 = vmax.f32 %v1379_v10, 0.0 }
 0x1ba   :  { %v1214_v13 = vpop.f32.mrf.mxu0  ;;  %v7061_v44 = vsel %vm480_vm1, %v2579_v8, %v2585_v24 }
 0x1bb   :  { %v2164_v51 = vrot.slane %v1956_v31, 1  ;;  %v1215_v22 = vadd.f32 %v1214_v13, %v6621_v1  ;;  %v1297_v42 = vpop.f32.mrf.mxu1 }
 0x1bd   :  { %v1298_v56 = vadd.f32 %v1297_v42, %v1215_v22  ;;  %1533 = vmatmul.bf16.gmra.mxu2 %v6522_v7  ;;  %v2165_v19 = vsel %vm330_vm4, %v2158_v49, %v2164_v51 }
 0x1be   :  { %v7068_v21 = vmax.f32 %v1953_v29, %v2165_v19 }
 0x1bf   :  { %v1381_v10 = vadd.f32 %v6723_v39, %v1298_v56 }
 0x1c0   :  { %v7071_v37 = vpop.f32.mrf.mxu2  ;;  %v7073_v8 = vpop.f32.mrf.mxu3  ;;  %v2591_v14 = vrot.slane %v7068_v21, 2 }
 0x1c1   :  { %9729 = vst [vmem:[#allocation52_spill] sm:$0xff] %v7073_v8  ;;  %v1959_v13 = vmax.f32 %v1381_v10, 0.0 }
 0x1c2   :  { %v1217_v15 = vpop.f32.mrf.mxu0  ;;  %v7077_v3 = vsel %vm480_vm1, %v2585_v24, %v2591_v14 }
 0x1c3   :  { %v2170_v22 = vrot.slane %v1959_v13, 1  ;;  %v1218_v42 = vadd.f32 %v1217_v15, %v6621_v1  ;;  %v1300_v57 = vpop.f32.mrf.mxu1 }
 0x1c5   :  { %v1301_v49 = vadd.f32 %v1300_v57, %v1218_v42  ;;  %5061 = vmatmul.msk.bf16.vlgmr.msrb.gmra.mxu0 %vm1132_vm6, %v6137_v2  ;;  %1762 = vmatmul.bf16.vlgmr.msrb.gmra.mxu3 %v6430_v35  ;;  %v2171_v39 = vsel %vm330_vm4, %v2164_v51, %v2170_v22 }
 0x1c6   :  { %1679 = vmatmul.bf16.vlgmr.msrb.gmra.mxu1 %v6424_v41  ;;  %v7087_v56 = vmax.f32 %v1956_v31, %v2171_v39 }
 0x1c7   :  { %v1384_v24 = vadd.f32 %v6747_v55, %v1301_v49 }
 0x1c8   :  { %v7090_v19 = vpop.f32.mrf.mxu2  ;;  %v7092_v15 = vpop.f32.mrf.mxu3  ;;  %v2597_v10 = vrot.slane %v7087_v56, 2 }
 0x1c9   :  { %9730 = vst [vmem:[#allocation53_spill] sm:$0xff] %v7092_v15  ;;  %v1962_v57 = vmax.f32 %v1384_v24, 0.0 }
 0x1ca   :  { %v1219_v42 = vpop.f32.mrf.mxu0  ;;  %v7096_v29 = vsel %vm480_vm1, %v2591_v14, %v2597_v10 }
 0x1cb   :  { %v2176_v35 = vrot.slane %v1962_v57, 1  ;;  %v1220_v51 = vadd.f32 %v1219_v42, %v6621_v1  ;;  %v1302_v2 = vpop.f32.mrf.mxu1 }
 0x1cd   :  { %v1303_v31 = vadd.f32 %v1302_v2, %v1220_v51  ;;  %1538 = vmatmul.bf16.gmra.mxu2 %v6551_v26  ;;  %v2177_v55 = vsel %vm330_vm4, %v2170_v22, %v2176_v35 }
 0x1ce   :  { %v7103_v49 = vmax.f32 %v1959_v13, %v2177_v55  ;;  %v5032_v13 = vld [vmem:[%s9602_s1 + $0x1d0] sm:$0xf] }
 0x1cf   :  { %v1386_v39 = vadd.f32 %v6792_v47, %v1303_v31  ;;  %v5445_v47 = vld [vmem:[%s9602_s1 + $0x1d8] sm:$0xf0] }
 0x1d0   :  { %v7106_v24 = vpop.f32.mrf.mxu2  ;;  %v7108_v14 = vpop.f32.mrf.mxu3  ;;  %v2603_v15 = vrot.slane %v7103_v49, 2  ;;  %v5033_v31 = vor.u32 %v5445_v47, %v5032_v13 }
 0x1d1   :  { %9731 = vst [vmem:[#allocation54_spill] sm:$0xff] %v7106_v24  ;;  %v1965_v42 = vmax.f32 %v1386_v39, 0.0 }
 0x1d2   :  { %9732 = vst [vmem:[#allocation55_spill] sm:$0xff] %v7108_v14  ;;  %v1222_v8 = vpop.f32.mrf.mxu0  ;;  %v7112_v60 = vsel %vm480_vm1, %v2597_v10, %v2603_v15  ;;  %1841 = vmatpush.bf16.msra.mxu2 %v5033_v31 }
 0x1d3   :  { %v2182_v2 = vrot.slane %v1965_v42, 1  ;;  %v1223_v51 = vadd.f32 %v1222_v8, %v6621_v1  ;;  %v1305_v41 = vpop.f32.mrf.mxu1 }
 0x1d5   :  { %v1306_v55 = vadd.f32 %v1305_v41, %v1223_v51  ;;  %5062 = vmatmul.msk.bf16.gmra.mxu0 %vm1132_vm6, %v6228_v33  ;;  %1767 = vmatmul.bf16.gmra.mxu3 %v6451_v5  ;;  %v2183_v8 = vsel %vm330_vm4, %v2176_v35, %v2182_v2 }
 0x1d6   :  { %1684 = vmatmul.bf16.gmra.mxu1 %v6445_v32  ;;  %v2395_v10 = vmax.f32 %v1962_v57, %v2183_v8 }
 0x1d7   :  { %v1389_v39 = vadd.f32 %v6845_v58, %v1306_v55 }
 0x1d8   :  { %v7129_v14 = vpop.f32.mrf.mxu2  ;;  %v7131_v24 = vpop.f32.mrf.mxu3  ;;  %v2609_v22 = vrot.slane %v2395_v10, 2 }
 0x1d9   :  { %9733 = vst [vmem:[#allocation56_spill] sm:$0xff] %v7129_v14  ;;  %v1968_v13 = vmax.f32 %v1389_v39, 0.0 }
 0x1da   :  { %9734 = vst [vmem:[#allocation57_spill] sm:$0xff] %v7131_v24  ;;  %v1224_v41 = vpop.f32.mrf.mxu0  ;;  %v2610_v51 = vsel %vm480_vm1, %v2603_v15, %v2609_v22 }
 0x1db   :  { %v2188_v47 = vrot.slane %v1968_v13, 1  ;;  %v1225_v5 = vadd.f32 %v1224_v41, %v6621_v1  ;;  %v1307_v33 = vpop.f32.mrf.mxu1  ;;  %v2825_v35 = vmax.f32 %v7103_v49, %v2610_v51 }
 0x1dd   :  { %v2189_v32 = vsel %vm330_vm4, %v2182_v2, %v2188_v47  ;;  %v1308_v57 = vadd.f32 %v1307_v33, %v1225_v5  ;;  %1543 = vmatmul.bf16.gmra.mxu2 %v6574_v30 }
 0x1de   :  { %v2398_v58 = vmax.f32 %v1965_v42, %v2189_v32 }
 0x1df   :  { %v1391_v31 = vadd.f32 %v6915_v54, %v1308_v57 }
 0x1e0   :  { %v7139_v55 = vpop.f32.mrf.mxu2  ;;  %v7141_v8 = vpop.f32.mrf.mxu3  ;;  %v2615_v39 = vrot.slane %v2398_v58, 2 }
 0x1e1   :  { %v1971_v15 = vmax.f32 %v1391_v31, 0.0 }
 0x1e2   :  { %v1227_v24 = vpop.f32.mrf.mxu0  ;;  %v2616_v41 = vsel %vm480_vm1, %v2609_v22, %v2615_v39 }
 0x1e3   :  { %v2194_v14 = vrot.slane %v1971_v15, 1  ;;  %v1228_v49 = vadd.f32 %v1227_v24, %v6621_v1  ;;  %v1310_v51 = vpop.f32.mrf.mxu1  ;;  %v2828_v2 = vmax.f32 %v2395_v10, %v2616_v41 }
 0x1e5   :  { %v2195_v33 = vsel %vm330_vm4, %v2188_v47, %v2194_v14  ;;  %v1311_v5 = vadd.f32 %v1310_v51, %v1228_v49  ;;  %5063 = vmatmul.msk.bf16.gmra.mxu0 %vm1132_vm6, %v6343_v16  ;;  %1772 = vmatmul.bf16.gmra.mxu3 %v6476_v50 }
 0x1e6   :  { %v7149_v54 = vmax.f32 %v1968_v13, %v2195_v33  ;;  %1689 = vmatmul.bf16.gmra.mxu1 %v6470_v43 }
 0x1e7   :  { %v1394_v42 = vadd.f32 %v6970_v36, %v1311_v5 }
 0x1e8   :  { %v7153_v22 = vpop.f32.mrf.mxu2  ;;  %v7155_v32 = vpop.f32.mrf.mxu3  ;;  %v2621_v24 = vrot.slane %v7149_v54, 2 }
 0x1e9   :  { %v1974_v10 = vmax.f32 %v1394_v42, 0.0 }
 0x1ea   :  { %v1229_v47 = vpop.f32.mrf.mxu0  ;;  %v2622_v57 = vsel %vm480_vm1, %v2615_v39, %v2621_v24 }
 0x1eb   :  { %v2200_v31 = vrot.slane %v1974_v10, 1  ;;  %v1230_v41 = vadd.f32 %v1229_v47, %v6621_v1  ;;  %v1312_v50 = vpop.f32.mrf.mxu1  ;;  %v2831_v13 = vmax.f32 %v2398_v58, %v2622_v57 }
 0x1ed   :  { %v1313_v49 = vadd.f32 %v1312_v50, %v1230_v41  ;;  %1548 = vmatmul.bf16.gmra.mxu2 %v6603_v4  ;;  %2919 = vmatpush.msra.mxu0 %v2831_v13  ;;  %v2201_v43 = vsel %vm330_vm4, %v2194_v14, %v2200_v31 }
 0x1ee   :  { %v7162_v36 = vmax.f32 %v1971_v15, %v2201_v43  ;;  %v5020_v43 = vld [vmem:[%s9602_s1 + $0x1b8] sm:$0xf] }
 0x1ef   :  { %v1396_v51 = vadd.f32 %v7006_v46, %v1313_v49  ;;  %2920 = vmatpush.msra.mxu0 %v2828_v2  ;;  %v9735_v46 = vmax.f32 %v7087_v56, %v7112_v60  ;;  %v9737_v56 = vmax.f32 %v7052_v17, %v7077_v3 }
 0x1f0   :  { %v7165_v33 = vpop.f32.mrf.mxu2  ;;  %v7167_v5 = vpop.f32.mrf.mxu3  ;;  %v2627_v39 = vrot.slane %v7162_v36, 2 }
 0x1f1   :  { %v1977_v42 = vmax.f32 %v1396_v51, 0.0  ;;  %2921 = vmatpush.msra.mxu0 %v2825_v35 }
 0x1f2   :  { %v1232_v58 = vpop.f32.mrf.mxu0  ;;  %v7171_v47 = vsel %vm480_vm1, %v2621_v24, %v2627_v39  ;;  %v9736_v24 = vmax.f32 %v7068_v21, %v7096_v29 }
 0x1f3   :  { %v2206_v57 = vrot.slane %v1977_v42, 1  ;;  %v1233_v14 = vadd.f32 %v1232_v58, %v6621_v1  ;;  %v1315_v15 = vpop.f32.mrf.mxu1  ;;  %2922 = vmatpush.msra.mxu0 %v9735_v46 }
 0x1f5   :  { %v1316_v41 = vadd.f32 %v1315_v15, %v1233_v14  ;;  %5064 = vmatmul.msk.bf16.gmra.mxu0 %vm1132_vm6, %v6388_v62  ;;  %1777 = vmatmul.bf16.gmra.mxu3 %v6501_v23  ;;  %v2207_v35 = vsel %vm330_vm4, %v2200_v31, %v2206_v57  ;;  %v7197_v31 = vperm.slane %v6616_v11, 1  ;;  %v5442_v11 = vld [vmem:[%s9602_s1 + $0x1c0] sm:$0xf0]  ;;  %v9740_v15 = vmax.f32 %v6958_v12, %v7012_v40 }
 0x1f6   :  { %2923 = vmatpush.msra.mxu0 %v9736_v24  ;;  %1694 = vmatmul.bf16.gmra.mxu1 %v6495_v48  ;;  %v7187_v50 = vmax.f32 %v1974_v10, %v2207_v35  ;;  %v9738_v48 = vmax.f32 %v7025_v63, %v7061_v44  ;;  %v9739_v44 = vmax.f32 %v7003_v18, %v7039_v6 }
 0x1f7   :  { %v1399_v60 = vadd.f32 %v7028_v9, %v1316_v41  ;;  %v5021_v51 = vor.u32 %v5442_v11, %v5020_v43  ;;  %v9741_v18 = vmax.f32 %v6899_v38, %v6995_v25  ;;  %v9742_v12 = vmax.f32 %v6831_v34, %v6947_v52 }
 0x1f8   :  { %2924 = vmatpush.msra.mxu0 %v9737_v56  ;;  %v1420_v13 = vpop.f32.mrf.mxu2  ;;  %v7193_v49 = vpop.f32.mrf.mxu3  ;;  %v2633_v23 = vrot.slane %v7187_v50, 2  ;;  %v9743_v56 = vmax.f32 %v6781_v59, %v6888_v27  ;;  %v9744_v52 = vmax.f32 %v6742_v53, %v6809_v0 }
 0x1f9   :  { %v1980_v21 = vmax.f32 %v1399_v60, 0.0  ;;  %1842 = vmatpush.bf16.msra.mxu2 %v5021_v51 }
 0x1fa   :  { %2925 = vmatpush.msra.mxu0 %v9738_v48  ;;  %v1234_v29 = vpop.f32.mrf.mxu0  ;;  %v7203_v9 = vsel %vm480_vm1, %v2627_v39, %v2633_v23  ;;  %v1432_v39 = vadd.f32 %v6647_v45, %v7197_v31 }
 0x1fb   :  { %v2212_v10 = vrot.slane %v1980_v21, 1  ;;  %v1235_v3 = vadd.f32 %v1234_v29, %v6621_v1  ;;  %v1317_v17 = vpop.f32.mrf.mxu1  ;;  %v9746_v29 = vld [vmem:[#allocation21_spill] sm:$0xff] }
 0x1fc   :  { %2926 = vmatpush.msra.mxu0 %v9739_v44  ;;  %v1434_v59 = vadd.f32 %v9746_v29, %v7197_v31  ;;  %v9750_v44 = vld [vmem:[#allocation27_spill] sm:$0xff] }
 0x1fd   :  { %v1318_v58 = vadd.f32 %v1317_v17, %v1235_v3  ;;  %1553 = vmatmul.bf16.gmra.mxu2 %v6635_v61  ;;  %v2213_v14 = vsel %vm330_vm4, %v2206_v57, %v2212_v10  ;;  %v9747_v3 = vld [vmem:[#allocation32_spill] sm:$0xff]  ;;  %v9748_v17 = vld [vmem:[#allocation37_spill] sm:$0xff] }
 0x1fe   :  { %2927 = vmatpush.msra.mxu0 %v9740_v15  ;;  %v7224_v46 = vmax.f32 %v1977_v42, %v2213_v14  ;;  %v9749_v43 = vmax.f32 %v9747_v3, %v9748_v17 }
 0x1ff   :  { %v1401_v41 = vadd.f32 %v7055_v28, %v1318_v58 }
 0x200   :  { %2928 = vmatpush.msra.mxu0 %v9741_v18  ;;  %v7230_v6 = vpop.f32.mrf.mxu3  ;;  %v1514_v45 = vpop.f32.mrf.mxu2  ;;  %v2639_v35 = vrot.slane %v7224_v46, 2  ;;  %v9753_v18 = vld [vmem:[#allocation24_spill] sm:$0xff] }
 0x201   :  { %v1983_v24 = vmax.f32 %v1401_v41, 0.0  ;;  %v7233_v57 = vadd.f32 %v1514_v45, %v1432_v39  ;;  %v9754_v45 = vld [vmem:[#allocation30_spill] sm:$0xff] }
 0x202   :  { %2929 = vmatpush.msra.mxu0 %v9742_v12  ;;  %v1237_v40 = vpop.f32.mrf.mxu0  ;;  %v7239_v42 = vsel %vm480_vm1, %v2633_v23, %v2639_v35  ;;  %v9745_v23 = vld [vmem:[#allocation11_spill] sm:$0xff]  ;;  %v9755_v12 = vmax.f32 %v9753_v18, %v9754_v45 }
 0x203   :  { %v2218_v28 = vrot.slane %v1983_v24, 1  ;;  %v1238_v38 = vadd.f32 %v1237_v40, %v6621_v1  ;;  %v1320_v25 = vpop.f32.mrf.mxu1  ;;  %v9756_v40 = vld [vmem:[#allocation25_spill] sm:$0xff] }
 0x204   :  { %2930 = vmatpush.msra.mxu0 %v9743_v56  ;;  %v9757_v56 = vld [vmem:[#allocation23_spill] sm:$0xff] }
 0x205   :  { %v1321_v13 = vadd.f32 %v1320_v25, %v1238_v38  ;;  %5065 = vmatmul.msk.bf16.gmra.mxu0 %vm1132_vm6, %v6411_v20  ;;  %1782 = vmatmul.bf16.gmra.mxu3 %v6522_v7  ;;  %v2219_v34 = vsel %vm330_vm4, %v2212_v10, %v2218_v28  ;;  %v1437_v38 = vadd.f32 %v9756_v40, %v7197_v31 }
 0x206   :  { %2931 = vmatpush.msra.mxu0 %v9744_v52  ;;  %1699 = vmatmul.bf16.gmra.mxu1 %v9745_v23  ;;  %v7255_v48 = vmax.f32 %v1980_v21, %v2219_v34  ;;  %v9751_v21 = vld [vmem:[#allocation34_spill] sm:$0xff] }
 0x207   :  { %v1404_v27 = vadd.f32 %v7071_v37, %v1321_v13  ;;  %v9752_v51 = vmax.f32 %v9750_v44, %v9751_v21  ;;  %v9758_v44 = vld [vmem:[#allocation7_spill] sm:$0xff] }
 0x208   :  { %2932 = vmatpush.msra.mxu0 %v9749_v43  ;;  %v7263_v7 = vpop.f32.mrf.mxu3  ;;  %v1516_v10 = vpop.f32.mrf.mxu2  ;;  %v2645_v11 = vrot.slane %v7255_v48, 2 }
 0x209   :  { %v1986_v53 = vmax.f32 %v1404_v27, 0.0  ;;  %v7266_v0 = vadd.f32 %v1516_v10, %v1434_v59 }
 0x20a   :  { %2933 = vmatpush.msra.mxu0 %v9752_v51  ;;  %v1239_v39 = vpop.f32.mrf.mxu0  ;;  %v7272_v58 = vsel %vm480_vm1, %v2639_v35, %v2645_v11  ;;  %v9759_v51 = vld [vmem:[#allocation13_spill] sm:$0xff] }
 0x20b   :  { %v2224_v37 = vrot.slane %v1986_v53, 1  ;;  %v1240_v14 = vadd.f32 %v1239_v39, %v6621_v1  ;;  %v1322_v15 = vpop.f32.mrf.mxu1 }
 0x20c   :  { %2934 = vmatpush.msra.mxu0 %v9755_v12 }
 0x20d   :  { %v1323_v25 = vadd.f32 %v1322_v15, %v1240_v14  ;;  %1558 = vmatmul.bf16.gmra.mxu2 %v9757_v56  ;;  %v2225_v35 = vsel %vm330_vm4, %v2218_v28, %v2224_v37  ;;  %v9761_v15 = vld [vmem:[#allocation54_spill] sm:$0xff] }
 0x20e   :  { %v7284_v13 = vmax.f32 %v1983_v24, %v2225_v35 }
 0x20f   :  { %v1406_v34 = vadd.f32 %v7090_v19, %v1323_v25 }
 0x210   :  { %v7287_v52 = vpop.f32.mrf.mxu3  ;;  %v1519_v23 = vpop.f32.mrf.mxu2  ;;  %v2651_v29 = vrot.slane %v7284_v13, 2 }
 0x211   :  { %v1989_v59 = vmax.f32 %v1406_v34, 0.0  ;;  %v7290_v27 = vadd.f32 %v1519_v23, %v1437_v38  ;;  %v9771_v23 = vld [vmem:[#allocation38_spill] sm:$0xff] }
 0x212   :  { %v1242_v3 = vpop.f32.mrf.mxu0  ;;  %v7293_v17 = vsel %vm480_vm1, %v2645_v11, %v2651_v29  ;;  %v9760_v11 = vld [vmem:[#allocation28_spill] sm:$0xff] }
 0x213   :  { %v2230_v43 = vrot.slane %v1989_v59, 1  ;;  %v1243_v10 = vadd.f32 %v1242_v3, %v6621_v1  ;;  %v1325_v28 = vpop.f32.mrf.mxu1  ;;  %v1439_v14 = vadd.f32 %v9760_v11, %v7197_v31  ;;  %v9762_v3 = vld [vmem:[#allocation33_spill] sm:$0xff]  ;;  %v9764_v11 = vld [vmem:[#allocation56_spill] sm:$0xff] }
 0x215   :  { %v1326_v19 = vadd.f32 %v1325_v28, %v1243_v10  ;;  %5066 = vmatmul.msk.bf16.gmra.mxu0 %vm1132_vm6, %v9758_v44  ;;  %1787 = vmatmul.bf16.gmra.mxu3 %v6551_v26  ;;  %v2231_v21 = vsel %vm330_vm4, %v2224_v37, %v2230_v43  ;;  %v1442_v10 = vadd.f32 %v9762_v3, %v7197_v31 }
 0x216   :  { %1704 = vmatmul.bf16.gmra.mxu1 %v9759_v51  ;;  %v7303_v39 = vmax.f32 %v1986_v53, %v2231_v21 }
 0x217   :  { %v1409_v18 = vadd.f32 %v9761_v15, %v1326_v19  ;;  %v9763_v19 = vld [vmem:[#allocation31_spill] sm:$0xff] }
 0x218   :  { %v7308_v45 = vpop.f32.mrf.mxu3  ;;  %v1521_v12 = vpop.f32.mrf.mxu2  ;;  %v2657_v40 = vrot.slane %v7303_v39, 2 }
 0x219   :  { %v1992_v38 = vmax.f32 %v1409_v18, 0.0  ;;  %v7311_v25 = vadd.f32 %v1521_v12, %v1439_v14 }
 0x21a   :  { %v1244_v26 = vpop.f32.mrf.mxu0  ;;  %v7314_v37 = vsel %vm480_vm1, %v2651_v29, %v2657_v40 }
 0x21b   :  { %v2236_v35 = vrot.slane %v1992_v38, 1  ;;  %v1245_v53 = vadd.f32 %v1244_v26, %v6621_v1  ;;  %v1327_v34 = vpop.f32.mrf.mxu1 }
 0x21d   :  { %v1328_v28 = vadd.f32 %v1327_v34, %v1245_v53  ;;  %1563 = vmatmul.bf16.gmra.mxu2 %v9763_v19  ;;  %v2237_v21 = vsel %vm330_vm4, %v2230_v43, %v2236_v35  ;;  %v5008_v53 = vld [vmem:[%s9602_s1 + $0x1a0] sm:$0xf]  ;;  %v5439_v43 = vld [vmem:[%s9602_s1 + $0x1a8] sm:$0xf0] }
 0x21e   :  { %v7323_v51 = vmax.f32 %v1989_v59, %v2237_v21  ;;  %v5009_v34 = vor.u32 %v5439_v43, %v5008_v53  ;;  %v9767_v53 = vld [vmem:[#allocation15_spill] sm:$0xff] }
 0x21f   :  { %v1411_v29 = vadd.f32 %v9764_v11, %v1328_v28  ;;  %v9768_v43 = vld [vmem:[#allocation35_spill] sm:$0xff] }
 0x220   :  { %v7326_v14 = vpop.f32.mrf.mxu3  ;;  %v1524_v15 = vpop.f32.mrf.mxu2  ;;  %v2663_v18 = vrot.slane %v7323_v51, 2  ;;  %1843 = vmatpush.bf16.msra.mxu2 %v5009_v34 }
 0x221   :  { %9765 = vst [vmem:[#allocation11_spill] sm:$0xff] %v7326_v14  ;;  %v1995_v12 = vmax.f32 %v1411_v29, 0.0  ;;  %v7329_v26 = vadd.f32 %v1524_v15, %v1442_v10  ;;  %v9766_v15 = vld [vmem:[#allocation8_spill] sm:$0xff]  ;;  %v9778_v14 = vld [vmem:[#allocation42_spill] sm:$0xff] }
 0x222   :  { %v1247_v59 = vpop.f32.mrf.mxu0  ;;  %v7338_v3 = vsel %vm480_vm1, %v2657_v40, %v2663_v18 }
 0x223   :  { %v2242_v28 = vrot.slane %v1995_v12, 1  ;;  %v1248_v21 = vadd.f32 %v1247_v59, %v6621_v1  ;;  %v1330_v11 = vpop.f32.mrf.mxu1  ;;  %v1444_v59 = vadd.f32 %v9768_v43, %v7197_v31 }
 0x225   :  { %v1331_v29 = vadd.f32 %v1330_v11, %v1248_v21  ;;  %5067 = vmatmul.msk.bf16.gmra.mxu0 %vm1132_vm6, %v9766_v15  ;;  %1792 = vmatmul.bf16.gmra.mxu3 %v6574_v30  ;;  %v2243_v2 = vsel %vm330_vm4, %v2236_v35, %v2242_v28 }
 0x226   :  { %1709 = vmatmul.bf16.gmra.mxu1 %v9767_v53  ;;  %v7348_v40 = vmax.f32 %v1992_v38, %v2243_v2 }
 0x227   :  { %v1414_v63 = vadd.f32 %v7139_v55, %v1331_v29  ;;  %v9770_v55 = vld [vmem:[#allocation39_spill] sm:$0xff] }
 0x228   :  { %v7353_v60 = vpop.f32.mrf.mxu3  ;;  %v1526_v34 = vpop.f32.mrf.mxu2  ;;  %v2669_v21 = vrot.slane %v7348_v40, 2  ;;  %v1447_v29 = vadd.f32 %v9770_v55, %v7197_v31 }
 0x229   :  { %9769 = vst [vmem:[#allocation21_spill] sm:$0xff] %v7353_v60  ;;  %v1998_v11 = vmax.f32 %v1414_v63, 0.0  ;;  %v7356_v41 = vadd.f32 %v1526_v34, %v1444_v59 }
 0x22a   :  { %v1249_v30 = vpop.f32.mrf.mxu0  ;;  %v7359_v35 = vsel %vm480_vm1, %v2663_v18, %v2669_v21 }
 0x22b   :  { %v2248_v53 = vrot.slane %v1998_v11, 1  ;;  %v1250_v2 = vadd.f32 %v1249_v30, %v6621_v1  ;;  %v1332_v38 = vpop.f32.mrf.mxu1 }
 0x22d   :  { %v1333_v24 = vadd.f32 %v1332_v38, %v1250_v2  ;;  %1568 = vmatmul.bf16.gmra.mxu2 %v9771_v23  ;;  %v2249_v63 = vsel %vm330_vm4, %v2242_v28, %v2248_v53 }
 0x22e   :  { %v7368_v59 = vmax.f32 %v1995_v12, %v2249_v63 }
 0x22f   :  { %v1416_v18 = vadd.f32 %v7153_v22, %v1333_v24  ;;  %v9773_v24 = vld [vmem:[#allocation9_spill] sm:$0xff] }
 0x230   :  { %v7371_v34 = vpop.f32.mrf.mxu3  ;;  %v1529_v10 = vpop.f32.mrf.mxu2  ;;  %v2675_v30 = vrot.slane %v7368_v59, 2 }
 0x231   :  { %9772 = vst [vmem:[#allocation32_spill] sm:$0xff] %v7371_v34  ;;  %v2001_v15 = vmax.f32 %v1416_v18, 0.0  ;;  %v7374_v60 = vadd.f32 %v1529_v10, %v1447_v29  ;;  %v9774_v29 = vld [vmem:[#allocation17_spill] sm:$0xff] }
 0x232   :  { %v1252_v43 = vpop.f32.mrf.mxu0  ;;  %v7377_v55 = vsel %vm480_vm1, %v2669_v21, %v2675_v30  ;;  %v9775_v21 = vld [vmem:[#allocation40_spill] sm:$0xff] }
 0x233   :  { %v2254_v2 = vrot.slane %v2001_v15, 1  ;;  %v1253_v38 = vadd.f32 %v1252_v43, %v6621_v1  ;;  %v1335_v28 = vpop.f32.mrf.mxu1  ;;  %v2858_v12 = vmax.f32 %v7348_v40, %v7377_v55  ;;  %v1449_v18 = vadd.f32 %v9775_v21, %v7197_v31 }
 0x235   :  { %v1336_v22 = vadd.f32 %v1335_v28, %v1253_v38  ;;  %5068 = vmatmul.msk.bf16.gmra.mxu0 %vm1132_vm6, %v9773_v24  ;;  %1797 = vmatmul.bf16.gmra.mxu3 %v6603_v4  ;;  %v2255_v10 = vsel %vm330_vm4, %v2248_v53, %v2254_v2 }
 0x236   :  { %1714 = vmatmul.bf16.gmra.mxu1 %v9774_v29  ;;  %v2431_v63 = vmax.f32 %v1998_v11, %v2255_v10  ;;  %v9777_v11 = vld [vmem:[#allocation43_spill] sm:$0xff] }
 0x237   :  { %v1419_v1 = vadd.f32 %v7165_v33, %v1336_v22  ;;  %v1452_v10 = vadd.f32 %v9777_v11, %v7197_v31 }
 0x238   :  { %v7390_v43 = vpop.f32.mrf.mxu3  ;;  %v1531_v34 = vpop.f32.mrf.mxu2  ;;  %v2681_v40 = vrot.slane %v2431_v63, 2 }
 0x239   :  { %9776 = vst [vmem:[#allocation37_spill] sm:$0xff] %v7390_v43  ;;  %v2004_v55 = vmax.f32 %v1419_v1, 0.0  ;;  %v7392_v38 = vadd.f32 %v1531_v34, %v1449_v18 }
 0x23a   :  { %v1254_v28 = vpop.f32.mrf.mxu0  ;;  %v2682_v4 = vsel %vm480_vm1, %v2675_v30, %v2681_v40 }
 0x23b   :  { %v2260_v24 = vrot.slane %v2004_v55, 1  ;;  %v1337_v53 = vpop.f32.mrf.mxu1  ;;  %v2861_v29 = vmax.f32 %v7368_v59, %v2682_v4 }
 0x23d   :  { %v2437_v21 = vmax.f32 %v2004_v55, %v2260_v24  ;;  %1573 = vmatmul.bf16.gmra.mxu2 %v9778_v14  ;;  %v2261_v33 = vsel %vm330_vm4, %v2254_v2, %v2260_v24  ;;  %v5597_v2 = vld [vmem:[%s9603_s2] sm:$0x7] }
 0x23e   :  { %v2434_v22 = vmax.f32 %v2001_v15, %v2261_v33  ;;  %v7408_v15 = vperm.slane %v5597_v2, 2  ;;  %v9782_v33 = vld [vmem:[#allocation19_spill] sm:$0xff] }
 0x23f   :  { %v2693_v43 = vrot.slane %v2437_v21, 2 }
 0x240   :  { %v1503_v1 = vpop.f32.mrf.mxu3  ;;  %v1534_v34 = vpop.f32.mrf.mxu2  ;;  %v2687_v18 = vrot.slane %v2434_v22, 2  ;;  %9779 = vst [vmem:[#allocation27_spill] sm:$0xff] %v7408_v15 }
 0x241   :  { %v2870_v28 = vmax.f32 %v2437_v21, %v2693_v43  ;;  %v7400_v30 = vadd.f32 %v1534_v34, %v1452_v10  ;;  %v9780_v10 = vld [vmem:[#allocation10_spill] sm:$0xff] }
 0x242   :  { %v1597_v53 = vpop.f32.mrf.mxu0  ;;  %v2694_v59 = vsel %vm480_vm1, %v2687_v18, %v2693_v43  ;;  %v2688_v4 = vsel %vm480_vm1, %v2681_v40, %v2687_v18  ;;  %v9781_v43 = vld [vmem:[#allocation44_spill] sm:$0xff]  ;;  %v4996_v1 = vld [vmem:[%s9602_s1 + $0x188] sm:$0xf] }
 0x243   :  { %v1598_v55 = vadd.f32 %v1597_v53, %v7233_v57  ;;  %v1680_v24 = vpop.f32.mrf.mxu1  ;;  %5091 = vmatpush.msk.msra.mxu1 %vm2909_vm10, %v2870_v28  ;;  %v2867_v11 = vmax.f32 %v2434_v22, %v2694_v59  ;;  %v2864_v21 = vmax.f32 %v2431_v63, %v2688_v4  ;;  %v1454_v57 = vadd.f32 %v9781_v43, %v7197_v31  ;;  %v5436_v63 = vld [vmem:[%s9602_s1 + $0x190] sm:$0xf0]  ;;  %s4785_s1 = sshll.u32 %s9615_s14, 4  ;;  %s4786_s1 = int_to_ptr.hbm [resolvable:$true] %s4785_s1 }
 0x244   :  { %v1681_v40 = vadd.f32 %v1680_v24, %v7408_v15  ;;  %v9783_v24 = vld [vmem:[#allocation47_spill] sm:$0xff] }
 0x245   :  { %5069 = vmatmul.msk.bf16.gmra.mxu0 %vm1132_vm6, %v9780_v10  ;;  %1802 = vmatmul.bf16.gmra.mxu3 %v6635_v61  ;;  %v4997_v61 = vor.u32 %v5436_v63, %v4996_v1  ;;  %v1921_v59 = vmax.f32 %v1598_v55, 0.0  ;;  %v9786_v55 = vmax.f32 %v7303_v39, %v7338_v3  ;;  %v9788_v39 = vmax.f32 %v7255_v48, %v7293_v17 }
 0x246   :  { %2961 = vmatpush.msra.mxu1 %v2867_v11  ;;  %v1457_v11 = vadd.f32 %v9783_v24, %v7197_v31  ;;  %v9792_v24 = vld [vmem:[#allocation22_spill] sm:$0xff]  ;;  %v9793_v48 = vmax.f32 %v7187_v50, %v7239_v42  ;;  %v9795_v50 = vmax.f32 %v7149_v54, %v7171_v47 }
 0x247   :  { %1719 = vmatmul.bf16.gmra.mxu1 %v9782_v33  ;;  %1844 = vmatpush.bf16.msra.mxu2 %v4997_v61 }
 0x248   :  { %2962 = vmatpush.msra.mxu1 %v2864_v21  ;;  %v1536_v22 = vpop.f32.mrf.mxu2  ;;  %v1763_v34 = vpop.f32.mrf.mxu3  ;;  %v9784_v21 = vld [vmem:[#allocation46_spill] sm:$0xff] }
 0x249   :  { %v7424_v18 = vadd.f32 %v1536_v22, %v1454_v57  ;;  %v7426_v28 = vadd.f32 %v1763_v34, %v1681_v40  ;;  %v9785_v57 = vmax.f32 %v7323_v51, %v7359_v35  ;;  %v2098_v40 = vrot.slane %v1921_v59, 1 }
 0x24a   :  { %2963 = vmatpush.msra.mxu1 %v2861_v29  ;;  %v1599_v53 = vpop.f32.mrf.mxu0  ;;  %v9787_v51 = vmax.f32 %v7284_v13, %v7314_v37  ;;  %v9790_v13 = vmax.f32 %v7224_v46, %v7272_v58  ;;  %v9791_v37 = vld [vmem:[#allocation48_spill] sm:$0xff]  ;;  %v9794_v58 = vmax.f32 %v7162_v36, %v7203_v9  ;;  %v9797_v36 = vld [vmem:[#allocation50_spill] sm:$0xff] }
 0x24b   :  { %v1600_v4 = vadd.f32 %v1599_v53, %v7266_v0  ;;  %v1682_v2 = vpop.f32.mrf.mxu1 }
 0x24c   :  { %2964 = vmatpush.msra.mxu1 %v2858_v12  ;;  %v1683_v29 = vadd.f32 %v1682_v2, %v7408_v15 }
 0x24d   :  { %v1924_v43 = vmax.f32 %v1600_v4, 0.0  ;;  %1578 = vmatmul.bf16.gmra.mxu2 %v9784_v21  ;;  %v9789_v4 = vld [vmem:[#allocation12_spill] sm:$0xff] }
 0x24e   :  { %2965 = vmatpush.msra.mxu1 %v9785_v57 }
 0x24f   :  { %v2099_v33 = vrot.slane %v1924_v43, 1 }
 0x250   :  { %2966 = vmatpush.msra.mxu1 %v9786_v55  ;;  %v1539_v0 = vpop.f32.mrf.mxu2  ;;  %v1765_v12 = vpop.f32.mrf.mxu3 }
 0x251   :  { %v7439_v1 = vadd.f32 %v1539_v0, %v1457_v11  ;;  %v7441_v63 = vadd.f32 %v1765_v12, %v1683_v29  ;;  %v2100_v22 = vsel %vm330_vm4, %v2098_v40, %v2099_v33 }
 0x252   :  { %2967 = vmatpush.msra.mxu1 %v9787_v51  ;;  %v1602_v35 = vpop.f32.mrf.mxu0  ;;  %v7447_v34 = vmax.f32 %v1921_v59, %v2100_v22  ;;  %v1459_v59 = vadd.f32 %v9791_v37, %v7197_v31 }
 0x253   :  { %v1603_v61 = vadd.f32 %v1602_v35, %v7290_v27  ;;  %v1685_v53 = vpop.f32.mrf.mxu1 }
 0x254   :  { %2968 = vmatpush.msra.mxu1 %v9788_v39  ;;  %v1686_v27 = vadd.f32 %v1685_v53, %v7408_v15  ;;  %v2531_v12 = vrot.slane %v7447_v34, 2 }
 0x255   :  { %v1927_v3 = vmax.f32 %v1603_v61, 0.0  ;;  %5070 = vmatmul.msk.bf16.gmra.mxu0 %vm1132_vm6, %v9789_v4  ;;  %1807 = vmatmul.bf16.gmra.mxu3 %v9757_v56 }
 0x256   :  { %2969 = vmatpush.msra.mxu1 %v9790_v13 }
 0x257   :  { %v2106_v2 = vrot.slane %v1927_v3, 1  ;;  %1724 = vmatmul.bf16.gmra.mxu1 %v9792_v24 }
 0x258   :  { %2970 = vmatpush.msra.mxu1 %v9793_v48  ;;  %v1541_v17 = vpop.f32.mrf.mxu2  ;;  %v1768_v11 = vpop.f32.mrf.mxu3 }
 0x259   :  { %v7466_v57 = vadd.f32 %v1541_v17, %v1459_v59  ;;  %v7468_v56 = vadd.f32 %v1768_v11, %v1686_v27  ;;  %v2107_v46 = vsel %vm330_vm4, %v2099_v33, %v2106_v2  ;;  %v9796_v33 = vld [vmem:[#allocation51_spill] sm:$0xff]  ;;  %v9798_v17 = vld [vmem:[#allocation14_spill] sm:$0xff] }
 0x25a   :  { %2971 = vmatpush.msra.mxu1 %v9794_v58  ;;  %v1604_v40 = vpop.f32.mrf.mxu0  ;;  %v7474_v29 = vmax.f32 %v1924_v43, %v2107_v46  ;;  %v1462_v22 = vadd.f32 %v9796_v33, %v7197_v31  ;;  %v9799_v46 = vld [vmem:[#allocation52_spill] sm:$0xff] }
 0x25b   :  { %v1605_v55 = vadd.f32 %v1604_v40, %v7311_v25  ;;  %v1687_v0 = vpop.f32.mrf.mxu1  ;;  %v9800_v40 = vld [vmem:[#allocation29_spill] sm:$0xff] }
 0x25c   :  { %2972 = vmatpush.msra.mxu1 %v9795_v50  ;;  %v2532_v42 = vrot.slane %v7474_v29, 2  ;;  %v1688_v25 = vadd.f32 %v1687_v0, %v7408_v15 }
 0x25d   :  { %v1930_v51 = vmax.f32 %v1605_v55, 0.0  ;;  %1583 = vmatmul.bf16.gmra.mxu2 %v9797_v36 }
 0x25e   :  { %v7486_v9 = vsel %vm480_vm1, %v2531_v12, %v2532_v42 }
 0x25f   :  { %v2112_v43 = vrot.slane %v1930_v51, 1 }
 0x260   :  { %v1544_v47 = vpop.f32.mrf.mxu2  ;;  %v1770_v35 = vpop.f32.mrf.mxu3 }
 0x261   :  { %v7491_v61 = vadd.f32 %v1544_v47, %v1462_v22  ;;  %v7493_v53 = vadd.f32 %v1770_v35, %v1688_v25  ;;  %v2113_v39 = vsel %vm330_vm4, %v2106_v2, %v2112_v43  ;;  %v1464_v2 = vadd.f32 %v9799_v46, %v7197_v31  ;;  %v9802_v35 = vld [vmem:[#allocation53_spill] sm:$0xff] }
 0x262   :  { %v1607_v13 = vpop.f32.mrf.mxu0  ;;  %v7496_v37 = vmax.f32 %v1927_v3, %v2113_v39  ;;  %v1467_v39 = vadd.f32 %v9802_v35, %v7197_v31  ;;  %v9806_v35 = vld [vmem:[#allocation16_spill] sm:$0xff] }
 0x263   :  { %v1608_v59 = vadd.f32 %v1607_v13, %v7329_v26  ;;  %v1690_v27 = vpop.f32.mrf.mxu1 }
 0x264   :  { %v2539_v24 = vrot.slane %v7496_v37, 2  ;;  %v1691_v3 = vadd.f32 %v1690_v27, %v7408_v15 }
 0x265   :  { %v1933_v48 = vmax.f32 %v1608_v59, 0.0  ;;  %5071 = vmatmul.msk.bf16.gmra.mxu0 %vm1132_vm6, %v9798_v17  ;;  %1812 = vmatmul.bf16.gmra.mxu3 %v9763_v19  ;;  %v9803_v59 = vld [vmem:[#allocation5_spill] sm:$0xff] }
 0x266   :  { %v7504_v11 = vsel %vm480_vm1, %v2532_v42, %v2539_v24 }
 0x267   :  { %v2118_v58 = vrot.slane %v1933_v48, 1  ;;  %1729 = vmatmul.bf16.gmra.mxu1 %v9800_v40 }
 0x268   :  { %v1546_v55 = vpop.f32.mrf.mxu2  ;;  %v1773_v0 = vpop.f32.mrf.mxu3 }
 0x269   :  { %v7512_v50 = vadd.f32 %v1546_v55, %v1464_v2  ;;  %v7514_v12 = vadd.f32 %v1773_v0, %v1691_v3  ;;  %v2119_v19 = vsel %vm330_vm4, %v2112_v43, %v2118_v58 }
 0x26a   :  { %v1609_v42 = vpop.f32.mrf.mxu0  ;;  %v7517_v33 = vmax.f32 %v1930_v51, %v2119_v19 }
 0x26b   :  { %9801 = vst [vmem:[#allocation34_spill] sm:$0xff] %v7514_v12  ;;  %v1610_v22 = vadd.f32 %v1609_v42, %v7356_v41  ;;  %v1692_v25 = vpop.f32.mrf.mxu1  ;;  %v9841_v12 = vld [vmem:[#allocation8_spill] sm:$0xff] }
 0x26c   :  { %v2545_v47 = vrot.slane %v7517_v33, 2  ;;  %v1693_v43 = vadd.f32 %v1692_v25, %v7408_v15  ;;  %v9837_v15 = vld [vmem:[#allocation11_spill] sm:$0xff] }
 0x26d   :  { %v1936_v13 = vmax.f32 %v1610_v22, 0.0  ;;  %5076 = vmatmul.msk.bf16.vlgmr.msra.gmra.mxu2 %vm1132_vm6, %v9803_v59 }
 0x26e   :  { %v7526_v27 = vsel %vm480_vm1, %v2539_v24, %v2545_v47 }
 0x26f   :  { %v2124_v46 = vrot.slane %v1936_v13, 1 }
 0x270   :  { %v1549_v41 = vpop.f32.mrf.mxu2  ;;  %v1775_v2 = vpop.f32.mrf.mxu3 }
 0x271   :  { %v7531_v3 = vadd.f32 %v1549_v41, %v1467_v39  ;;  %v7533_v40 = vadd.f32 %v1775_v2, %v1693_v43  ;;  %v2125_v55 = vsel %vm330_vm4, %v2118_v58, %v2124_v46  ;;  %v9807_v58 = vld [vmem:[#allocation55_spill] sm:$0xff]  ;;  %v9808_v43 = vld [vmem:[#allocation36_spill] sm:$0xff] }
 0x272   :  { %v1612_v0 = vpop.f32.mrf.mxu0  ;;  %v7536_v19 = vmax.f32 %v1933_v48, %v2125_v55  ;;  %v1469_v59 = vadd.f32 %v9807_v58, %v7197_v31 }
 0x273   :  { %9804 = vst [vmem:[#allocation24_spill] sm:$0xff] %v7533_v40  ;;  %v1613_v24 = vadd.f32 %v1612_v0, %v7374_v60  ;;  %v7539_v42 = vpop.f32.mrf.mxu1  ;;  %v9812_v60 = vld [vmem:[#allocation6_spill] sm:$0xff] }
 0x274   :  { %9805 = vst [vmem:[#allocation30_spill] sm:$0xff] %v7539_v42  ;;  %v2551_v22 = vrot.slane %v7536_v19, 2 }
 0x275   :  { %v1939_v25 = vmax.f32 %v1613_v24, 0.0  ;;  %5072 = vmatmul.msk.bf16.gmra.mxu0 %vm1132_vm6, %v9806_v35  ;;  %1817 = vmatmul.bf16.gmra.mxu3 %v9771_v23  ;;  %v9815_v35 = vld [vmem:[#allocation18_spill] sm:$0xff] }
 0x276   :  { %v7546_v39 = vsel %vm480_vm1, %v2545_v47, %v2551_v22 }
 0x277   :  { %v2130_v48 = vrot.slane %v1939_v25, 1  ;;  %1734 = vmatmul.bf16.gmra.mxu1 %v9808_v43  ;;  %v9811_v43 = vld [vmem:[#allocation57_spill] sm:$0xff] }
 0x278   :  { %v1551_v41 = vpop.f32.mrf.mxu2  ;;  %v7553_v2 = vpop.f32.mrf.mxu3  ;;  %v1472_v26 = vadd.f32 %v9811_v43, %v7197_v31 }
 0x279   :  { %9809 = vst [vmem:[#allocation25_spill] sm:$0xff] %v7553_v2  ;;  %v7555_v55 = vadd.f32 %v1551_v41, %v1469_v59  ;;  %v2131_v0 = vsel %vm330_vm4, %v2124_v46, %v2130_v48 }
 0x27a   :  { %v1614_v23 = vpop.f32.mrf.mxu0  ;;  %v7558_v24 = vmax.f32 %v1936_v13, %v2131_v0 }
 0x27b   :  { %v1615_v47 = vadd.f32 %v1614_v23, %v7392_v38  ;;  %v7561_v54 = vpop.f32.mrf.mxu1 }
 0x27c   :  { %9810 = vst [vmem:[#allocation23_spill] sm:$0xff] %v7561_v54  ;;  %v2557_v58 = vrot.slane %v7558_v24, 2 }
 0x27d   :  { %v1942_v51 = vmax.f32 %v1615_v47, 0.0  ;;  %5077 = vmatmul.msk.bf16.gmra.mxu2 %vm1132_vm6, %v9812_v60 }
 0x27e   :  { %v7569_v59 = vsel %vm480_vm1, %v2551_v22, %v2557_v58 }
 0x27f   :  { %v2136_v46 = vrot.slane %v1942_v51, 1 }
 0x280   :  { %v1554_v41 = vpop.f32.mrf.mxu2  ;;  %v7573_v38 = vpop.f32.mrf.mxu3 }
 0x281   :  { %9813 = vst [vmem:[#allocation7_spill] sm:$0xff] %v7573_v38  ;;  %v7575_v0 = vadd.f32 %v1554_v41, %v1472_v26  ;;  %v2137_v23 = vsel %vm330_vm4, %v2130_v48, %v2136_v46  ;;  %v1474_v48 = vadd.f32 %v7141_v8, %v7197_v31  ;;  %v9816_v41 = vld [vmem:[#allocation41_spill] sm:$0xff]  ;;  %v9821_v38 = vld [vmem:[#allocation20_spill] sm:$0xff] }
 0x282   :  { %v1617_v54 = vpop.f32.mrf.mxu0  ;;  %v7578_v43 = vmax.f32 %v1939_v25, %v2137_v23 }
 0x283   :  { %v1618_v47 = vadd.f32 %v1617_v54, %v7400_v30  ;;  %v7581_v60 = vpop.f32.mrf.mxu1 }
 0x284   :  { %9814 = vst [vmem:[#allocation13_spill] sm:$0xff] %v7581_v60  ;;  %v2563_v22 = vrot.slane %v7578_v43, 2 }
 0x285   :  { %v1945_v2 = vmax.f32 %v1618_v47, 0.0  ;;  %5073 = vmatmul.msk.bf16.gmra.mxu0 %vm1132_vm6, %v9815_v35  ;;  %1822 = vmatmul.bf16.gmra.mxu3 %v9778_v14 }
 0x286   :  { %v7588_v26 = vsel %vm480_vm1, %v2557_v58, %v2563_v22 }
 0x287   :  { %v2142_v25 = vrot.slane %v1945_v2, 1  ;;  %1739 = vmatmul.bf16.gmra.mxu1 %v9816_v41  ;;  %v1477_v41 = vadd.f32 %v7155_v32, %v7197_v31 }
 0x288   :  { %v1556_v54 = vpop.f32.mrf.mxu2  ;;  %v7595_v23 = vpop.f32.mrf.mxu3 }
 0x289   :  { %9817 = vst [vmem:[#allocation28_spill] sm:$0xff] %v7595_v23  ;;  %v7597_v47 = vadd.f32 %v1556_v54, %v1474_v48  ;;  %v2143_v13 = vsel %vm330_vm4, %v2136_v46, %v2142_v25 }
 0x28a   :  { %v1619_v14 = vpop.f32.mrf.mxu0  ;;  %v7600_v35 = vmax.f32 %v1942_v51, %v2143_v13 }
 0x28b   :  { %v1620_v58 = vadd.f32 %v1619_v14, %v7424_v18  ;;  %v7603_v60 = vpop.f32.mrf.mxu1 }
 0x28c   :  { %9818 = vst [vmem:[#allocation54_spill] sm:$0xff] %v7603_v60  ;;  %v2569_v8 = vrot.slane %v7600_v35, 2 }
 0x28d   :  { %v1948_v30 = vmax.f32 %v1620_v58, 0.0  ;;  %5078 = vmatmul.msk.bf16.gmra.mxu2 %vm1132_vm6, %v6343_v16 }
 0x28e   :  { %v7611_v48 = vsel %vm480_vm1, %v2563_v22, %v2569_v8 }
 0x28f   :  { %v2148_v46 = vrot.slane %v1948_v30, 1 }
 0x290   :  { %v1559_v13 = vpop.f32.mrf.mxu2  ;;  %v7615_v18 = vpop.f32.mrf.mxu3 }
 0x291   :  { %9819 = vst [vmem:[#allocation33_spill] sm:$0xff] %v7615_v18  ;;  %v7617_v54 = vadd.f32 %v1559_v13, %v1477_v41  ;;  %v2149_v14 = vsel %vm330_vm4, %v2142_v25, %v2148_v46  ;;  %v1479_v25 = vadd.f32 %v7167_v5, %v7197_v31  ;;  %v9822_v13 = vld [vmem:[#allocation45_spill] sm:$0xff]  ;;  %v9827_v18 = vld [vmem:[#allocation26_spill] sm:$0xff] }
 0x292   :  { %v1622_v60 = vpop.f32.mrf.mxu0  ;;  %v7620_v32 = vmax.f32 %v1945_v2, %v2149_v14 }
 0x293   :  { %v1623_v58 = vadd.f32 %v1622_v60, %v7439_v1  ;;  %v7623_v16 = vpop.f32.mrf.mxu1 }
 0x294   :  { %9820 = vst [vmem:[#allocation31_spill] sm:$0xff] %v7623_v16  ;;  %v2575_v22 = vrot.slane %v7620_v32, 2 }
 0x295   :  { %v1951_v23 = vmax.f32 %v1623_v58, 0.0  ;;  %5074 = vmatmul.msk.bf16.gmra.mxu0 %vm1132_vm6, %v9821_v38  ;;  %1827 = vmatmul.bf16.gmra.mxu3 %v9784_v21 }
 0x296   :  { %v7630_v41 = vsel %vm480_vm1, %v2569_v8, %v2575_v22 }
 0x297   :  { %v2154_v2 = vrot.slane %v1951_v23, 1  ;;  %1744 = vmatmul.bf16.gmra.mxu1 %v9822_v13  ;;  %v1482_v13 = vadd.f32 %v7193_v49, %v7197_v31 }
 0x298   :  { %v1561_v60 = vpop.f32.mrf.mxu2  ;;  %v7637_v14 = vpop.f32.mrf.mxu3 }
 0x299   :  { %9823 = vst [vmem:[#allocation56_spill] sm:$0xff] %v7637_v14  ;;  %v7639_v58 = vadd.f32 %v1561_v60, %v1479_v25  ;;  %v2155_v51 = vsel %vm330_vm4, %v2148_v46, %v2154_v2 }
 0x29a   :  { %v1624_v21 = vpop.f32.mrf.mxu0  ;;  %v7642_v38 = vmax.f32 %v1948_v30, %v2155_v51 }
 0x29b   :  { %v1625_v8 = vadd.f32 %v1624_v21, %v7466_v57  ;;  %v7645_v16 = vpop.f32.mrf.mxu1 }
 0x29c   :  { %9824 = vst [vmem:[#allocation15_spill] sm:$0xff] %v7645_v16  ;;  %v2581_v5 = vrot.slane %v7642_v38, 2 }
 0x29d   :  { %v1954_v1 = vmax.f32 %v1625_v8, 0.0  ;;  %5079 = vmatmul.msk.bf16.gmra.mxu2 %vm1132_vm6, %v6388_v62 }
 0x29e   :  { %v7653_v25 = vsel %vm480_vm1, %v2575_v22, %v2581_v5 }
 0x29f   :  { %v2160_v46 = vrot.slane %v1954_v1, 1 }
 0x2a0   :  { %v1564_v51 = vpop.f32.mrf.mxu2  ;;  %v7657_v57 = vpop.f32.mrf.mxu3 }
 0x2a1   :  { %9825 = vst [vmem:[#allocation35_spill] sm:$0xff] %v7657_v57  ;;  %v7659_v60 = vadd.f32 %v1564_v51, %v1482_v13  ;;  %v2161_v21 = vsel %vm330_vm4, %v2154_v2, %v2160_v46  ;;  %v1484_v2 = vadd.f32 %v7230_v6, %v7197_v31  ;;  %v9828_v51 = vld [vmem:[#allocation49_spill] sm:$0xff] }
 0x2a2   :  { %v1627_v16 = vpop.f32.mrf.mxu0  ;;  %v7662_v49 = vmax.f32 %v1951_v23, %v2161_v21 }
 0x2a3   :  { %v1628_v8 = vadd.f32 %v1627_v16, %v7491_v61  ;;  %v7665_v62 = vpop.f32.mrf.mxu1 }
 0x2a4   :  { %9826 = vst [vmem:[#allocation39_spill] sm:$0xff] %v7665_v62  ;;  %v2587_v22 = vrot.slane %v7662_v49, 2 }
 0x2a5   :  { %v1957_v14 = vmax.f32 %v1628_v8, 0.0  ;;  %5075 = vmatmul.msk.bf16.gmra.mxu0 %vm1132_vm6, %v9827_v18  ;;  %1832 = vmatmul.bf16.gmra.mxu3 %v9797_v36 }
 0x2a6   :  { %v7672_v13 = vsel %vm480_vm1, %v2581_v5, %v2587_v22 }
 0x2a7   :  { %v2166_v23 = vrot.slane %v1957_v14, 1  ;;  %1749 = vmatmul.bf16.gmra.mxu1 %v9828_v51  ;;  %v1487_v51 = vadd.f32 %v7263_v7, %v7197_v31 }
 0x2a8   :  { %v1566_v16 = vpop.f32.mrf.mxu2  ;;  %v7679_v21 = vpop.f32.mrf.mxu3 }
 0x2a9   :  { %9829 = vst [vmem:[#allocation38_spill] sm:$0xff] %v7679_v21  ;;  %v7681_v8 = vadd.f32 %v1566_v16, %v1484_v2  ;;  %v2167_v30 = vsel %vm330_vm4, %v2160_v46, %v2166_v23 }
 0x2aa   :  { %v1629_v36 = vpop.f32.mrf.mxu0  ;;  %v7684_v57 = vmax.f32 %v1954_v1, %v2167_v30  ;;  %v1489_v1 = vadd.f32 %v7287_v52, %v7197_v31 }
 0x2ab   :  { %v1630_v5 = vadd.f32 %v1629_v36, %v7512_v50  ;;  %v7687_v62 = vpop.f32.mrf.mxu1 }
 0x2ac   :  { %9830 = vst [vmem:[#allocation17_spill] sm:$0xff] %v7687_v62  ;;  %v2593_v6 = vrot.slane %v7684_v57, 2 }
 0x2ad   :  { %v1960_v61 = vmax.f32 %v1630_v5, 0.0  ;;  %5080 = vmatmul.msk.bf16.gmra.mxu2 %vm1132_vm6, %v6411_v20 }
 0x2ae   :  { %v7695_v2 = vsel %vm480_vm1, %v2587_v22, %v2593_v6 }
 0x2af   :  { %v2172_v46 = vrot.slane %v1960_v61, 1 }
 0x2b0   :  { %v1569_v30 = vpop.f32.mrf.mxu2  ;;  %v7699_v50 = vpop.f32.mrf.mxu3 }
 0x2b1   :  { %9831 = vst [vmem:[#allocation40_spill] sm:$0xff] %v7699_v50  ;;  %v7701_v16 = vadd.f32 %v1569_v30, %v1487_v51  ;;  %v2173_v36 = vsel %vm330_vm4, %v2166_v23, %v2172_v46 }
 0x2b2   :  { %v1632_v21 = vpop.f32.mrf.mxu0  ;;  %v7704_v7 = vmax.f32 %v1957_v14, %v2173_v36 }
 0x2b3   :  { %v1633_v5 = vadd.f32 %v1632_v21, %v7531_v3  ;;  %v7707_v20 = vpop.f32.mrf.mxu1 }
 0x2b4   :  { %9832 = vst [vmem:[#allocation43_spill] sm:$0xff] %v7707_v20  ;;  %v2599_v22 = vrot.slane %v7704_v7, 2  ;;  %v1492_v20 = vadd.f32 %v7308_v45, %v7197_v31 }
 0x2b5   :  { %v1963_v62 = vmax.f32 %v1633_v5, 0.0 }
 0x2b6   :  { %v7711_v18 = vsel %vm480_vm1, %v2593_v6, %v2599_v22 }
 0x2b7   :  { %v2178_v51 = vrot.slane %v1963_v62, 1 }
 0x2b8   :  { %v1571_v30 = vpop.f32.mrf.mxu2  ;;  %v7717_v14 = vpop.f32.mrf.mxu3 }
 0x2b9   :  { %9833 = vst [vmem:[#allocation42_spill] sm:$0xff] %v7717_v14  ;;  %v7719_v36 = vadd.f32 %v1571_v30, %v1489_v1  ;;  %v2179_v3 = vsel %vm330_vm4, %v2172_v46, %v2178_v51 }
 0x2ba   :  { %v1634_v21 = vpop.f32.mrf.mxu0  ;;  %v7722_v50 = vmax.f32 %v1960_v61, %v2179_v3 }
 0x2bb   :  { %v1635_v6 = vadd.f32 %v1634_v21, %v7555_v55  ;;  %v7725_v5 = vpop.f32.mrf.mxu1 }
 0x2bc   :  { %9834 = vst [vmem:[#allocation10_spill] sm:$0xff] %v7725_v5  ;;  %v2605_v52 = vrot.slane %v7722_v50, 2 }
 0x2bd   :  { %v1966_v23 = vmax.f32 %v1635_v6, 0.0  ;;  %5081 = vmatmul.msk.bf16.gmra.mxu2 %vm1132_vm6, %v9758_v44 }
 0x2be   :  { %v7733_v1 = vsel %vm480_vm1, %v2599_v22, %v2605_v52 }
 0x2bf   :  { %v2184_v46 = vrot.slane %v1966_v23, 1  ;;  %v2823_v61 = vmax.f32 %v7704_v7, %v7733_v1  ;;  %v1494_v7 = vadd.f32 %v9837_v15, %v7197_v31 }
 0x2c0   :  { %v1574_v30 = vpop.f32.mrf.mxu2  ;;  %v7737_v55 = vpop.f32.mrf.mxu3 }
 0x2c1   :  { %9835 = vst [vmem:[#allocation44_spill] sm:$0xff] %v7737_v55  ;;  %v7739_v3 = vadd.f32 %v1574_v30, %v1492_v20  ;;  %v2185_v21 = vsel %vm330_vm4, %v2178_v51, %v2184_v46 }
 0x2c2   :  { %v1637_v14 = vpop.f32.mrf.mxu0  ;;  %v2396_v45 = vmax.f32 %v1963_v62, %v2185_v21 }
 0x2c3   :  { %v1638_v6 = vadd.f32 %v1637_v14, %v7575_v0 }
 0x2c4   :  { %v7743_v5 = vpop.f32.mrf.mxu1  ;;  %v2611_v44 = vrot.slane %v2396_v45, 2 }
 0x2c5   :  { %9836 = vst [vmem:[#allocation19_spill] sm:$0xff] %v7743_v5  ;;  %v1969_v22 = vmax.f32 %v1638_v6, 0.0  ;;  %v9840_v5 = vld [vmem:[#allocation21_spill] sm:$0xff] }
 0x2c6   :  { %v2612_v42 = vsel %vm480_vm1, %v2605_v52, %v2611_v44  ;;  %v1497_v15 = vadd.f32 %v9840_v5, %v7197_v31 }
 0x2c7   :  { %v2190_v1 = vrot.slane %v1969_v22, 1  ;;  %v2826_v55 = vmax.f32 %v7722_v50, %v2612_v42 }
 0x2c8   :  { %v1576_v20 = vpop.f32.mrf.mxu2  ;;  %v7749_v30 = vpop.f32.mrf.mxu3 }
 0x2c9   :  { %9838 = vst [vmem:[#allocation47_spill] sm:$0xff] %v7749_v30  ;;  %v2191_v51 = vsel %vm330_vm4, %v2184_v46, %v2190_v1  ;;  %v7752_v62 = vadd.f32 %v1576_v20, %v1494_v7 }
 0x2ca   :  { %v1639_v0 = vpop.f32.mrf.mxu0  ;;  %v2399_v14 = vmax.f32 %v1966_v23, %v2191_v51 }
 0x2cb   :  { %v1640_v21 = vadd.f32 %v1639_v0, %v7597_v47 }
 0x2cc   :  { %v7755_v6 = vpop.f32.mrf.mxu1  ;;  %v2617_v52 = vrot.slane %v2399_v14, 2 }
 0x2cd   :  { %9839 = vst [vmem:[#allocation46_spill] sm:$0xff] %v7755_v6  ;;  %v1972_v40 = vmax.f32 %v1640_v21, 0.0  ;;  %5082 = vmatmul.msk.bf16.gmra.mxu2 %vm1132_vm6, %v9841_v12 }
 0x2ce   :  { %v2618_v42 = vsel %vm480_vm1, %v2611_v44, %v2617_v52 }
 0x2cf   :  { %v2196_v50 = vrot.slane %v1972_v40, 1  ;;  %v2829_v46 = vmax.f32 %v2396_v45, %v2618_v42  ;;  %v9843_v45 = vld [vmem:[#allocation32_spill] sm:$0xff] }
 0x2d0   :  { %v1579_v7 = vpop.f32.mrf.mxu2  ;;  %v7762_v20 = vpop.f32.mrf.mxu3  ;;  %v1499_v42 = vadd.f32 %v9843_v45, %v7197_v31 }
 0x2d1   :  { %9842 = vst [vmem:[#allocation12_spill] sm:$0xff] %v7762_v20  ;;  %v2197_v23 = vsel %vm330_vm4, %v2190_v1, %v2196_v50  ;;  %v7765_v47 = vadd.f32 %v1579_v7, %v1497_v15 }
 0x2d2   :  { %v7767_v51 = vmax.f32 %v1969_v22, %v2197_v23  ;;  %v1642_v0 = vpop.f32.mrf.mxu0 }
 0x2d3   :  { %v1643_v5 = vadd.f32 %v1642_v0, %v7617_v54 }
 0x2d4   :  { %v2623_v21 = vrot.slane %v7767_v51, 2  ;;  %v7771_v6 = vpop.f32.mrf.mxu1 }
 0x2d5   :  { %v1975_v12 = vmax.f32 %v1643_v5, 0.0 }
 0x2d6   :  { %v2624_v44 = vsel %vm480_vm1, %v2617_v52, %v2623_v21 }
 0x2d7   :  { %v2202_v20 = vrot.slane %v1975_v12, 1  ;;  %v2832_v30 = vmax.f32 %v2399_v14, %v2624_v44  ;;  %v9845_v14 = vld [vmem:[#allocation37_spill] sm:$0xff] }
 0x2d8   :  { %v1581_v1 = vpop.f32.mrf.mxu2  ;;  %v7776_v15 = vpop.f32.mrf.mxu3  ;;  %v1502_v44 = vadd.f32 %v9845_v14, %v7197_v31  ;;  %v9847_v31 = vmax.f32 %v7684_v57, %v7711_v18  ;;  %v9849_v18 = vmax.f32 %v7642_v38, %v7672_v13  ;;  %v9851_v14 = vmax.f32 %v7600_v35, %v7630_v41 }
 0x2d9   :  { %9844 = vst [vmem:[#allocation48_spill] sm:$0xff] %v7776_v15  ;;  %v7778_v22 = vadd.f32 %v1581_v1, %v1499_v42  ;;  %2995 = vmatpush.msra.mxu3 %v2832_v30  ;;  %v2203_v54 = vsel %vm330_vm4, %v2196_v50, %v2202_v20  ;;  %v9846_v15 = vld [vmem:[#allocation9_spill] sm:$0xff]  ;;  %v9853_v35 = vmax.f32 %v7558_v24, %v7588_v26 }
 0x2da   :  { %v1644_v7 = vpop.f32.mrf.mxu0  ;;  %v7781_v23 = vmax.f32 %v1972_v40, %v2203_v54  ;;  %v9855_v24 = vmax.f32 %v7517_v33, %v7546_v39 }
 0x2db   :  { %v1645_v0 = vadd.f32 %v1644_v7, %v7639_v58  ;;  %2996 = vmatpush.msra.mxu3 %v2829_v46 }
 0x2dc   :  { %v7784_v52 = vpop.f32.mrf.mxu1  ;;  %v2629_v5 = vrot.slane %v7781_v23, 2 }
 0x2dd   :  { %v1978_v45 = vmax.f32 %v1645_v0, 0.0  ;;  %5083 = vmatmul.msk.bf16.gmra.mxu2 %vm1132_vm6, %v9846_v15  ;;  %2997 = vmatpush.msra.mxu3 %v2826_v55 }
 0x2de   :  { %v7792_v30 = vsel %vm480_vm1, %v2623_v21, %v2629_v5 }
 0x2df   :  { %v2208_v40 = vrot.slane %v1978_v45, 1  ;;  %2998 = vmatpush.msra.mxu3 %v2823_v61  ;;  %v9848_v61 = vmax.f32 %v7662_v49, %v7695_v2 }
 0x2e0   :  { %v1584_v50 = vpop.f32.mrf.mxu2  ;;  %v7796_v46 = vpop.f32.mrf.mxu3 }
 0x2e1   :  { %v7798_v42 = vadd.f32 %v1584_v50, %v1502_v44  ;;  %2999 = vmatpush.msra.mxu3 %v9847_v31  ;;  %v2209_v1 = vsel %vm330_vm4, %v2202_v20, %v2208_v40 }
 0x2e2   :  { %v1647_v55 = vpop.f32.mrf.mxu0  ;;  %v7804_v15 = vmax.f32 %v1975_v12, %v2209_v1 }
 0x2e3   :  { %v1648_v21 = vadd.f32 %v1647_v55, %v7659_v60  ;;  %3000 = vmatpush.msra.mxu3 %v9848_v61  ;;  %v9850_v60 = vmax.f32 %v7620_v32, %v7653_v25  ;;  %v9852_v32 = vmax.f32 %v7578_v43, %v7611_v48  ;;  %v9854_v43 = vmax.f32 %v7536_v19, %v7569_v59 }
 0x2e4   :  { %v7810_v54 = vpop.f32.mrf.mxu1  ;;  %v2635_v7 = vrot.slane %v7804_v15, 2  ;;  %v9856_v59 = vmax.f32 %v7496_v37, %v7526_v27  ;;  %v9858_v61 = vmax.f32 %v7474_v29, %v7504_v11  ;;  %v9859_v27 = vmax.f32 %v7447_v34, %v7486_v9 }
 0x2e5   :  { %v1981_v0 = vmax.f32 %v1648_v21, 0.0  ;;  %3001 = vmatpush.msra.mxu3 %v9849_v18 }
 0x2e6   :  { %v7817_v57 = vsel %vm480_vm1, %v2629_v5, %v2635_v7 }
 0x2e7   :  { %v2214_v20 = vrot.slane %v1981_v0, 1  ;;  %3002 = vmatpush.msra.mxu3 %v9850_v60 }
 0x2e8   :  { %v1586_v2 = vpop.f32.mrf.mxu2  ;;  %v7824_v12 = vpop.f32.mrf.mxu3 }
 0x2e9   :  { %3003 = vmatpush.msra.mxu3 %v9851_v14  ;;  %v2215_v38 = vsel %vm330_vm4, %v2208_v40, %v2214_v20 }
 0x2ea   :  { %v1649_v13 = vpop.f32.mrf.mxu0  ;;  %v7830_v5 = vmax.f32 %v1978_v45, %v2215_v38  ;;  %v7898_v38 = vld [vmem:[%s9604_s3 + $0x10] sm:$0xff] }
 0x2eb   :  { %v1650_v44 = vadd.f32 %v1649_v13, %v7681_v8  ;;  %3004 = vmatpush.msra.mxu3 %v9852_v32  ;;  %9861 = vst [vmem:[#allocation50_spill] sm:$0xff] %v7898_v38 }
 0x2ec   :  { %v7836_v25 = vpop.f32.mrf.mxu1  ;;  %v2641_v50 = vrot.slane %v7830_v5, 2 }
 0x2ed   :  { %v1984_v31 = vmax.f32 %v1650_v44, 0.0  ;;  %5084 = vmatmul.msk.bf16.gmra.mxu2 %vm1132_vm6, %v9780_v10  ;;  %3005 = vmatpush.msra.mxu3 %v9853_v35 }
 0x2ee   :  { %v7845_v41 = vsel %vm480_vm1, %v2635_v7, %v2641_v50 }
 0x2ef   :  { %v2220_v8 = vrot.slane %v1984_v31, 1  ;;  %3006 = vmatpush.msra.mxu3 %v9854_v43 }
 0x2f0   :  { %v7852_v45 = vpop.f32.mrf.mxu3  ;;  %v1846_v40 = vpop.f32.mrf.mxu2 }
 0x2f1   :  { %v1847_v10 = vadd.f32 %v1846_v40, %v7426_v28  ;;  %3007 = vmatpush.msra.mxu3 %v9855_v24  ;;  %v2221_v26 = vsel %vm330_vm4, %v2214_v20, %v2220_v8  ;;  %v7870_v28 = vld [vmem:[%s9604_s3] sm:$0xff] }
 0x2f2   :  { %v1652_v1 = vpop.f32.mrf.mxu0  ;;  %v7859_v55 = vmax.f32 %v1981_v0, %v2221_v26  ;;  %9857 = vst [vmem:[#allocation22_spill] sm:$0xff] %v7870_v28  ;;  %2935 = vmatmul.f32.vlgmr.msra.gmra.mxu0 %v7870_v28 }
 0x2f3   :  { %v1653_v19 = vadd.f32 %v1652_v1, %v7701_v16  ;;  %3008 = vmatpush.msra.mxu3 %v9856_v59  ;;  %v1922_v29 = vmax.f32 %v1847_v10, 0.0 }
 0x2f4   :  { %v7865_v21 = vpop.f32.mrf.mxu1  ;;  %v2647_v33 = vrot.slane %v7859_v55, 2 }
 0x2f5   :  { %v1987_v39 = vmax.f32 %v1653_v19, 0.0  ;;  %3009 = vmatpush.msra.mxu3 %v9858_v61  ;;  %v2101_v44 = vrot.slane %v1922_v29, 1 }
 0x2f6   :  { %v7878_v16 = vsel %vm480_vm1, %v2641_v50, %v2647_v33 }
 0x2f7   :  { %v2226_v37 = vrot.slane %v1987_v39, 1  ;;  %3010 = vmatpush.msra.mxu3 %v9859_v27 }
 0x2f8   :  { %v7885_v0 = vpop.f32.mrf.mxu3  ;;  %v1848_v18 = vpop.f32.mrf.mxu2  ;;  %3011 = vmatmul.f32.vlgmr.msra.gmra.mxu3 %v7870_v28  ;;  %v9877_v28 = vld [vmem:[#allocation30_spill] sm:$0xff] }
 0x2f9   :  { %v1849_v11 = vadd.f32 %v1848_v18, %v7441_v63  ;;  %v2227_v20 = vsel %vm330_vm4, %v2220_v8, %v2226_v37 }
 0x2fa   :  { %v1654_v60 = vpop.f32.mrf.mxu0  ;;  %v7890_v2 = vmax.f32 %v1984_v31, %v2227_v20  ;;  %2938 = vmatmul.f32.gmra.mxu0 %v7898_v38 }
 0x2fb   :  { %v1925_v14 = vmax.f32 %v1849_v11, 0.0  ;;  %v1655_v34 = vadd.f32 %v1654_v60, %v7719_v36 }
 0x2fc   :  { %v7893_v9 = vpop.f32.mrf.mxu1  ;;  %v2653_v13 = vrot.slane %v7890_v2, 2 }
 0x2fd   :  { %9860 = vst [vmem:[#allocation51_spill] sm:$0xff] %v7893_v9  ;;  %v2102_v32 = vrot.slane %v1925_v14, 1  ;;  %v1990_v63 = vmax.f32 %v1655_v34, 0.0  ;;  %5085 = vmatmul.msk.bf16.gmra.mxu2 %vm1132_vm6, %v9789_v4 }
 0x2fe   :  { %v7905_v50 = vsel %vm480_vm1, %v2647_v33, %v2653_v13  ;;  %v7925_v33 = vld [vmem:[%s9604_s3 + $0x20] sm:$0xff] }
 0x2ff   :  { %v2232_v36 = vrot.slane %v1990_v63, 1  ;;  %v2103_v35 = vsel %vm330_vm4, %v2101_v44, %v2102_v32  ;;  %9865 = vst [vmem:[#allocation53_spill] sm:$0xff] %v7925_v33 }
 0x300   :  { %v7910_v8 = vpop.f32.mrf.mxu3  ;;  %v1851_v43 = vpop.f32.mrf.mxu2  ;;  %v7912_v40 = vmax.f32 %v1922_v29, %v2103_v35  ;;  %3014 = vmatmul.f32.gmra.mxu3 %v7898_v38 }
 0x301   :  { %9862 = vst [vmem:[#allocation14_spill] sm:$0xff] %v7910_v8  ;;  %v1852_v4 = vadd.f32 %v1851_v43, %v7468_v56  ;;  %v2233_v10 = vsel %vm330_vm4, %v2226_v37, %v2232_v36 }
 0x302   :  { %9863 = vst [vmem:[#allocation52_spill] sm:$0xff] %v7912_v40  ;;  %v1657_v24 = vpop.f32.mrf.mxu0  ;;  %v7917_v26 = vmax.f32 %v1987_v39, %v2233_v10  ;;  %2941 = vmatmul.f32.gmra.mxu0 %v7925_v33  ;;  %v2534_v43 = vrot.slane %v7912_v40, 2 }
 0x303   :  { %v1928_v1 = vmax.f32 %v1852_v4, 0.0  ;;  %v1658_v19 = vadd.f32 %v1657_v24, %v7739_v3 }
 0x304   :  { %v7920_v59 = vpop.f32.mrf.mxu1  ;;  %v2659_v61 = vrot.slane %v7917_v26, 2 }
 0x305   :  { %9864 = vst [vmem:[#allocation29_spill] sm:$0xff] %v7920_v59  ;;  %v2108_v27 = vrot.slane %v1928_v1, 1  ;;  %v1993_v18 = vmax.f32 %v1658_v19, 0.0 }
 0x306   :  { %v7930_v56 = vsel %vm480_vm1, %v2653_v13, %v2659_v61 }
 0x307   :  { %v2238_v39 = vrot.slane %v1993_v18, 1  ;;  %v2109_v37 = vsel %vm330_vm4, %v2102_v32, %v2108_v27 }
 0x308   :  { %v7935_v29 = vpop.f32.mrf.mxu3  ;;  %v1853_v11 = vpop.f32.mrf.mxu2  ;;  %v7937_v20 = vmax.f32 %v1925_v14, %v2109_v37  ;;  %3017 = vmatmul.f32.gmra.mxu3 %v7925_v33 }
 0x309   :  { %9866 = vst [vmem:[#allocation5_spill] sm:$0xff] %v7935_v29  ;;  %v1854_v60 = vadd.f32 %v1853_v11, %v7493_v53  ;;  %v2239_v34 = vsel %vm330_vm4, %v2232_v36, %v2238_v39  ;;  %v7953_v53 = vld [vmem:[%s9604_s3 + $0x30] sm:$0xff] }
 0x30a   :  { %v1659_v44 = vpop.f32.mrf.mxu0  ;;  %v7942_v13 = vmax.f32 %v1990_v63, %v2239_v34  ;;  %v2535_v35 = vrot.slane %v7937_v20, 2  ;;  %9868 = vst [vmem:[#allocation36_spill] sm:$0xff] %v7953_v53  ;;  %2944 = vmatmul.f32.gmra.mxu0 %v7953_v53 }
 0x30b   :  { %v1931_v4 = vmax.f32 %v1854_v60, 0.0  ;;  %v1660_v32 = vadd.f32 %v1659_v44, %v7752_v62 }
 0x30c   :  { %v7947_v10 = vpop.f32.mrf.mxu1  ;;  %v2665_v14 = vrot.slane %v7942_v13, 2  ;;  %v7956_v36 = vsel %vm480_vm1, %v2534_v43, %v2535_v35 }
 0x30d   :  { %9867 = vst [vmem:[#allocation55_spill] sm:$0xff] %v7947_v10  ;;  %v2114_v63 = vrot.slane %v1931_v4, 1  ;;  %v1996_v24 = vmax.f32 %v1660_v32, 0.0  ;;  %5086 = vmatmul.msk.bf16.gmra.mxu2 %vm1132_vm6, %v9798_v17  ;;  %v9871_v17 = vld [vmem:[#allocation34_spill] sm:$0xff] }
 0x30e   :  { %9869 = vst [vmem:[#allocation57_spill] sm:$0xff] %v7956_v36  ;;  %v7964_v19 = vsel %vm480_vm1, %v2659_v61, %v2665_v14 }
 0x30f   :  { %v2244_v37 = vrot.slane %v1996_v24, 1  ;;  %v2115_v60 = vsel %vm330_vm4, %v2108_v27, %v2114_v63 }
 0x310   :  { %v7969_v34 = vpop.f32.mrf.mxu3  ;;  %v1856_v44 = vpop.f32.mrf.mxu2  ;;  %v7971_v43 = vmax.f32 %v1928_v1, %v2115_v60  ;;  %3020 = vmatmul.f32.gmra.mxu3 %v7953_v53  ;;  %v7986_v1 = vld [vmem:[%s9604_s3 + $0x40] sm:$0xff] }
 0x311   :  { %9870 = vst [vmem:[#allocation6_spill] sm:$0xff] %v7969_v34  ;;  %v1857_v32 = vadd.f32 %v1856_v44, %v9871_v17  ;;  %v2245_v62 = vsel %vm330_vm4, %v2238_v39, %v2244_v37 }
 0x312   :  { %v1662_v58 = vpop.f32.mrf.mxu0  ;;  %v7976_v61 = vmax.f32 %v1993_v18, %v2245_v62  ;;  %v2541_v49 = vrot.slane %v7971_v43, 2  ;;  %9873 = vst [vmem:[#allocation45_spill] sm:$0xff] %v7986_v1  ;;  %2947 = vmatmul.f32.gmra.mxu0 %v7986_v1 }
 0x313   :  { %v1934_v48 = vmax.f32 %v1857_v32, 0.0  ;;  %v1663_v7 = vadd.f32 %v1662_v58, %v7765_v47 }
 0x314   :  { %v7980_v27 = vpop.f32.mrf.mxu1  ;;  %v2671_v31 = vrot.slane %v7976_v61, 2  ;;  %v7989_v60 = vsel %vm480_vm1, %v2535_v35, %v2541_v49 }
 0x315   :  { %9872 = vst [vmem:[#allocation41_spill] sm:$0xff] %v7980_v27  ;;  %v2120_v39 = vrot.slane %v1934_v48, 1  ;;  %v1999_v18 = vmax.f32 %v1663_v7, 0.0  ;;  %v9875_v7 = vld [vmem:[#allocation24_spill] sm:$0xff] }
 0x316   :  { %v7995_v47 = vsel %vm480_vm1, %v2665_v14, %v2671_v31 }
 0x317   :  { %v2250_v58 = vrot.slane %v1999_v18, 1  ;;  %v2121_v17 = vsel %vm330_vm4, %v2114_v63, %v2120_v39  ;;  %v9876_v63 = vld [vmem:[#allocation27_spill] sm:$0xff] }
 0x318   :  { %v8000_v32 = vpop.f32.mrf.mxu3  ;;  %v1858_v35 = vpop.f32.mrf.mxu2  ;;  %v8002_v3 = vmax.f32 %v1931_v4, %v2121_v17  ;;  %3023 = vmatmul.f32.gmra.mxu3 %v7986_v1  ;;  %v1696_v8 = vadd.f32 %v9877_v28, %v9876_v63  ;;  %v8017_v17 = vld [vmem:[%s9604_s3 + $0x50] sm:$0xff]  ;;  %v9880_v28 = vld [vmem:[#allocation25_spill] sm:$0xff] }
 0x319   :  { %9874 = vst [vmem:[#allocation49_spill] sm:$0xff] %v8000_v32  ;;  %v1859_v11 = vadd.f32 %v1858_v35, %v9875_v7  ;;  %v2251_v62 = vsel %vm330_vm4, %v2244_v37, %v2250_v58  ;;  %v9879_v35 = vld [vmem:[#allocation16_spill] sm:$0xff] }
 0x31a   :  { %v1664_v53 = vpop.f32.mrf.mxu0  ;;  %v8007_v14 = vmax.f32 %v1996_v24, %v2251_v62  ;;  %v2547_v33 = vrot.slane %v8002_v3, 2  ;;  %9878 = vst [vmem:[#allocation11_spill] sm:$0xff] %v8017_v17  ;;  %2950 = vmatmul.f32.gmra.mxu0 %v8017_v17 }
 0x31b   :  { %v1937_v38 = vmax.f32 %v1859_v11, 0.0  ;;  %v1665_v44 = vadd.f32 %v1664_v53, %v7778_v22  ;;  %v1779_v53 = vadd.f32 %v9880_v28, %v1696_v8 }
 0x31c   :  { %v1747_v29 = vpop.f32.mrf.mxu1  ;;  %v2677_v4 = vrot.slane %v8007_v14, 2  ;;  %v8020_v37 = vsel %vm480_vm1, %v2541_v49, %v2547_v33 }
 0x31d   :  { %v2126_v24 = vrot.slane %v1937_v38, 1  ;;  %v2002_v62 = vmax.f32 %v1665_v44, 0.0  ;;  %5087 = vmatmul.msk.bf16.gmra.mxu2 %vm1132_vm6, %v9879_v35  ;;  %v1748_v1 = vadd.f32 %v1747_v29, %v9876_v63 }
 0x31e   :  { %v8029_v11 = vsel %vm480_vm1, %v2671_v31, %v2677_v4 }
 0x31f   :  { %v2256_v7 = vrot.slane %v2002_v62, 1  ;;  %v2127_v44 = vsel %vm330_vm4, %v2120_v39, %v2126_v24 }
 0x320   :  { %v1830_v9 = vpop.f32.mrf.mxu3  ;;  %v1861_v35 = vpop.f32.mrf.mxu2  ;;  %v8035_v34 = vmax.f32 %v1934_v48, %v2127_v44  ;;  %3026 = vmatmul.f32.gmra.mxu3 %v8017_v17  ;;  %v8048_v48 = vld [vmem:[%s9604_s3 + $0x60] sm:$0xff] }
 0x321   :  { %v8038_v22 = vadd.f32 %v1830_v9, %v1748_v1  ;;  %v1862_v8 = vadd.f32 %v1861_v35, %v1779_v53  ;;  %v2257_v31 = vsel %vm330_vm4, %v2250_v58, %v2256_v7  ;;  %9883 = vst [vmem:[#allocation32_spill] sm:$0xff] %v8048_v48  ;;  %v9884_v1 = vld [vmem:[#allocation23_spill] sm:$0xff] }
 0x322   :  { %v1667_v28 = vpop.f32.mrf.mxu0  ;;  %v2432_v59 = vmax.f32 %v1999_v18, %v2257_v31  ;;  %v2553_v29 = vrot.slane %v8035_v34, 2  ;;  %v1698_v58 = vadd.f32 %v9884_v1, %v9876_v63  ;;  %2953 = vmatmul.f32.gmra.mxu0 %v8048_v48  ;;  %v9885_v35 = vld [vmem:[#allocation7_spill] sm:$0xff] }
 0x323   :  { %9881 = vst [vmem:[#allocation21_spill] sm:$0xff] %v8038_v22  ;;  %v1940_v32 = vmax.f32 %v1862_v8, 0.0  ;;  %v1668_v49 = vadd.f32 %v1667_v28, %v7798_v42 }
 0x324   :  { %v8043_v10 = vpop.f32.mrf.mxu1  ;;  %v2683_v39 = vrot.slane %v2432_v59, 2  ;;  %v8051_v9 = vsel %vm480_vm1, %v2547_v33, %v2553_v29  ;;  %v1781_v8 = vadd.f32 %v9885_v35, %v1698_v58 }
 0x325   :  { %9882 = vst [vmem:[#allocation8_spill] sm:$0xff] %v8043_v10  ;;  %v2132_v18 = vrot.slane %v1940_v32, 1  ;;  %v2005_v53 = vmax.f32 %v1668_v49, 0.0 }
 0x326   :  { %v2684_v44 = vsel %vm480_vm1, %v2677_v4, %v2683_v39 }
 0x327   :  { %v2262_v31 = vrot.slane %v2005_v53, 1  ;;  %v2862_v28 = vmax.f32 %v8007_v14, %v2684_v44  ;;  %v2133_v33 = vsel %vm330_vm4, %v2126_v24, %v2132_v18  ;;  %v8072_v24 = vld [vmem:[%s9604_s3 + $0x8] sm:$0xff] }
 0x328   :  { %v8062_v17 = vpop.f32.mrf.mxu3  ;;  %v1863_v10 = vpop.f32.mrf.mxu2  ;;  %v8064_v1 = vmax.f32 %v1937_v38, %v2133_v33  ;;  %3029 = vmatmul.f32.gmra.mxu3 %v8048_v48  ;;  %5092 = vmatmul.msk.f32.vlgmr.msra.gmra.mxu1 %vm2887_vm11, %v8072_v24 }
 0x329   :  { %9886 = vst [vmem:[#allocation37_spill] sm:$0xff] %v8062_v17  ;;  %v2438_v49 = vmax.f32 %v2005_v53, %v2262_v31  ;;  %v1864_v22 = vadd.f32 %v1863_v10, %v1781_v8  ;;  %v2263_v42 = vsel %vm330_vm4, %v2256_v7, %v2262_v31  ;;  %v9887_v10 = vld [vmem:[#allocation13_spill] sm:$0xff]  ;;  %v9888_v53 = vld [vmem:[#allocation18_spill] sm:$0xff] }
 0x32a   :  { %v1669_v27 = vpop.f32.mrf.mxu0  ;;  %v2435_v4 = vmax.f32 %v2002_v62, %v2263_v42  ;;  %v2559_v58 = vrot.slane %v8064_v1, 2  ;;  %v1701_v7 = vadd.f32 %v9887_v10, %v9876_v63 }
 0x32b   :  { %v2695_v35 = vrot.slane %v2438_v49, 2  ;;  %v1943_v36 = vmax.f32 %v1864_v22, 0.0 }
 0x32c   :  { %v1752_v14 = vpop.f32.mrf.mxu1  ;;  %v2689_v44 = vrot.slane %v2435_v4, 2  ;;  %v8075_v38 = vsel %vm480_vm1, %v2553_v29, %v2559_v58  ;;  %v9889_v29 = vld [vmem:[#allocation28_spill] sm:$0xff] }
 0x32d   :  { %v2871_v27 = vmax.f32 %v2438_v49, %v2695_v35  ;;  %v2138_v62 = vrot.slane %v1943_v36, 1  ;;  %5088 = vmatmul.msk.bf16.gmra.mxu2 %vm1132_vm6, %v9888_v53  ;;  %v1784_v31 = vadd.f32 %v9889_v29, %v1701_v7  ;;  %v9892_v7 = vmax.f32 %v7976_v61, %v8029_v11 }
 0x32e   :  { %v2696_v42 = vsel %vm480_vm1, %v2689_v44, %v2695_v35  ;;  %v2690_v8 = vsel %vm480_vm1, %v2683_v39, %v2689_v44  ;;  %v9890_v35 = vld [vmem:[#allocation54_spill] sm:$0xff] }
 0x32f   :  { %5099 = vmatpush.msk.msrb.mxu0 %vm2909_vm10, %v2871_v27  ;;  %v2868_v33 = vmax.f32 %v2435_v4, %v2696_v42  ;;  %v2865_v49 = vmax.f32 %v2432_v59, %v2690_v8  ;;  %v2139_v14 = vsel %vm330_vm4, %v2132_v18, %v2138_v62  ;;  %v1703_v44 = vadd.f32 %v9890_v35, %v9876_v63  ;;  %v9891_v18 = vld [vmem:[#allocation33_spill] sm:$0xff]  ;;  %v9918_v59 = vld [vmem:[#allocation12_spill] sm:$0xff] }
 0x330   :  { %v1835_v10 = vpop.f32.mrf.mxu3  ;;  %v1866_v53 = vpop.f32.mrf.mxu2  ;;  %v8090_v48 = vmax.f32 %v1940_v32, %v2139_v14  ;;  %v9893_v8 = vmax.f32 %v7942_v13, %v7995_v47  ;;  %v9897_v13 = vmax.f32 %v7890_v2, %v7930_v56  ;;  %v9901_v56 = vmax.f32 %v7804_v15, %v7845_v41 }
 0x331   :  { %v1867_v17 = vadd.f32 %v1866_v53, %v1784_v31  ;;  %3037 = vmatpush.msrb.mxu0 %v2868_v33  ;;  %v1786_v32 = vadd.f32 %v9891_v18, %v1703_v44  ;;  %v9894_v31 = vmax.f32 %v7917_v26, %v7964_v19  ;;  %v9898_v26 = vld [vmem:[#allocation56_spill] sm:$0xff]  ;;  %v9900_v10 = vmax.f32 %v7830_v5, %v7878_v16 }
 0x332   :  { %v2565_v22 = vrot.slane %v8090_v48, 2  ;;  %v9903_v5 = vmax.f32 %v7767_v51, %v7792_v30  ;;  %v9904_v30 = vld [vmem:[#allocation26_spill] sm:$0xff] }
 0x333   :  { %v1946_v40 = vmax.f32 %v1867_v17, 0.0  ;;  %3038 = vmatpush.msrb.mxu0 %v2865_v49 }
 0x334   :  { %v8094_v39 = vsel %vm480_vm1, %v2559_v58, %v2565_v22 }
 0x335   :  { %v2144_v4 = vrot.slane %v1946_v40, 1  ;;  %3039 = vmatpush.msrb.mxu0 %v2862_v28 }
 0x337   :  { %3040 = vmatpush.msrb.mxu0 %v9892_v7  ;;  %v2145_v17 = vsel %vm330_vm4, %v2138_v62, %v2144_v4  ;;  %v9896_v62 = vld [vmem:[#allocation20_spill] sm:$0xff]  ;;  %v9905_v7 = vld [vmem:[#allocation10_spill] sm:$0xff] }
 0x338   :  { %v1868_v27 = vpop.f32.mrf.mxu2  ;;  %v8105_v42 = vmax.f32 %v1943_v36, %v2145_v17  ;;  %v9895_v36 = vld [vmem:[#allocation31_spill] sm:$0xff]  ;;  %v1718_v17 = vadd.f32 %v9905_v7, %v9876_v63 }
 0x339   :  { %v1869_v58 = vadd.f32 %v1868_v27, %v1786_v32  ;;  %3041 = vmatpush.msrb.mxu0 %v9893_v8  ;;  %v1706_v11 = vadd.f32 %v9895_v36, %v9876_v63  ;;  %v9906_v27 = vld [vmem:[#allocation43_spill] sm:$0xff]  ;;  %v9907_v8 = vld [vmem:[#allocation44_spill] sm:$0xff] }
 0x33a   :  { %v2571_v28 = vrot.slane %v8105_v42, 2 }
 0x33b   :  { %v1949_v29 = vmax.f32 %v1869_v58, 0.0  ;;  %3042 = vmatpush.msrb.mxu0 %v9894_v31  ;;  %v1789_v19 = vadd.f32 %v9898_v26, %v1706_v11  ;;  %v1716_v58 = vadd.f32 %v9906_v27, %v9876_v63  ;;  %v9908_v31 = vld [vmem:[#allocation19_spill] sm:$0xff]  ;;  %v9909_v11 = vld [vmem:[#allocation17_spill] sm:$0xff] }
 0x33c   :  { %v8117_v61 = vsel %vm480_vm1, %v2565_v22, %v2571_v28  ;;  %v9899_v22 = vmax.f32 %v7859_v55, %v7905_v50  ;;  %v9902_v55 = vmax.f32 %v7781_v23, %v7817_v57  ;;  %v1721_v36 = vadd.f32 %v9908_v31, %v9876_v63 }
 0x33d   :  { %5089 = vmatmul.msk.bf16.gmra.mxu2 %vm1132_vm6, %v9896_v62  ;;  %3043 = vmatpush.msrb.mxu0 %v9897_v13  ;;  %v2806_v47 = vmax.f32 %v8090_v48, %v8117_v61  ;;  %v2150_v33 = vrot.slane %v1949_v29, 1  ;;  %v1713_v62 = vadd.f32 %v9909_v11, %v9876_v63  ;;  %v9910_v13 = vld [vmem:[#allocation42_spill] sm:$0xff] }
 0x33e   :  { %v1799_v26 = vadd.f32 %v9910_v13, %v1716_v58  ;;  %v9916_v58 = vld [vmem:[#allocation35_spill] sm:$0xff] }
 0x33f   :  { %3044 = vmatpush.msrb.mxu0 %v9899_v22  ;;  %v2151_v53 = vsel %vm330_vm4, %v2144_v4, %v2150_v33 }
 0x340   :  { %v1871_v49 = vpop.f32.mrf.mxu2  ;;  %v8149_v50 = vmax.f32 %v1946_v40, %v2151_v53  ;;  %v9913_v53 = vld [vmem:[#allocation40_spill] sm:$0xff] }
 0x341   :  { %v8132_v14 = vadd.f32 %v1871_v49, %v1789_v19  ;;  %3045 = vmatpush.msrb.mxu0 %v9900_v10  ;;  %v9911_v19 = vld [vmem:[#allocation47_spill] sm:$0xff] }
 0x342   :  { %v2577_v23 = vrot.slane %v8149_v50, 2  ;;  %v9912_v10 = vld [vmem:[#allocation39_spill] sm:$0xff] }
 0x343   :  { %v1952_v2 = vmax.f32 %v8132_v14, 0.0  ;;  %3046 = vmatpush.msrb.mxu0 %v9901_v56  ;;  %v1711_v56 = vadd.f32 %v9912_v10, %v9876_v63 }
 0x345   :  { %v8144_v35 = vrot.slane %v1952_v2, 1  ;;  %3047 = vmatpush.msrb.mxu0 %v9902_v55  ;;  %v1796_v55 = vadd.f32 %v9913_v53, %v1713_v62 }
 0x347   :  { %3048 = vmatpush.msrb.mxu0 %v9903_v5  ;;  %v2157_v15 = vsel %vm330_vm4, %v2150_v33, %v8144_v35  ;;  %v1804_v33 = vadd.f32 %v9911_v19, %v1721_v36 }
 0x348   :  { %v1873_v41 = vpop.f32.mrf.mxu2  ;;  %5100 = vmatmul.msk.f32.vlgmr.msrb.gmra.mxu0 %vm2887_vm11, %v8072_v24  ;;  %v8158_v16 = vmax.f32 %v1949_v29, %v2157_v15  ;;  %v1801_v29 = vadd.f32 %v9907_v8, %v1718_v17  ;;  %v9915_v17 = vld [vmem:[#allocation38_spill] sm:$0xff] }
 0x349   :  { %v1794_v27 = vadd.f32 %v9915_v17, %v1711_v56 }
 0x34a   :  { %v2583_v44 = vrot.slane %v8158_v16, 2 }
 0x34c   :  { %v8167_v51 = vsel %vm480_vm1, %v2577_v23, %v2583_v44 }
 0x34d   :  { %5090 = vmatmul.msk.bf16.gmra.mxu2 %vm1132_vm6, %v9904_v30  ;;  %v2812_v57 = vmax.f32 %v8149_v50, %v8167_v51  ;;  %v9914_v30 = vld [vmem:[#allocation15_spill] sm:$0xff]  ;;  %v9921_v51 = vmax.f32 %v8035_v34, %v8075_v38  ;;  %v9923_v34 = vmax.f32 %v7971_v43, %v8020_v37  ;;  %v9925_v43 = vld [vmem:[#allocation52_spill] sm:$0xff]  ;;  %v9926_v37 = vld [vmem:[#allocation57_spill] sm:$0xff] }
 0x34e   :  { %v1708_v7 = vadd.f32 %v9914_v30, %v9876_v63 }
 0x350   :  { %v1876_v40 = vpop.f32.mrf.mxu2  ;;  %v1791_v13 = vadd.f32 %v9916_v58, %v1708_v7 }
 0x351   :  { %v1877_v36 = vadd.f32 %v1876_v40, %v1794_v27  ;;  %v1726_v40 = vadd.f32 %v7771_v6, %v9876_v63 }
 0x353   :  { %v1958_v53 = vmax.f32 %v1877_v36, 0.0 }
 0x358   :  { %v1878_v4 = vpop.f32.mrf.mxu2 }
 0x359   :  { %v1879_v8 = vadd.f32 %v1878_v4, %v1796_v55 }
 0x360   :  { %v1881_v18 = vpop.f32.mrf.mxu2 }
 0x361   :  { %v1882_v5 = vadd.f32 %v1881_v18, %v1799_v26  ;;  %v1874_v18 = vadd.f32 %v1873_v41, %v1791_v13  ;;  %v1961_v26 = vmax.f32 %v1879_v8, 0.0  ;;  %v9919_v8 = vld [vmem:[#allocation48_spill] sm:$0xff] }
 0x362   :  { %v1809_v58 = vadd.f32 %v9919_v8, %v1726_v40 }
 0x363   :  { %v1964_v19 = vmax.f32 %v1882_v5, 0.0  ;;  %v1955_v56 = vmax.f32 %v1874_v18, 0.0  ;;  %v2174_v55 = vrot.slane %v1961_v26, 1  ;;  %v2168_v5 = vrot.slane %v1958_v53, 1 }
 0x365   :  { %v2180_v30 = vrot.slane %v1964_v19, 1  ;;  %v2162_v13 = vrot.slane %v1955_v56, 1 }
 0x367   :  { %v2181_v41 = vsel %vm330_vm4, %v2174_v55, %v2180_v30 }
 0x368   :  { %v1883_v32 = vpop.f32.mrf.mxu2 }
 0x369   :  { %v1884_v22 = vadd.f32 %v1883_v32, %v1801_v29  ;;  %v9917_v32 = vld [vmem:[#allocation46_spill] sm:$0xff] }
 0x36a   :  { %v1723_v29 = vadd.f32 %v9917_v32, %v9876_v63 }
 0x36b   :  { %v1967_v31 = vmax.f32 %v1884_v22, 0.0 }
 0x36c   :  { %v1806_v62 = vadd.f32 %v9918_v59, %v1723_v29  ;;  %v2175_v29 = vsel %vm330_vm4, %v2168_v5, %v2174_v55 }
 0x36f   :  { %v8202_v36 = vpop.f32.mrf.mxu0 }
 0x370   :  { %v1886_v49 = vpop.f32.mrf.mxu2 }
 0x371   :  { %v1887_v15 = vadd.f32 %v1886_v49, %v1804_v33  ;;  %v2186_v33 = vrot.slane %v1967_v31, 1 }
 0x373   :  { %v1970_v11 = vmax.f32 %v1887_v15, 0.0  ;;  %v2187_v7 = vsel %vm330_vm4, %v2180_v30, %v2186_v33 }
 0x374   :  { %v2397_v27 = vmax.f32 %v1964_v19, %v2187_v7 }
 0x375   :  { %v2192_v10 = vrot.slane %v1970_v11, 1 }
 0x376   :  { %v2613_v30 = vrot.slane %v2397_v27, 2 }
 0x377   :  { %v2193_v4 = vsel %vm330_vm4, %v2186_v33, %v2192_v10  ;;  %v2394_v33 = vmax.f32 %v1961_v26, %v2181_v41 }
 0x378   :  { %v1888_v49 = vpop.f32.mrf.mxu2  ;;  %v2400_v17 = vmax.f32 %v1967_v31, %v2193_v4  ;;  %v2391_v4 = vmax.f32 %v1958_v53, %v2175_v29 }
 0x379   :  { %v1889_v22 = vadd.f32 %v1888_v49, %v1806_v62  ;;  %v2169_v49 = vsel %vm330_vm4, %v2162_v13, %v2168_v5  ;;  %v2607_v7 = vrot.slane %v2394_v33, 2 }
 0x37a   :  { %v2619_v18 = vrot.slane %v2400_v17, 2  ;;  %v2388_v40 = vmax.f32 %v1955_v56, %v2169_v49  ;;  %v2601_v8 = vrot.slane %v2391_v4, 2 }
 0x37b   :  { %v1973_v15 = vmax.f32 %v1889_v22, 0.0  ;;  %v2614_v41 = vsel %vm480_vm1, %v2607_v7, %v2613_v30 }
 0x37c   :  { %v2595_v56 = vrot.slane %v2388_v40, 2 }
 0x37d   :  { %v2198_v59 = vrot.slane %v1973_v15, 1 }
 0x37f   :  { %v2199_v32 = vsel %vm330_vm4, %v2192_v10, %v2198_v59  ;;  %v2163_v10 = vsel %vm330_vm4, %v8144_v35, %v2162_v13 }
 0x380   :  { %v8204_v62 = vmax.f32 %v1970_v11, %v2199_v32  ;;  %v1891_v31 = vpop.f32.mrf.mxu2  ;;  %v2620_v11 = vsel %vm480_vm1, %v2613_v30, %v2619_v18  ;;  %v2385_v53 = vmax.f32 %v1952_v2, %v2163_v10  ;;  %v2608_v32 = vsel %vm480_vm1, %v2601_v8, %v2607_v7 }
 0x381   :  { %v8206_v6 = vadd.f32 %v1891_v31, %v1809_v58  ;;  %v2830_v58 = vmax.f32 %v2397_v27, %v2620_v11  ;;  %v2827_v31 = vmax.f32 %v2394_v33, %v2614_v41  ;;  %v2824_v2 = vmax.f32 %v2391_v4, %v2608_v32 }
 0x382   :  { %v2625_v19 = vrot.slane %v8204_v62, 2  ;;  %v2589_v49 = vrot.slane %v2385_v53, 2  ;;  %v1731_v33 = vadd.f32 %v7810_v54, %v9876_v63 }
 0x383   :  { %v1976_v22 = vmax.f32 %v8206_v6, 0.0 }
 0x384   :  { %v2626_v55 = vsel %vm480_vm1, %v2619_v18, %v2625_v19  ;;  %v2602_v18 = vsel %vm480_vm1, %v2595_v56, %v2601_v8  ;;  %v2596_v27 = vsel %vm480_vm1, %v2589_v49, %v2595_v56  ;;  %v2590_v4 = vsel %vm480_vm1, %v2583_v44, %v2589_v49 }
 0x385   :  { %v8217_v26 = vrot.slane %v1976_v22, 1  ;;  %v2833_v5 = vmax.f32 %v2400_v17, %v2626_v55  ;;  %v8227_v17 = vpop.f32.mrf.mxu0  ;;  %v2821_v30 = vmax.f32 %v2388_v40, %v2602_v18  ;;  %v2818_v11 = vmax.f32 %v2385_v53, %v2596_v27 }
 0x386   :  { %v2815_v54 = vmax.f32 %v8158_v16, %v2590_v4  ;;  %v2578_v40 = vsel %vm480_vm1, %v2571_v28, %v2577_v23 }
 0x387   :  { %3071 = vmatpush.msrb.mxu1 %v2833_v5  ;;  %v2205_v35 = vsel %vm330_vm4, %v2198_v59, %v8217_v26  ;;  %v2809_v16 = vmax.f32 %v8105_v42, %v2578_v40  ;;  %v3012_v40 = vpop.f32.mrf.mxu3 }
 0x388   :  { %v1893_v13 = vpop.f32.mrf.mxu2  ;;  %v8225_v29 = vmax.f32 %v1973_v15, %v2205_v35  ;;  %v1728_v15 = vadd.f32 %v7784_v52, %v9876_v63  ;;  %v9920_v35 = vmax.f32 %v8064_v1, %v8094_v39  ;;  %v9922_v1 = vmax.f32 %v8002_v3, %v8051_v9 }
 0x389   :  { %3072 = vmatpush.msrb.mxu1 %v2830_v58  ;;  %v9924_v3 = vmax.f32 %v7937_v20, %v7989_v60 }
 0x38a   :  { %v2631_v14 = vrot.slane %v8225_v29, 2  ;;  %v1811_v55 = vadd.f32 %v7796_v46, %v1728_v15  ;;  %v1733_v46 = vadd.f32 %v7836_v25, %v9876_v63  ;;  %v8324_v15 = vld [vmem:[%s9604_s3 + $0x18] sm:$0xff] }
 0x38b   :  { %3073 = vmatpush.msrb.mxu1 %v2827_v31  ;;  %v9927_v31 = vmax.f32 %v9925_v43, %v9926_v37  ;;  %5101 = vmatmul.msk.f32.gmra.mxu0 %vm2887_vm11, %v8324_v15 }
 0x38c   :  { %v8235_v59 = vsel %vm480_vm1, %v2625_v19, %v2631_v14  ;;  %v1814_v19 = vadd.f32 %v7824_v12, %v1731_v33  ;;  %v1894_v52 = vadd.f32 %v1893_v13, %v1811_v55  ;;  %v1816_v8 = vadd.f32 %v7852_v45, %v1733_v46  ;;  %5093 = vmatmul.msk.f32.gmra.mxu1 %vm2887_vm11, %v8324_v15 }
 0x38d   :  { %3074 = vmatpush.msrb.mxu1 %v2824_v2  ;;  %v2836_v10 = vmax.f32 %v8204_v62, %v8235_v59  ;;  %v8254_v44 = vpop.f32.mrf.mxu0  ;;  %v1736_v45 = vadd.f32 %v7865_v21, %v9876_v63 }
 0x38e   :  { %v1979_v12 = vmax.f32 %v1894_v52, 0.0  ;;  %v8353_v52 = vld [vmem:[%s9604_s3 + $0x38] sm:$0xff] }
 0x38f   :  { %3075 = vmatpush.msrb.mxu1 %v2821_v30  ;;  %v1819_v61 = vadd.f32 %v7885_v0, %v1736_v45  ;;  %v9931_v45 = vld [vmem:[#allocation29_spill] sm:$0xff]  ;;  %v3015_v59 = vpop.f32.mrf.mxu3 }
 0x390   :  { %v1896_v7 = vpop.f32.mrf.mxu2  ;;  %v8263_v28 = vrot.slane %v1979_v12, 1 }
 0x391   :  { %v1897_v5 = vadd.f32 %v1896_v7, %v1814_v19  ;;  %3076 = vmatpush.msrb.mxu1 %v2818_v11  ;;  %v8342_v19 = vld [vmem:[%s9604_s3 + $0x28] sm:$0xff] }
 0x393   :  { %v1982_v41 = vmax.f32 %v1897_v5, 0.0  ;;  %3077 = vmatpush.msrb.mxu1 %v2815_v54  ;;  %5102 = vmatmul.msk.f32.gmra.mxu0 %vm2887_vm11, %v8342_v19 }
 0x394   :  { %5094 = vmatmul.msk.f32.gmra.mxu1 %vm2887_vm11, %v8342_v19 }
 0x395   :  { %3078 = vmatpush.msrb.mxu1 %v2812_v57  ;;  %v2216_v53 = vrot.slane %v1982_v41, 1  ;;  %v8278_v57 = vpop.f32.mrf.mxu0 }
 0x397   :  { %3079 = vmatpush.msrb.mxu1 %v2809_v16  ;;  %v2217_v42 = vsel %vm330_vm4, %v8263_v28, %v2216_v53 }
 0x398   :  { %v1898_v58 = vpop.f32.mrf.mxu2  ;;  %v8280_v48 = vmax.f32 %v1979_v12, %v2217_v42  ;;  %v9928_v12 = vld [vmem:[#allocation41_spill] sm:$0xff] }
 0x399   :  { %v1899_v23 = vadd.f32 %v1898_v58, %v1816_v8  ;;  %3080 = vmatpush.msrb.mxu1 %v2806_v47  ;;  %v1746_v16 = vadd.f32 %v9928_v12, %v9876_v63  ;;  %v9929_v58 = vld [vmem:[#allocation55_spill] sm:$0xff] }
 0x39a   :  { %v2643_v32 = vrot.slane %v8280_v48, 2 }
 0x39b   :  { %v1985_v25 = vmax.f32 %v1899_v23, 0.0  ;;  %3081 = vmatpush.msrb.mxu1 %v9920_v35  ;;  %5103 = vmatmul.msk.f32.gmra.mxu0 %vm2887_vm11, %v8353_v52  ;;  %v1743_v23 = vadd.f32 %v9929_v58, %v9876_v63 }
 0x39c   :  { %5095 = vmatmul.msk.f32.gmra.mxu1 %vm2887_vm11, %v8353_v52 }
 0x39d   :  { %v2222_v50 = vrot.slane %v1985_v25, 1  ;;  %3082 = vmatpush.msrb.mxu1 %v9921_v51  ;;  %v8314_v49 = vpop.f32.mrf.mxu0  ;;  %v9932_v51 = vld [vmem:[#allocation6_spill] sm:$0xff] }
 0x39f   :  { %3083 = vmatpush.msrb.mxu1 %v9922_v1  ;;  %v2223_v39 = vsel %vm330_vm4, %v2216_v53, %v2222_v50 }
 0x3a0   :  { %v1901_v47 = vpop.f32.mrf.mxu2  ;;  %v8287_v13 = vmax.f32 %v1982_v41, %v2223_v39  ;;  %v8362_v41 = vld [vmem:[%s9604_s3 + $0x48] sm:$0xff] }
 0x3a1   :  { %v8289_v21 = vadd.f32 %v1901_v47, %v1819_v61  ;;  %3084 = vmatpush.msrb.mxu1 %v9923_v34  ;;  %v1826_v61 = vadd.f32 %v9932_v51, %v1743_v23  ;;  %v9933_v39 = vld [vmem:[#allocation21_spill] sm:$0xff]  ;;  %v9934_v34 = vld [vmem:[#allocation51_spill] sm:$0xff] }
 0x3a2   :  { %v2649_v38 = vrot.slane %v8287_v13, 2 }
 0x3a3   :  { %v1988_v0 = vmax.f32 %v8289_v21, 0.0  ;;  %3085 = vmatpush.msrb.mxu1 %v9924_v3  ;;  %5104 = vmatmul.msk.f32.gmra.mxu0 %vm2887_vm11, %v8362_v41  ;;  %v9935_v3 = vld [vmem:[#allocation5_spill] sm:$0xff] }
 0x3a4   :  { %v8303_v9 = vsel %vm480_vm1, %v2643_v32, %v2649_v38  ;;  %5096 = vmatmul.msk.f32.gmra.mxu1 %vm2887_vm11, %v8362_v41 }
 0x3a5   :  { %v8307_v56 = vrot.slane %v1988_v0, 1  ;;  %3086 = vmatpush.msrb.mxu1 %v9927_v31  ;;  %v2845_v18 = vmax.f32 %v8280_v48, %v8303_v9  ;;  %v8337_v55 = vpop.f32.mrf.mxu0  ;;  %v2974_v54 = vpop.f32.mrf.mxu1 }
 0x3a6   :  { %v8365_v46 = vadd.f32 %v2974_v54, %v8202_v36  ;;  %v9936_v54 = vld [vmem:[#allocation14_spill] sm:$0xff]  ;;  %v3018_v48 = vpop.f32.mrf.mxu3 }
 0x3a7   :  { %v2229_v20 = vsel %vm330_vm4, %v2222_v50, %v8307_v56  ;;  %v1741_v50 = vadd.f32 %v9931_v45, %v9876_v63 }
 0x3a8   :  { %v1903_v60 = vpop.f32.mrf.mxu2  ;;  %v8318_v2 = vmax.f32 %v1985_v25, %v2229_v20  ;;  %v9930_v25 = vld [vmem:[#allocation49_spill] sm:$0xff]  ;;  %v8391_v20 = vld [vmem:[%s9604_s3 + $0x58] sm:$0xff] }
 0x3a9   :  { %v1829_v35 = vadd.f32 %v9930_v25, %v1746_v16  ;;  %v1824_v43 = vadd.f32 %v9935_v3, %v1741_v50 }
 0x3aa   :  { %v2655_v27 = vrot.slane %v8318_v2, 2 }
 0x3ab   :  { %5105 = vmatmul.msk.f32.gmra.mxu0 %vm2887_vm11, %v8391_v20 }
 0x3ac   :  { %v8329_v33 = vsel %vm480_vm1, %v2649_v38, %v2655_v27  ;;  %v1738_v38 = vadd.f32 %v9934_v34, %v9876_v63  ;;  %5097 = vmatmul.msk.f32.gmra.mxu1 %vm2887_vm11, %v8391_v20 }
 0x3ad   :  { %v2848_v30 = vmax.f32 %v8287_v13, %v8329_v33  ;;  %v8348_v7 = vpop.f32.mrf.mxu0  ;;  %v9942_v13 = vld [vmem:[#allocation36_spill] sm:$0xff] }
 0x3b0   :  { %v1906_v4 = vpop.f32.mrf.mxu2 }
 0x3b1   :  { %v1907_v16 = vadd.f32 %v1906_v4, %v1824_v43 }
 0x3b8   :  { %v1908_v11 = vpop.f32.mrf.mxu2 }
 0x3b9   :  { %v1909_v37 = vadd.f32 %v1908_v11, %v1826_v61  ;;  %v9938_v11 = vld [vmem:[#allocation37_spill] sm:$0xff] }
 0x3bb   :  { %v1997_v25 = vmax.f32 %v1909_v37, 0.0 }
 0x3bd   :  { %v2246_v61 = vrot.slane %v1997_v25, 1 }
 0x3c0   :  { %v1911_v5 = vpop.f32.mrf.mxu2 }
 0x3c1   :  { %v1912_v1 = vadd.f32 %v1911_v5, %v1829_v35  ;;  %v9937_v5 = vld [vmem:[#allocation8_spill] sm:$0xff] }
 0x3c2   :  { %v1751_v12 = vadd.f32 %v9937_v5, %v9876_v63 }
 0x3c4   :  { %v1834_v58 = vadd.f32 %v9938_v11, %v1751_v12 }
 0x3c5   :  { %v3050_v8 = vpop.f32.mrf.mxu0 }
 0x3c6   :  { %v8373_v53 = vadd.f32 %v3050_v8, %v3012_v40  ;;  %v1821_v40 = vadd.f32 %v9936_v54, %v1738_v38  ;;  %v2000_v8 = vmax.f32 %v1912_v1, 0.0  ;;  %v8405_v1 = vld [vmem:[%s9604_s3 + $0x68] sm:$0xff]  ;;  %s5629_s3 = smov 126  }
 0x3c7   :  { %5098 = vmatmul.msk.f32.gmra.mxu1 %vm2887_vm11, %v8405_v1  ;;  %5106 = vmatmul.msk.f32.gmra.mxu0 %vm2887_vm11, %v8405_v1 }
 0x3c8   :  { %v1913_v42 = vpop.f32.mrf.mxu2  ;;  %v5525_v36 = vpack.i.bf16 %v8373_v53, %v8365_v46  ;;  %v1904_v23 = vadd.f32 %v1903_v60, %v1821_v40  ;;  %v2252_v45 = vrot.slane %v2000_v8, 1 }
 0x3c9   :  { %v1914_v47 = vadd.f32 %v1913_v42, %v9933_v39 }
 0x3ca   :  { %5526 = vrot.lane.b32.xlu1 %v5525_v36, %s5628_s18  ;;  %v1994_v36 = vmax.f32 %v1907_v16, 0.0  ;;  %v1991_v51 = vmax.f32 %v1904_v23, 0.0  ;;  %v2253_v60 = vsel %vm330_vm4, %v2246_v61, %v2252_v45 }
 0x3cb   :  { %v2003_v31 = vmax.f32 %v1914_v47, 0.0  ;;  %v2430_v5 = vmax.f32 %v1997_v25, %v2253_v60  ;;  %v9939_v25 = vld [vmem:[#allocation22_spill] sm:$0xff] }
 0x3cc   :  { %v2240_v39 = vrot.slane %v1994_v36, 1  ;;  %v2234_v38 = vrot.slane %v1991_v51, 1 }
 0x3cd   :  { %v2258_v35 = vrot.slane %v2003_v31, 1 }
 0x3ce   :  { %v2247_v37 = vsel %vm330_vm4, %v2240_v39, %v2246_v61  ;;  %v2241_v16 = vsel %vm330_vm4, %v2234_v38, %v2240_v39 }
 0x3cf   :  { %v2259_v4 = vsel %vm330_vm4, %v2252_v45, %v2258_v35  ;;  %v2427_v23 = vmax.f32 %v1994_v36, %v2247_v37  ;;  %v2235_v45 = vsel %vm330_vm4, %v8307_v56, %v2234_v38  ;;  %3087 = vmatmul.f32.vlgmr.msrb.gmra.mxu1 %v9939_v25 }
 0x3d0   :  { %v1916_v42 = vpop.f32.mrf.mxu2  ;;  %v2433_v34 = vmax.f32 %v2000_v8, %v2259_v4  ;;  %v2421_v36 = vmax.f32 %v1988_v0, %v2235_v45  ;;  %v9940_v0 = vld [vmem:[#allocation50_spill] sm:$0xff] }
 0x3d1   :  { %v1917_v50 = vadd.f32 %v1916_v42, %v1834_v58  ;;  %v2673_v4 = vrot.slane %v2427_v23, 2 }
 0x3d2   :  { %v2685_v58 = vrot.slane %v2433_v34, 2  ;;  %v2661_v38 = vrot.slane %v2421_v36, 2 }
 0x3d3   :  { %v2006_v63 = vmax.f32 %v1917_v50, 0.0 }
 0x3d5   :  { %v2264_v47 = vrot.slane %v2006_v63, 1 }
 0x3d7   :  { %v2439_v3 = vmax.f32 %v2006_v63, %v2264_v47  ;;  %v2265_v43 = vsel %vm330_vm4, %v2258_v35, %v2264_v47  ;;  %v2679_v35 = vrot.slane %v2430_v5, 2  ;;  %v2424_v63 = vmax.f32 %v1991_v51, %v2241_v16  ;;  %3090 = vmatmul.f32.gmra.mxu1 %v9940_v0 }
 0x3d8   :  { %v1918_v54 = vpop.f32.mrf.mxu2  ;;  %v2436_v40 = vmax.f32 %v2003_v31, %v2265_v43  ;;  %v2211_v43 = vsel %vm330_vm4, %v8217_v26, %v8263_v28  ;;  %v9941_v28 = vld [vmem:[#allocation53_spill] sm:$0xff] }
 0x3d9   :  { %v2697_v12 = vrot.slane %v2439_v3, 2  ;;  %v2686_v61 = vsel %vm480_vm1, %v2679_v35, %v2685_v58  ;;  %v2680_v56 = vsel %vm480_vm1, %v2673_v4, %v2679_v35  ;;  %v2667_v47 = vrot.slane %v2424_v63, 2 }
 0x3da   :  { %v2691_v11 = vrot.slane %v2436_v40, 2  ;;  %v2863_v60 = vmax.f32 %v2430_v5, %v2686_v61  ;;  %v2409_v54 = vmax.f32 %v1976_v22, %v2211_v43 }
 0x3db   :  { %v2872_v42 = vmax.f32 %v2439_v3, %v2697_v12  ;;  %v2674_v51 = vsel %vm480_vm1, %v2667_v47, %v2673_v4  ;;  %v2860_v3 = vmax.f32 %v2427_v23, %v2680_v56  ;;  %v2668_v37 = vsel %vm480_vm1, %v2661_v38, %v2667_v47 }
 0x3dc   :  { %v2698_v8 = vsel %vm480_vm1, %v2691_v11, %v2697_v12  ;;  %v2692_v50 = vsel %vm480_vm1, %v2685_v58, %v2691_v11  ;;  %v2857_v21 = vmax.f32 %v2424_v63, %v2674_v51  ;;  %v2637_v12 = vrot.slane %v2409_v54, 2 }
 0x3dd   :  { %5107 = vmatpush.msk.msrb.mxu3 %vm2909_vm10, %v2872_v42  ;;  %v2869_v31 = vmax.f32 %v2436_v40, %v2698_v8  ;;  %v2866_v39 = vmax.f32 %v2433_v34, %v2692_v50  ;;  %v2662_v34 = vsel %vm480_vm1, %v2655_v27, %v2661_v38  ;;  %v2854_v40 = vmax.f32 %v2421_v36, %v2668_v37 }
 0x3de   :  { %v2851_v5 = vmax.f32 %v8318_v2, %v2662_v34  ;;  %v2644_v26 = vsel %vm480_vm1, %v2637_v12, %v2643_v32  ;;  %v2638_v6 = vsel %vm480_vm1, %v2631_v14, %v2637_v12  ;;  %v9943_v32 = vld [vmem:[#allocation45_spill] sm:$0xff]  ;;  %v9944_v14 = vld [vmem:[#allocation11_spill] sm:$0xff] }
 0x3df   :  { %3113 = vmatpush.msrb.mxu3 %v2869_v31  ;;  %3093 = vmatmul.f32.gmra.mxu1 %v9941_v28  ;;  %v2842_v22 = vmax.f32 %v2409_v54, %v2644_v26  ;;  %v2839_v2 = vmax.f32 %v8225_v29, %v2638_v6  ;;  %v9945_v29 = vld [vmem:[#allocation32_spill] sm:$0xff] }
 0x3e1   :  { %3114 = vmatpush.msrb.mxu3 %v2866_v39 }
 0x3e3   :  { %3115 = vmatpush.msrb.mxu3 %v2863_v60 }
 0x3e5   :  { %3116 = vmatpush.msrb.mxu3 %v2860_v3 }
 0x3e7   :  { %3117 = vmatpush.msrb.mxu3 %v2857_v21  ;;  %3096 = vmatmul.f32.gmra.mxu1 %v9942_v13 }
 0x3e9   :  { %3118 = vmatpush.msrb.mxu3 %v2854_v40 }
 0x3eb   :  { %3119 = vmatpush.msrb.mxu3 %v2851_v5 }
 0x3ed   :  { %3120 = vmatpush.msrb.mxu3 %v2848_v30 }
 0x3ef   :  { %3121 = vmatpush.msrb.mxu3 %v2845_v18  ;;  %3099 = vmatmul.f32.gmra.mxu1 %v9943_v32  ;;  %v3021_v18 = vpop.f32.mrf.mxu3 }
 0x3f1   :  { %3122 = vmatpush.msrb.mxu3 %v2842_v22 }
 0x3f3   :  { %3123 = vmatpush.msrb.mxu3 %v2839_v2 }
 0x3f5   :  { %3124 = vmatpush.msrb.mxu3 %v2836_v10 }
 0x3f6   :  { %5108 = vmatmul.msk.f32.vlgmr.msrb.gmra.mxu3 %vm2887_vm11, %v8072_v24 }
 0x3f7   :  { %3102 = vmatmul.f32.gmra.mxu1 %v9944_v14 }
 0x3fe   :  { %5109 = vmatmul.msk.f32.gmra.mxu3 %vm2887_vm11, %v8324_v15  ;;  %v3024_v15 = vpop.f32.mrf.mxu3 }
 0x3ff   :  { %3105 = vmatmul.f32.gmra.mxu1 %v9945_v29 }
 0x406   :  { %5110 = vmatmul.msk.f32.gmra.mxu3 %vm2887_vm11, %v8342_v19  ;;  %v3027_v30 = vpop.f32.mrf.mxu3 }
 0x409   :  { %v2977_v24 = vpop.f32.mrf.mxu1 }
 0x40a   :  { %v8478_v58 = vadd.f32 %v2977_v24, %v8227_v17 }
 0x40e   :  { %5111 = vmatmul.msk.f32.gmra.mxu3 %vm2887_vm11, %v8353_v52  ;;  %v8474_v52 = vpop.f32.mrf.mxu3 }
 0x411   :  { %v2980_v62 = vpop.f32.mrf.mxu1 }
 0x412   :  { %v8487_v35 = vadd.f32 %v2980_v62, %v8254_v44 }
 0x416   :  { %5112 = vmatmul.msk.f32.gmra.mxu3 %vm2887_vm11, %v8362_v41  ;;  %v3053_v41 = vpop.f32.mrf.mxu0 }
 0x417   :  { %v8480_v23 = vadd.f32 %v3053_v41, %v3015_v59 }
 0x419   :  { %v2983_v10 = vpop.f32.mrf.mxu1  ;;  %v5530_v8 = vpack.i.bf16 %v8480_v23, %v8478_v58 }
 0x41a   :  { %v8499_v36 = vadd.f32 %v2983_v10, %v8278_v57 }
 0x41e   :  { %5113 = vmatmul.msk.f32.gmra.mxu3 %vm2887_vm11, %v8391_v20 }
 0x421   :  { %v2986_v9 = vpop.f32.mrf.mxu1 }
 0x422   :  { %v8511_v38 = vadd.f32 %v2986_v9, %v8314_v49 }
 0x426   :  { %5114 = vmatmul.msk.f32.gmra.mxu3 %vm2887_vm11, %v8405_v1  ;;  %v3056_v1 = vpop.f32.mrf.mxu0  ;;  %vm4776_vm11 = vcmask 91136  }
 0x427   :  { %v8489_v63 = vadd.f32 %v3056_v1, %v3018_v48 }
 0x429   :  { %v2989_v27 = vpop.f32.mrf.mxu1  ;;  %v5535_v25 = vpack.i.bf16 %v8489_v63, %v8487_v35 }
 0x42a   :  { %v8523_v0 = vadd.f32 %v2989_v27, %v8337_v55 }
 0x42e   :  { %v3059_v31 = vpop.f32.mrf.mxu0 }
 0x42f   :  { %v8501_v44 = vadd.f32 %v3059_v31, %v3021_v18 }
 0x431   :  { %v5540_v47 = vpack.i.bf16 %v8501_v44, %v8499_v36 }
 0x436   :  { %v3062_v39 = vpop.f32.mrf.mxu0 }
 0x437   :  { %v8513_v57 = vadd.f32 %v3062_v39, %v3024_v15 }
 0x439   :  { %v5545_v43 = vpack.i.bf16 %v8513_v57, %v8511_v38 }
 0x43c   :  { %v5527_v12 = vpop.permute.xlu1 %5526 }
 0x43d   :  { %v5529_v26 = vunpack.i.h.bf16 %v5527_v12  ;;  %v5528_v28 = vunpack.i.l.bf16 %v5527_v12 }
 0x43e   :  { %v3065_v21 = vpop.f32.mrf.mxu0 }
 0x43f   :  { %v8525_v34 = vadd.f32 %v3065_v21, %v3027_v30  ;;  %v3211_v6 = vsel %vm3210_vm12, %v5528_v28, %v5529_v26 }
 0x440   :  { %v8542_v14 = vmax.f32 %v8365_v46, %v3211_v6 }
 0x441   :  { %v5550_v40 = vpack.i.bf16 %v8525_v34, %v8523_v0 }
 0x444   :  { %v8472_v33 = vpop.f32.mrf.mxu1 }
 0x44c   :  { %v3088_v19 = vpop.f32.mrf.mxu1 }
 0x454   :  { %v3091_v20 = vpop.f32.mrf.mxu1 }
 0x45c   :  { %v3094_v45 = vpop.f32.mrf.mxu1 }
 0x464   :  { %v3097_v4 = vpop.f32.mrf.mxu1 }
 0x46c   :  { %v3100_v51 = vpop.f32.mrf.mxu1 }
 0x474   :  { %v3103_v49 = vpop.f32.mrf.mxu1 }
 0x479   :  { %v3126_v16 = vpop.f32.mrf.mxu3 }
 0x47a   :  { %v3127_v11 = vadd.f32 %v3126_v16, %v3088_v19  ;;  %v3068_v16 = vpop.f32.mrf.mxu0 }
 0x47c   :  { %3172 = vrot.lane.b32.xlu0 %v3127_v11, %s5628_s18  ;;  %v3106_v24 = vpop.f32.mrf.mxu1 }
 0x481   :  { %v3129_v42 = vpop.f32.mrf.mxu3 }
 0x482   :  { %v3130_v50 = vadd.f32 %v3129_v42, %v3091_v20 }
 0x484   :  { %3178 = vrot.lane.b32.xlu2 %v3130_v50, %s5628_s18  ;;  %5531 = vrot.lane.b32.xlu0 %v5530_v8, %s5628_s18  ;;  %v8582_v8 = vadd.f32 %v8472_v33, %v8348_v7  ;;  %v3431_v33 = vld [vmem:[%s9605_s4 + $0x160] sm:$0xff] }
 0x489   :  { %v3132_v17 = vpop.f32.mrf.mxu3 }
 0x48a   :  { %v8493_v61 = vadd.f32 %v3132_v17, %v3094_v45 }
 0x48c   :  { %5536 = vrot.lane.b32.xlu2 %v5535_v25, %s5628_s18  ;;  %3184 = vrot.lane.b32.xlu1 %v8493_v61, %s5628_s18  ;;  %v3432_v25 = vld [vmem:[%s9605_s4 + $0x168] sm:$0xff] }
 0x491   :  { %v3135_v56 = vpop.f32.mrf.mxu3 }
 0x492   :  { %v8505_v60 = vadd.f32 %v3135_v56, %v3097_v4  ;;  %v3429_v4 = vld [vmem:[%s9605_s4 + $0x150] sm:$0xff] }
 0x494   :  { %3190 = vrot.lane.b32.xlu0 %v8505_v60, %s5628_s18  ;;  %5541 = vrot.lane.b32.xlu1 %v5540_v47, %s5628_s18 }
 0x499   :  { %v3138_v3 = vpop.f32.mrf.mxu3 }
 0x49a   :  { %v8517_v37 = vadd.f32 %v3138_v3, %v3100_v51  ;;  %v3428_v3 = vld [vmem:[%s9605_s4 + $0x148] sm:$0xff] }
 0x49c   :  { %5546 = vrot.lane.b32.xlu0 %v5545_v43, %s5628_s18  ;;  %3196 = vrot.lane.b32.xlu2 %v8517_v37, %s5628_s18 }
 0x4a1   :  { %v3141_v54 = vpop.f32.mrf.mxu3 }
 0x4a2   :  { %v8529_v5 = vadd.f32 %v3141_v54, %v3103_v49 }
 0x4a4   :  { %5551 = vrot.lane.b32.xlu0 %v5550_v40, %s5628_s18  ;;  %3202 = vrot.lane.b32.xlu1 %v8529_v5, %s5628_s18  ;;  %v3427_v40 = vld [vmem:[%s9605_s4 + $0x140] sm:$0xff] }
 0x4a9   :  { %v3144_v62 = vpop.f32.mrf.mxu3 }
 0x4aa   :  { %v8551_v18 = vadd.f32 %v3144_v62, %v3106_v24  ;;  %v3423_v24 = vld [vmem:[%s9605_s4 + $0x120] sm:$0xff] }
 0x4de   :  { %v3179_v55 = vpop.permute.xlu2 %3178 }
 0x4df   :  { %v8549_v48 = vmax.f32 %v3130_v50, %v3179_v55  ;;  %v8585_v50 = vadd.f32 %v3068_v16, %v8474_v52 }
 0x4e1   :  { %v5565_v52 = vpack.i.bf16 %v8585_v50, %v8582_v8 }
 0x4e6   :  { %v5537_v59 = vpop.permute.xlu2 %5536 }
 0x4e7   :  { %v5539_v46 = vunpack.i.h.bf16 %v5537_v59  ;;  %v5538_v27 = vunpack.i.l.bf16 %v5537_v59  ;;  %v3422_v59 = vld [vmem:[%s9605_s4 + $0x118] sm:$0xff] }
 0x4ee   :  { %v3173_v22 = vpop.permute.xlu0 %3172 }
 0x4ef   :  { %v3212_v2 = vsel %vm3210_vm12, %v5529_v26, %v3173_v22  ;;  %v8536_v13 = vmax.f32 %v3127_v11, %v3173_v22  ;;  %v3215_v11 = vsel %vm3210_vm12, %v5538_v27, %v5539_v46  ;;  %v3420_v27 = vld [vmem:[%s9605_s4 + $0x108] sm:$0xff] }
 0x4f0   :  { %v8539_v32 = vmax.f32 %v8373_v53, %v3212_v2  ;;  %v8591_v17 = vmax.f32 %v8487_v35, %v3215_v11  ;;  %v3430_v35 = vld [vmem:[%s9605_s4 + $0x158] sm:$0xff] }
 0x4f1   :  { %3292 = vrot.lane.b32.xlu2 %v8536_v13, %s5629_s3  ;;  %v3402_v11 = vld [vmem:[%s9605_s4 + $0x78] sm:$0xff] }
 0x4f2   :  { %v5555_v29 = vpack.i.bf16 %v8539_v32, %v8542_v14  ;;  %3461 = vmatpush.msra.mxu0 %v3402_v11 }
 0x4f4   :  { %5556 = vrot.lane.b32.xlu1 %v5555_v29, %s5629_s3 }
 0x4f6   :  { %v5532_v10 = vpop.permute.xlu0 %5531  ;;  %v3197_v39 = vpop.permute.xlu2 %3196 }
 0x4f7   :  { %v5534_v53 = vunpack.i.h.bf16 %v5532_v10  ;;  %v5533_v9 = vunpack.i.l.bf16 %v5532_v10  ;;  %v8624_v49 = vmax.f32 %v8517_v37, %v3197_v39  ;;  %v3426_v37 = vld [vmem:[%s9605_s4 + $0x138] sm:$0xff] }
 0x4f9   :  { %v3214_v15 = vsel %vm3210_vm12, %v5534_v53, %v3179_v55  ;;  %v3213_v30 = vsel %vm3210_vm12, %v5533_v9, %v5534_v53  ;;  %3298 = vrot.lane.b32.xlu2 %v8549_v48, %s5629_s3  ;;  %v3424_v55 = vld [vmem:[%s9605_s4 + $0x128] sm:$0xff] }
 0x4fa   :  { %v8558_v19 = vmax.f32 %v8478_v58, %v3213_v30  ;;  %v8561_v41 = vmax.f32 %v8480_v23, %v3214_v15  ;;  %v3434_v58 = vld [vmem:[%s9605_s4 + $0x178] sm:$0x1f]  ;;  %v3433_v23 = vld [vmem:[%s9605_s4 + $0x170] sm:$0xff] }
 0x4fb   :  { %5115 = vmatpush.msk.msra.mxu3 %vm3457_vm13, %v3434_v58  ;;  %v3417_v58 = vld [vmem:[%s9605_s4 + $0xf0] sm:$0xff] }
 0x4fc   :  { %3208 = vrot.lane.b32.xlu1 %v8551_v18, %s5628_s18  ;;  %v5560_v20 = vpack.i.bf16 %v8561_v41, %v8558_v19 }
 0x4fd   :  { %3538 = vmatpush.msra.mxu3 %v3433_v23  ;;  %v3400_v23 = vld [vmem:[%s9605_s4 + $0x68] sm:$0xff] }
 0x4fe   :  { %5561 = vrot.lane.b32.xlu0 %v5560_v20, %s5629_s3  ;;  %v3185_v1 = vpop.permute.xlu1 %3184 }
 0x4ff   :  { %v3216_v42 = vsel %vm3210_vm12, %v5539_v46, %v3185_v1  ;;  %v8577_v45 = vmax.f32 %v8493_v61, %v3185_v1  ;;  %3539 = vmatpush.msra.mxu3 %v3432_v25  ;;  %v3418_v1 = vld [vmem:[%s9605_s4 + $0xf8] sm:$0xff]  ;;  %v3399_v25 = vld [vmem:[%s9605_s4 + $0x60] sm:$0xff] }
 0x500   :  { %v8588_v31 = vmax.f32 %v8489_v63, %v3216_v42  ;;  %3499 = vmatpush.msra.mxu1 %v3418_v1  ;;  %v3416_v42 = vld [vmem:[%s9605_s4 + $0xe8] sm:$0xff] }
 0x501   :  { %3304 = vrot.lane.b32.xlu2 %v8577_v45, %s5629_s3  ;;  %3540 = vmatpush.msra.mxu3 %v3431_v33  ;;  %v3398_v33 = vld [vmem:[%s9605_s4 + $0x58] sm:$0xff] }
 0x502   :  { %v5570_v7 = vpack.i.bf16 %v8588_v31, %v8591_v17  ;;  %3500 = vmatpush.msra.mxu1 %v3417_v58 }
 0x503   :  { %3541 = vmatpush.msra.mxu3 %v3430_v35  ;;  %v3397_v35 = vld [vmem:[%s9605_s4 + $0x50] sm:$0xff] }
 0x504   :  { %5571 = vrot.lane.b32.xlu1 %v5570_v7, %s5629_s3  ;;  %v3415_v7 = vld [vmem:[%s9605_s4 + $0xe0] sm:$0xff]  ;;  %3501 = vmatpush.msra.mxu1 %v3416_v42 }
 0x505   :  { %3542 = vmatpush.msra.mxu3 %v3429_v4  ;;  %v3412_v4 = vld [vmem:[%s9605_s4 + $0xc8] sm:$0xff] }
 0x506   :  { %v3191_v63 = vpop.permute.xlu0 %3190  ;;  %5566 = vrot.lane.b32.xlu0 %v5565_v52, %s5628_s18  ;;  %v5542_v61 = vpop.permute.xlu1 %5541  ;;  %3502 = vmatpush.msra.mxu1 %v3415_v7  ;;  %v3414_v52 = vld [vmem:[%s9605_s4 + $0xd8] sm:$0xff] }
 0x507   :  { %v8614_v56 = vmax.f32 %v8505_v60, %v3191_v63  ;;  %v5544_v47 = vunpack.i.h.bf16 %v5542_v61  ;;  %v5543_v51 = vunpack.i.l.bf16 %v5542_v61  ;;  %3543 = vmatpush.msra.mxu3 %v3428_v3  ;;  %v3396_v61 = vld [vmem:[%s9605_s4 + $0x48] sm:$0xff]  ;;  %v3410_v3 = vld [vmem:[%s9605_s4 + $0xb8] sm:$0xff] }
 0x508   :  { %3503 = vmatpush.msra.mxu1 %v3414_v52 }
 0x509   :  { %v3218_v43 = vsel %vm3210_vm12, %v5544_v47, %v3191_v63  ;;  %v3217_v21 = vsel %vm3210_vm12, %v5543_v51, %v5544_v47  ;;  %3310 = vrot.lane.b32.xlu2 %v8614_v56, %s5629_s3  ;;  %3544 = vmatpush.msra.mxu3 %v3427_v40  ;;  %v3413_v63 = vld [vmem:[%s9605_s4 + $0xd0] sm:$0xff]  ;;  %v3411_v47 = vld [vmem:[%s9605_s4 + $0xc0] sm:$0xff]  ;;  %v3394_v51 = vld [vmem:[%s9605_s4 + $0x38] sm:$0xff] }
 0x50a   :  { %v8627_v60 = vmax.f32 %v8499_v36, %v3217_v21  ;;  %v8630_v54 = vmax.f32 %v8501_v44, %v3218_v43  ;;  %v3425_v44 = vld [vmem:[%s9605_s4 + $0x130] sm:$0xff]  ;;  %3504 = vmatpush.msra.mxu1 %v3413_v63  ;;  %v3392_v40 = vld [vmem:[%s9605_s4 + $0x28] sm:$0xff] }
 0x50b   :  { %3545 = vmatpush.msra.mxu3 %v3426_v37  ;;  %v3393_v43 = vld [vmem:[%s9605_s4 + $0x30] sm:$0xff]  ;;  %v3391_v37 = vld [vmem:[%s9605_s4 + $0x20] sm:$0xff] }
 0x50c   :  { %3316 = vrot.lane.b32.xlu1 %v8624_v49, %s5629_s3  ;;  %v5575_v12 = vpack.i.bf16 %v8630_v54, %v8627_v60  ;;  %3505 = vmatpush.msra.mxu1 %v3412_v4  ;;  %v3409_v21 = vld [vmem:[%s9605_s4 + $0xb0] sm:$0xff] }
 0x50d   :  { %3546 = vmatpush.msra.mxu3 %v3425_v44  ;;  %v3390_v44 = vld [vmem:[%s9605_s4 + $0x18] sm:$0xff] }
 0x50e   :  { %v5547_v36 = vpop.permute.xlu0 %5546  ;;  %5576 = vrot.lane.b32.xlu0 %v5575_v12, %s5629_s3  ;;  %3506 = vmatpush.msra.mxu1 %v3411_v47  ;;  %v3408_v12 = vld [vmem:[%s9605_s4 + $0xa8] sm:$0xff] }
 0x50f   :  { %v5549_v26 = vunpack.i.h.bf16 %v5547_v36  ;;  %v5548_v28 = vunpack.i.l.bf16 %v5547_v36  ;;  %3547 = vmatpush.msra.mxu3 %v3424_v55  ;;  %v3407_v36 = vld [vmem:[%s9605_s4 + $0xa0] sm:$0xff]  ;;  %v3405_v55 = vld [vmem:[%s9605_s4 + $0x90] sm:$0xff] }
 0x510   :  { %3507 = vmatpush.msra.mxu1 %v3410_v3 }
 0x511   :  { %v3220_v6 = vsel %vm3210_vm12, %v5549_v26, %v3197_v39  ;;  %v3219_v22 = vsel %vm3210_vm12, %v5548_v28, %v5549_v26  ;;  %3548 = vmatpush.msra.mxu3 %v3423_v24  ;;  %v3395_v39 = vld [vmem:[%s9605_s4 + $0x40] sm:$0xff]  ;;  %v3406_v26 = vld [vmem:[%s9605_s4 + $0x98] sm:$0xff]  ;;  %v3389_v28 = vld [vmem:[%s9605_s4 + $0x10] sm:$0xff] }
 0x512   :  { %v8652_v2 = vmax.f32 %v8511_v38, %v3219_v22  ;;  %v8655_v29 = vmax.f32 %v8513_v57, %v3220_v6  ;;  %v3421_v57 = vld [vmem:[%s9605_s4 + $0x110] sm:$0xff]  ;;  %3508 = vmatpush.msra.mxu1 %v3409_v21  ;;  %v3388_v6 = vld [vmem:[%s9605_s4 + $0x8] sm:$0xff] }
 0x513   :  { %3549 = vmatpush.msra.mxu3 %v3422_v59  ;;  %v3404_v22 = vld [vmem:[%s9605_s4 + $0x88] sm:$0xff] }
 0x514   :  { %v5580_v62 = vpack.i.bf16 %v8655_v29, %v8652_v2  ;;  %3509 = vmatpush.msra.mxu1 %v3408_v12 }
 0x515   :  { %3550 = vmatpush.msra.mxu3 %v3421_v57 }
 0x516   :  { %v5552_v10 = vpop.permute.xlu0 %5551  ;;  %5581 = vrot.lane.b32.xlu2 %v5580_v62, %s5629_s3  ;;  %v3203_v38 = vpop.permute.xlu1 %3202  ;;  %3510 = vmatpush.msra.mxu1 %v3407_v36  ;;  %v3387_v62 = vld [vmem:[%s9605_s4] sm:$0xff] }
 0x517   :  { %v5554_v53 = vunpack.i.h.bf16 %v5552_v10  ;;  %v5553_v9 = vunpack.i.l.bf16 %v5552_v10  ;;  %v8670_v46 = vmax.f32 %v8529_v5, %v3203_v38  ;;  %3551 = vmatpush.msra.mxu3 %v3420_v27  ;;  %v3403_v10 = vld [vmem:[%s9605_s4 + $0x80] sm:$0xff] }
 0x518   :  { %3511 = vmatpush.msra.mxu1 %v3406_v26 }
 0x519   :  { %v3221_v15 = vsel %vm3210_vm12, %v5553_v9, %v5554_v53  ;;  %v3222_v30 = vsel %vm3210_vm12, %v5554_v53, %v3203_v38  ;;  %3322 = vrot.lane.b32.xlu0 %v8670_v46, %s5629_s3 }
 0x51a   :  { %v8680_v20 = vmax.f32 %v8525_v34, %v3222_v30  ;;  %v8683_v16 = vmax.f32 %v8523_v0, %v3221_v15  ;;  %v3419_v34 = vld [vmem:[%s9605_s4 + $0x100] sm:$0xff]  ;;  %v3401_v0 = vld [vmem:[%s9605_s4 + $0x70] sm:$0xff]  ;;  %3512 = vmatpush.msra.mxu1 %v3405_v55  ;;  %s5630_s4 = smov 96  }
 0x51b   :  { %3552 = vmatpush.msra.mxu3 %v3419_v34  ;;  %3462 = vmatpush.msra.mxu0 %v3401_v0 }
 0x51c   :  { %v5585_v5 = vpack.i.bf16 %v8680_v20, %v8683_v16  ;;  %3513 = vmatpush.msra.mxu1 %v3404_v22 }
 0x51d   :  { %3463 = vmatpush.msra.mxu0 %v3400_v23 }
 0x51e   :  { %5586 = vrot.lane.b32.xlu1 %v5585_v5, %s5629_s3  ;;  %3514 = vmatpush.msra.mxu1 %v3403_v10 }
 0x51f   :  { %3464 = vmatpush.msra.mxu0 %v3399_v25 }
 0x521   :  { %3465 = vmatpush.msra.mxu0 %v3398_v33 }
 0x523   :  { %3466 = vmatpush.msra.mxu0 %v3397_v35 }
 0x525   :  { %3467 = vmatpush.msra.mxu0 %v3396_v61 }
 0x527   :  { %3468 = vmatpush.msra.mxu0 %v3395_v39 }
 0x529   :  { %3469 = vmatpush.msra.mxu0 %v3394_v51 }
 0x52b   :  { %3470 = vmatpush.msra.mxu0 %v3393_v43 }
 0x52d   :  { %3471 = vmatpush.msra.mxu0 %v3392_v40 }
 0x52f   :  { %3472 = vmatpush.msra.mxu0 %v3391_v37 }
 0x531   :  { %3473 = vmatpush.msra.mxu0 %v3390_v44 }
 0x533   :  { %3474 = vmatpush.msra.mxu0 %v3389_v28 }
 0x535   :  { %3475 = vmatpush.msra.mxu0 %v3388_v6 }
 0x537   :  { %3476 = vmatpush.msra.mxu0 %v3387_v62 }
 0x54b   :  { %v3293_v24 = vpop.permute.xlu2 %3292 }
 0x54c   :  { %v3368_v59 = vmax.f32 %v8536_v13, %v3293_v24 }
 0x54e   :  { %5116 = vmatmul.msk.f32.vlgmr.msra.gmra.mxu3 %vm3435_vm14, %v3368_v59 }
 0x553   :  { %v3299_v38 = vpop.permute.xlu2 %3298 }
 0x554   :  { %v3371_v57 = vmax.f32 %v8549_v48, %v3299_v38 }
 0x556   :  { %5117 = vmatmul.msk.f32.gmra.mxu3 %vm3435_vm14, %v3371_v57 }
 0x55b   :  { %v3305_v53 = vpop.permute.xlu2 %3304 }
 0x55c   :  { %v3374_v9 = vmax.f32 %v8577_v45, %v3305_v53 }
 0x55e   :  { %5118 = vmatmul.msk.f32.gmra.mxu3 %vm3435_vm14, %v3374_v9 }
 0x563   :  { %v3311_v13 = vpop.permute.xlu2 %3310 }
 0x564   :  { %v3377_v27 = vmax.f32 %v8614_v56, %v3311_v13 }
 0x566   :  { %5119 = vmatmul.msk.f32.gmra.mxu3 %vm3435_vm14, %v3377_v27  ;;  %v5557_v15 = vpop.permute.xlu1 %5556 }
 0x567   :  { %v5559_v30 = vunpack.i.h.bf16 %v5557_v15  ;;  %v5558_v5 = vunpack.i.l.bf16 %v5557_v15 }
 0x569   :  { %v3332_v11 = vsel %vm3330_vm15, %v5559_v30, %v3293_v24  ;;  %v3331_v48 = vsel %vm3330_vm15, %v5558_v5, %v5559_v30 }
 0x56a   :  { %v3367_v1 = vmax.f32 %v8539_v32, %v3332_v11  ;;  %v3366_v34 = vmax.f32 %v8542_v14, %v3331_v48 }
 0x56c   :  { %3477 = vmatmul.f32.vlgmr.msra.gmra.mxu0 %v3366_v34  ;;  %3515 = vmatmul.f32.vlgmr.msra.gmra.mxu1 %v3367_v1 }
 0x56e   :  { %v3209_v45 = vpop.permute.xlu1 %3208 }
 0x56f   :  { %v8800_v0 = vmax.f32 %v8551_v18, %v3209_v45 }
 0x570   :  { %v5562_v56 = vpop.permute.xlu0 %5561 }
 0x571   :  { %v5564_v58 = vunpack.i.h.bf16 %v5562_v56  ;;  %v5563_v23 = vunpack.i.l.bf16 %v5562_v56  ;;  %3328 = vrot.lane.b32.xlu2 %v8800_v0, %s5629_s3 }
 0x573   :  { %v3333_v42 = vsel %vm3330_vm15, %v5563_v23, %v5564_v58  ;;  %v3334_v25 = vsel %vm3330_vm15, %v5564_v58, %v3299_v38 }
 0x574   :  { %v3369_v32 = vmax.f32 %v8558_v19, %v3333_v42  ;;  %v3370_v14 = vmax.f32 %v8561_v41, %v3334_v25 }
 0x576   :  { %v5572_v7 = vpop.permute.xlu1 %5571  ;;  %3480 = vmatmul.f32.gmra.mxu0 %v3369_v32  ;;  %3518 = vmatmul.f32.gmra.mxu1 %v3370_v14 }
 0x577   :  { %v5574_v33 = vunpack.i.h.bf16 %v5572_v7  ;;  %v5573_v18 = vunpack.i.l.bf16 %v5572_v7 }
 0x578   :  { %v5567_v52 = vpop.permute.xlu0 %5566 }
 0x579   :  { %v5569_v35 = vunpack.i.h.bf16 %v5567_v52  ;;  %v5568_v63 = vunpack.i.l.bf16 %v5567_v52  ;;  %v3335_v61 = vsel %vm3330_vm15, %v5573_v18, %v5574_v33  ;;  %v3336_v4 = vsel %vm3330_vm15, %v5574_v33, %v3305_v53 }
 0x57a   :  { %v3372_v19 = vmax.f32 %v8591_v17, %v3335_v61  ;;  %v3373_v41 = vmax.f32 %v8588_v31, %v3336_v4  ;;  %v5582_v17 = vpop.permute.xlu2 %5581 }
 0x57b   :  { %v3223_v39 = vsel %vm3210_vm12, %v5568_v63, %v5569_v35  ;;  %v3224_v47 = vsel %vm3210_vm12, %v5569_v35, %v3209_v45  ;;  %v5584_v26 = vunpack.i.h.bf16 %v5582_v17  ;;  %v5583_v28 = vunpack.i.l.bf16 %v5582_v17 }
 0x57c   :  { %v3264_v51 = vmax.f32 %v8582_v8, %v3223_v39  ;;  %v3265_v3 = vmax.f32 %v8585_v50, %v3224_v47 }
 0x57d   :  { %v3339_v55 = vsel %vm3330_vm15, %v5583_v28, %v5584_v26 }
 0x57e   :  { %v3317_v43 = vpop.permute.xlu1 %3316  ;;  %3483 = vmatmul.f32.gmra.mxu0 %v3372_v19  ;;  %3521 = vmatmul.f32.gmra.mxu1 %v3373_v41  ;;  %v5590_v21 = vpack.i.bf16 %v3265_v3, %v3264_v51  ;;  %v3378_v62 = vmax.f32 %v8652_v2, %v3339_v55 }
 0x57f   :  { %v3380_v40 = vmax.f32 %v8624_v49, %v3317_v43  ;;  %v3340_v49 = vsel %vm3330_vm15, %v5584_v26, %v3317_v43 }
 0x580   :  { %v5577_v12 = vpop.permute.xlu0 %5576  ;;  %5591 = vrot.lane.b32.xlu0 %v5590_v21, %s5629_s3  ;;  %v3379_v22 = vmax.f32 %v8655_v29, %v3340_v49 }
 0x581   :  { %v5579_v37 = vunpack.i.h.bf16 %v5577_v12  ;;  %v5578_v36 = vunpack.i.l.bf16 %v5577_v12  ;;  %5120 = vmatmul.msk.f32.gmra.mxu3 %vm3435_vm14, %v3380_v40 }
 0x583   :  { %v3337_v31 = vsel %vm3330_vm15, %v5578_v36, %v5579_v37  ;;  %v3338_v8 = vsel %vm3330_vm15, %v5579_v37, %v3311_v13 }
 0x584   :  { %v3375_v50 = vmax.f32 %v8627_v60, %v3337_v31  ;;  %v3376_v44 = vmax.f32 %v8630_v54, %v3338_v8 }
 0x586   :  { %3486 = vmatmul.f32.gmra.mxu0 %v3375_v50  ;;  %3524 = vmatmul.f32.gmra.mxu1 %v3376_v44 }
 0x58b   :  { %v3323_v6 = vpop.permute.xlu0 %3322 }
 0x58c   :  { %v3383_v24 = vmax.f32 %v8670_v46, %v3323_v6 }
 0x58e   :  { %3489 = vmatmul.f32.gmra.mxu0 %v3378_v62  ;;  %3527 = vmatmul.f32.gmra.mxu1 %v3379_v22 }
 0x58f   :  { %5121 = vmatmul.msk.f32.gmra.mxu3 %vm3435_vm14, %v3383_v24 }
 0x590   :  { %v5587_v60 = vpop.permute.xlu1 %5586 }
 0x591   :  { %v5589_v54 = vunpack.i.h.bf16 %v5587_v60  ;;  %v5588_v59 = vunpack.i.l.bf16 %v5587_v60 }
 0x593   :  { %v3341_v10 = vsel %vm3330_vm15, %v5588_v59, %v5589_v54  ;;  %v3342_v38 = vsel %vm3330_vm15, %v5589_v54, %v3323_v6 }
 0x594   :  { %v3381_v57 = vmax.f32 %v8683_v16, %v3341_v10  ;;  %v3382_v53 = vmax.f32 %v8680_v20, %v3342_v38 }
 0x596   :  { %3492 = vmatmul.f32.gmra.mxu0 %v3381_v57  ;;  %3530 = vmatmul.f32.gmra.mxu1 %v3382_v53 }
 0x5cb   :  { %v3329_v29 = vpop.permute.xlu2 %3328 }
 0x5cc   :  { %v3386_v2 = vmax.f32 %v8800_v0, %v3329_v29 }
 0x5ce   :  { %5122 = vmatmul.msk.f32.gmra.mxu3 %vm3435_vm14, %v3386_v2 }
 0x5d1   :  { %v3554_v46 = vpop.f32.mrf.mxu3 }
 0x5d9   :  { %v3557_v15 = vpop.f32.mrf.mxu3 }
 0x5e1   :  { %v3560_v25 = vpop.f32.mrf.mxu3 }
 0x5e9   :  { %v3478_v9 = vpop.f32.mrf.mxu0  ;;  %v3516_v13 = vpop.f32.mrf.mxu1 }
 0x5ea   :  { %v3517_v27 = vadd.f32 %v3516_v13, %v3478_v9 }
 0x5ec   :  { %v3555_v30 = vadd.f32 %v3554_v46, %v3517_v27 }
 0x5ee   :  { %v3575_v56 = vpack.c.bf16 %v3555_v30, %v3555_v30 }
 0x5f0   :  { %v3589_v32 = vunpack.c.l.b16 %v3575_v56 }
 0x5f2   :  { %v5592_v5 = vpop.permute.xlu0 %5591 }
 0x5f3   :  { %v5594_v11 = vunpack.i.h.bf16 %v5592_v5  ;;  %v5593_v48 = vunpack.i.l.bf16 %v5592_v5  ;;  %v3481_v1 = vpop.f32.mrf.mxu0  ;;  %v3519_v16 = vpop.f32.mrf.mxu1 }
 0x5f4   :  { %v3520_v34 = vadd.f32 %v3519_v16, %v3481_v1 }
 0x5f5   :  { %v3343_v20 = vsel %vm3330_vm15, %v5593_v48, %v5594_v11  ;;  %v3344_v45 = vsel %vm3330_vm15, %v5594_v11, %v3329_v29 }
 0x5f6   :  { %v3558_v0 = vadd.f32 %v3557_v15, %v3520_v34  ;;  %v3384_v58 = vmax.f32 %v3264_v51, %v3343_v20  ;;  %v3385_v23 = vmax.f32 %v3265_v3, %v3344_v45  ;;  %v3563_v3 = vpop.f32.mrf.mxu3 }
 0x5f8   :  { %v3576_v42 = vpack.c.bf16 %v3558_v0, %v3558_v0  ;;  %3495 = vmatmul.f32.gmra.mxu0 %v3384_v58  ;;  %3533 = vmatmul.f32.gmra.mxu1 %v3385_v23  ;;  %v5181_v0 = vld [vmem:[%s9606_s5 + $0x70] sm:$0xf]  ;;  %v5464_v58 = vld [vmem:[%s9606_s5 + $0x74] sm:$0xf0] }
 0x5f9   :  { %v5245_v23 = vld [vmem:[%s9606_s5 + $0xf0] sm:$0xf] }
 0x5fa   :  { %v3590_v14 = vunpack.c.l.b16 %v3576_v42 }
 0x5fb   :  { %v3484_v7 = vpop.f32.mrf.mxu0  ;;  %v3522_v33 = vpop.f32.mrf.mxu1 }
 0x5fc   :  { %v8837_v18 = vpack.c.b16 %v3590_v14, %v3589_v32  ;;  %v3523_v52 = vadd.f32 %v3522_v33, %v3484_v7  ;;  %v5480_v32 = vld [vmem:[%s9606_s5 + $0xf4] sm:$0xf0]  ;;  %v5479_v14 = vld [vmem:[%s9606_s5 + $0xf4] sm:$0xf]  ;;  %v5247_v7 = vld [vmem:[%s9606_s5 + $0xf8] sm:$0xf0] }
 0x5fd   :  { %v5246_v33 = vor.u32 %v5480_v32, %v5245_v23  ;;  %v5468_v23 = vld [vmem:[%s9606_s5 + $0x94] sm:$0xf0] }
 0x5fe   :  { %v3601_v35 = vshrl.u32 %v8837_v18, 16  ;;  %v3603_v63 = vshll.u32 %v8837_v18, 16  ;;  %v3561_v39 = vadd.f32 %v3560_v25, %v3523_v52  ;;  %v3639_v16 = vrot.slane %v8837_v18, 1 }
 0x5ff   :  { %v5182_v25 = vor.u32 %v5464_v58, %v5181_v0  ;;  %v5250_v52 = vor.u32 %v5479_v14, %v5247_v7  ;;  %4129 = vmatpush.bf16.msrb.mxu1 %v5246_v33  ;;  %v5197_v0 = vld [vmem:[%s9606_s5 + $0x90] sm:$0xf]  ;;  %v5125_v7 = vld [vmem:[%s9606_s5] sm:$0xf]  ;;  %v5450_v33 = vld [vmem:[%s9606_s5 + $0x4] sm:$0xf0] }
 0x600   :  { %v3654_v61 = vrot.slane %v3601_v35, 1  ;;  %v3655_v4 = vrot.slane %v3603_v63, 2  ;;  %v3577_v43 = vpack.c.bf16 %v3561_v39, %v3561_v39  ;;  %v3605_v8 = vrot.slane %v3603_v63, 1  ;;  %v5462_v63 = vld [vmem:[%s9606_s5 + $0x64] sm:$0xf0] }
 0x601   :  { %4101 = vmatpush.bf16.msrb.mxu0 %v5182_v25  ;;  %v5478_v39 = vld [vmem:[%s9606_s5 + $0xe4] sm:$0xf0]  ;;  %4241 = vmatpush.bf16.msrb.mxu2 %v5250_v52  ;;  %v5199_v25 = vld [vmem:[%s9606_s5 + $0x98] sm:$0xf0]  ;;  %v5198_v32 = vor.u32 %v5468_v23, %v5197_v0  ;;  %v5189_v52 = vld [vmem:[%s9606_s5 + $0x80] sm:$0xf] }
 0x602   :  { %v3656_v47 = vor.u32 %v3655_v4, %v3654_v61  ;;  %v3591_v12 = vunpack.c.l.b16 %v3577_v43  ;;  %v3606_v49 = vor.u32 %v3605_v8, %v3601_v35  ;;  %v5173_v35 = vld [vmem:[%s9606_s5 + $0x60] sm:$0xf]  ;;  %v5460_v43 = vld [vmem:[%s9606_s5 + $0x54] sm:$0xf0]  ;;  %v5357_v0 = vld [vmem:[%s9606_s5 + $0x1d0] sm:$0xf] }
 0x603   :  { %v3487_v19 = vpop.f32.mrf.mxu0  ;;  %v3525_v41 = vpop.f32.mrf.mxu1  ;;  %v5237_v61 = vld [vmem:[%s9606_s5 + $0xe0] sm:$0xf]  ;;  %v5174_v4 = vor.u32 %v5462_v63, %v5173_v35  ;;  %v5126_v35 = vor.u32 %v5450_v33, %v5125_v7  ;;  %v5466_v63 = vld [vmem:[%s9606_s5 + $0x84] sm:$0xf0] }
 0x604   :  { %v3526_v51 = vadd.f32 %v3525_v41, %v3487_v19  ;;  %v3566_v50 = vpop.f32.mrf.mxu3  ;;  %v5239_v19 = vld [vmem:[%s9606_s5 + $0xe8] sm:$0xf0]  ;;  %v5238_v41 = vor.u32 %v5478_v39, %v5237_v61  ;;  %v5465_v61 = vld [vmem:[%s9606_s5 + $0x84] sm:$0xf]  ;;  %v5190_v39 = vor.u32 %v5466_v63, %v5189_v52  ;;  %v5482_v7 = vld [vmem:[%s9606_s5 + $0x104] sm:$0xf0] }
 0x605   :  { %4102 = vmatpush.bf16.msrb.mxu0 %v5174_v4  ;;  %v5191_v4 = vld [vmem:[%s9606_s5 + $0x88] sm:$0xf0]  ;;  %v5349_v52 = vld [vmem:[%s9606_s5 + $0x1c0] sm:$0xf] }
 0x606   :  { %v3564_v21 = vadd.f32 %v3563_v3, %v3526_v51  ;;  %v5165_v3 = vld [vmem:[%s9606_s5 + $0x50] sm:$0xf]  ;;  %4130 = vmatpush.bf16.msrb.mxu1 %v5238_v41 }
 0x608   :  { %v3578_v40 = vpack.c.bf16 %v3564_v21, %v3564_v21  ;;  %v5229_v21 = vld [vmem:[%s9606_s5 + $0xd0] sm:$0xf] }
 0x60a   :  { %v3592_v37 = vunpack.c.l.b16 %v3578_v40  ;;  %v5476_v40 = vld [vmem:[%s9606_s5 + $0xd4] sm:$0xf0] }
 0x60b   :  { %v3490_v36 = vpop.f32.mrf.mxu0  ;;  %v3528_v17 = vpop.f32.mrf.mxu1 }
 0x60c   :  { %v8841_v31 = vpack.c.b16 %v3592_v37, %v3591_v12  ;;  %v3529_v44 = vadd.f32 %v3528_v17, %v3490_v36  ;;  %v5475_v12 = vld [vmem:[%s9606_s5 + $0xd4] sm:$0xf]  ;;  %v5231_v37 = vld [vmem:[%s9606_s5 + $0xd8] sm:$0xf0]  ;;  %v5166_v36 = vor.u32 %v5460_v43, %v5165_v3  ;;  %v5230_v17 = vor.u32 %v5476_v40, %v5229_v21 }
 0x60d   :  { %v5234_v8 = vor.u32 %v5475_v12, %v5231_v37 }
 0x60e   :  { %v3608_v26 = vshll.u32 %v8841_v31, 16  ;;  %v3612_v28 = vshrl.u32 %v8841_v31, 16  ;;  %v3567_v24 = vadd.f32 %v3566_v50, %v3529_v44  ;;  %v3640_v1 = vrot.slane %v8841_v31, 1  ;;  %v5157_v50 = vld [vmem:[%s9606_s5 + $0x40] sm:$0xf]  ;;  %4103 = vmatpush.bf16.msrb.mxu0 %v5166_v36  ;;  %4131 = vmatpush.bf16.msrb.mxu1 %v5230_v17 }
 0x60f   :  { %v5458_v44 = vld [vmem:[%s9606_s5 + $0x44] sm:$0xf0] }
 0x610   :  { %v3610_v55 = vrot.slane %v3608_v26, 1  ;;  %v3657_v6 = vrot.slane %v3612_v28, 1  ;;  %v3658_v22 = vrot.slane %v3608_v26, 2  ;;  %v3579_v53 = vpack.c.bf16 %v3567_v24, %v3567_v24  ;;  %v5221_v26 = vld [vmem:[%s9606_s5 + $0xc0] sm:$0xf] }
 0x611   :  { %v3641_v34 = vsel %vm330_vm4, %v3639_v16, %v3640_v1 }
 0x612   :  { %v3611_v62 = vsel %vm180_vm2, %v3606_v49, %v3610_v55  ;;  %v3659_v59 = vor.u32 %v3658_v22, %v3657_v6  ;;  %v3569_v38 = vpop.f32.mrf.mxu3  ;;  %v3593_v46 = vunpack.c.l.b16 %v3579_v53  ;;  %v3614_v15 = vor.u32 %v3612_v28, %v3610_v55  ;;  %v5474_v28 = vld [vmem:[%s9606_s5 + $0xc4] sm:$0xf0]  ;;  %v5473_v49 = vld [vmem:[%s9606_s5 + $0xc4] sm:$0xf]  ;;  %v5223_v55 = vld [vmem:[%s9606_s5 + $0xc8] sm:$0xf0] }
 0x613   :  { %v3531_v60 = vpop.f32.mrf.mxu1  ;;  %3631 = vrot.lane.b32.xlu1 %v3611_v62, %s5630_s4  ;;  %v3493_v54 = vpop.f32.mrf.mxu0  ;;  %v5158_v6 = vor.u32 %v5458_v44, %v5157_v50  ;;  %v5222_v22 = vor.u32 %v5474_v28, %v5221_v26  ;;  %v5226_v24 = vor.u32 %v5473_v49, %v5223_v55  ;;  %v5149_v62 = vld [vmem:[%s9606_s5 + $0x30] sm:$0xf]  ;;  %v5215_v53 = vld [vmem:[%s9606_s5 + $0xb8] sm:$0xf0] }
 0x614   :  { %v3532_v10 = vadd.f32 %v3531_v60, %v3493_v54  ;;  %v8848_v57 = vsel %vm390_vm0, %v3656_v47, %v3659_v59  ;;  %v5477_v47 = vld [vmem:[%s9606_s5 + $0xe4] sm:$0xf]  ;;  %v5456_v60 = vld [vmem:[%s9606_s5 + $0x34] sm:$0xf0]  ;;  %v5213_v54 = vld [vmem:[%s9606_s5 + $0xb0] sm:$0xf] }
 0x615   :  { %v5242_v51 = vor.u32 %v5477_v47, %v5239_v19  ;;  %4104 = vmatpush.bf16.msrb.mxu0 %v5158_v6  ;;  %4132 = vmatpush.bf16.msrb.mxu1 %v5222_v22  ;;  %v5194_v47 = vor.u32 %v5465_v61, %v5191_v4  ;;  %v5341_v61 = vld [vmem:[%s9606_s5 + $0x1b0] sm:$0xf]  ;;  %v5504_v4 = vld [vmem:[%s9606_s5 + $0x1b4] sm:$0xf0] }
 0x616   :  { %v3570_v29 = vadd.f32 %v3569_v38, %v3532_v10  ;;  %v5472_v10 = vld [vmem:[%s9606_s5 + $0xb4] sm:$0xf0]  ;;  %v5471_v38 = vld [vmem:[%s9606_s5 + $0xb4] sm:$0xf] }
 0x617   :  { %4242 = vmatpush.bf16.msrb.mxu2 %v5242_v51 }
 0x618   :  { %v3580_v2 = vpack.c.bf16 %v3570_v29, %v3570_v29  ;;  %v5214_v29 = vor.u32 %v5472_v10, %v5213_v54  ;;  %v5496_v10 = vld [vmem:[%s9606_s5 + $0x174] sm:$0xf0] }
 0x61a   :  { %v3594_v9 = vunpack.c.l.b16 %v3580_v2  ;;  %v5218_v2 = vor.u32 %v5471_v38, %v5215_v53  ;;  %4133 = vmatpush.bf16.msrb.mxu1 %v5214_v29  ;;  %v5494_v53 = vld [vmem:[%s9606_s5 + $0x164] sm:$0xf0] }
 0x61b   :  { %4243 = vmatpush.bf16.msrb.mxu2 %v5234_v8 }
 0x61c   :  { %v8850_v13 = vpack.c.b16 %v3594_v9, %v3593_v46  ;;  %v5141_v46 = vld [vmem:[%s9606_s5 + $0x20] sm:$0xf]  ;;  %v5454_v9 = vld [vmem:[%s9606_s5 + $0x24] sm:$0xf0] }
 0x61e   :  { %v3616_v27 = vshll.u32 %v8850_v13, 16  ;;  %v3620_v5 = vshrl.u32 %v8850_v13, 16 }
 0x61f   :  { %4244 = vmatpush.bf16.msrb.mxu2 %v5226_v24 }
 0x620   :  { %v3618_v30 = vrot.slane %v3616_v27, 1  ;;  %v3661_v20 = vrot.slane %v3620_v5, 1  ;;  %v3662_v45 = vrot.slane %v3616_v27, 2  ;;  %v5205_v27 = vld [vmem:[%s9606_s5 + $0xa0] sm:$0xf] }
 0x622   :  { %v3619_v11 = vsel %vm180_vm2, %v3614_v15, %v3618_v30  ;;  %v8855_v48 = vor.u32 %v3620_v5, %v3618_v30  ;;  %v8864_v56 = vor.u32 %v3662_v45, %v3661_v20  ;;  %v5142_v15 = vor.u32 %v5454_v9, %v5141_v46  ;;  %v5470_v30 = vld [vmem:[%s9606_s5 + $0xa4] sm:$0xf0]  ;;  %v5469_v5 = vld [vmem:[%s9606_s5 + $0xa4] sm:$0xf]  ;;  %v5133_v20 = vld [vmem:[%s9606_s5 + $0x10] sm:$0xf] }
 0x623   :  { %3633 = vrot.lane.b32.xlu2 %v3619_v11, %s5630_s4  ;;  %4245 = vmatpush.bf16.msrb.mxu2 %v5218_v2  ;;  %v5207_v11 = vld [vmem:[%s9606_s5 + $0xa8] sm:$0xf0]  ;;  %v5206_v16 = vor.u32 %v5470_v30, %v5205_v27  ;;  %v5452_v45 = vld [vmem:[%s9606_s5 + $0x14] sm:$0xf0]  ;;  %v5293_v2 = vld [vmem:[%s9606_s5 + $0x150] sm:$0xf] }
 0x624   :  { %v3664_v42 = vsel %vm390_vm0, %v3659_v59, %v8864_v56  ;;  %v5150_v59 = vor.u32 %v5456_v60, %v5149_v62  ;;  %v5134_v58 = vor.u32 %v5452_v45, %v5133_v20  ;;  %v5492_v46 = vld [vmem:[%s9606_s5 + $0x154] sm:$0xf0]  ;;  %v5285_v27 = vld [vmem:[%s9606_s5 + $0x140] sm:$0xf]  ;;  %v5486_v20 = vld [vmem:[%s9606_s5 + $0x124] sm:$0xf0] }
 0x625   :  { %4134 = vmatpush.bf16.msrb.mxu1 %v5206_v16  ;;  %v5294_v9 = vor.u32 %v5492_v46, %v5293_v2 }
 0x626   :  { %4105 = vmatpush.bf16.msrb.mxu0 %v5150_v59 }
 0x629   :  { %4135 = vmatpush.bf16.msrb.mxu1 %v5198_v32  ;;  %v5253_v32 = vld [vmem:[%s9606_s5 + $0x100] sm:$0xf] }
 0x62a   :  { %4106 = vmatpush.bf16.msrb.mxu0 %v5142_v15  ;;  %v5490_v15 = vld [vmem:[%s9606_s5 + $0x144] sm:$0xf0]  ;;  %v5254_v33 = vor.u32 %v5482_v7, %v5253_v32  ;;  %v5453_v32 = vld [vmem:[%s9606_s5 + $0x24] sm:$0xf] }
 0x62b   :  { %3646 = vrot.lane.b32.xlu2 %v3641_v34, %s5631_s29  ;;  %v5210_v34 = vor.u32 %v5469_v5, %v5207_v11  ;;  %v5286_v30 = vor.u32 %v5490_v15, %v5285_v27  ;;  %v5277_v5 = vld [vmem:[%s9606_s5 + $0x130] sm:$0xf]  ;;  %v5488_v11 = vld [vmem:[%s9606_s5 + $0x134] sm:$0xf0] }
 0x62c   :  { %v5278_v16 = vor.u32 %v5488_v11, %v5277_v5  ;;  %v5495_v11 = vld [vmem:[%s9606_s5 + $0x174] sm:$0xf] }
 0x62d   :  { %4246 = vmatpush.bf16.msrb.mxu2 %v5210_v34  ;;  %4136 = vmatpush.bf16.msrb.mxu1 %v5190_v39  ;;  %v5269_v34 = vld [vmem:[%s9606_s5 + $0x120] sm:$0xf]  ;;  %v5342_v39 = vor.u32 %v5504_v4, %v5341_v61 }
 0x62e   :  { %4107 = vmatpush.bf16.msrb.mxu0 %v5134_v58  ;;  %v5270_v45 = vor.u32 %v5486_v20, %v5269_v34  ;;  %v5508_v58 = vld [vmem:[%s9606_s5 + $0x1d4] sm:$0xf0]  ;;  %v5151_v34 = vld [vmem:[%s9606_s5 + $0x38] sm:$0xf0]  ;;  %v5503_v20 = vld [vmem:[%s9606_s5 + $0x1b4] sm:$0xf] }
 0x62f   :  { %v5358_v23 = vor.u32 %v5508_v58, %v5357_v0 }
 0x632   :  { %4108 = vmatpush.bf16.msrb.mxu0 %v5126_v35  ;;  %v5506_v35 = vld [vmem:[%s9606_s5 + $0x1c4] sm:$0xf0] }
 0x633   :  { %3671 = vrot.lane.b32.xlu2 %v3664_v42, %s5632_s23  ;;  %v5467_v42 = vld [vmem:[%s9606_s5 + $0x94] sm:$0xf]  ;;  %v5350_v63 = vor.u32 %v5506_v35, %v5349_v52  ;;  %v5501_v52 = vld [vmem:[%s9606_s5 + $0x1a4] sm:$0xf]  ;;  %v5335_v35 = vld [vmem:[%s9606_s5 + $0x1a8] sm:$0xf0] }
 0x634   :  { %v5202_v14 = vor.u32 %v5467_v42, %v5199_v25  ;;  %v5261_v42 = vld [vmem:[%s9606_s5 + $0x110] sm:$0xf]  ;;  %v5484_v25 = vld [vmem:[%s9606_s5 + $0x114] sm:$0xf0]  ;;  %v5338_v61 = vor.u32 %v5501_v52, %v5335_v35 }
 0x636   :  { %4247 = vmatpush.bf16.msrb.mxu2 %v5202_v14  ;;  %4187 = vmatpush.bf16.msra.mxu0 %v5358_v23  ;;  %v5262_v14 = vor.u32 %v5484_v25, %v5261_v42  ;;  %v5493_v42 = vld [vmem:[%s9606_s5 + $0x164] sm:$0xf]  ;;  %v5303_v25 = vld [vmem:[%s9606_s5 + $0x168] sm:$0xf0] }
 0x637   :  { %v5306_v7 = vor.u32 %v5493_v42, %v5303_v25 }
 0x63a   :  { %4248 = vmatpush.bf16.msrb.mxu2 %v5194_v47  ;;  %4188 = vmatpush.bf16.msra.mxu0 %v5350_v63  ;;  %v5333_v47 = vld [vmem:[%s9606_s5 + $0x1a0] sm:$0xf] }
 0x63e   :  { %4189 = vmatpush.bf16.msra.mxu0 %v5342_v39 }
 0x651   :  { %v3572_v3 = vpop.f32.mrf.mxu3 }
 0x675   :  { %v3496_v19 = vpop.f32.mrf.mxu0  ;;  %v3534_v41 = vpop.f32.mrf.mxu1 }
 0x676   :  { %v3535_v51 = vadd.f32 %v3534_v41, %v3496_v19  ;;  %v5502_v19 = vld [vmem:[%s9606_s5 + $0x1a4] sm:$0xf0] }
 0x677   :  { %v5334_v41 = vor.u32 %v5502_v19, %v5333_v47  ;;  %v5491_v19 = vld [vmem:[%s9606_s5 + $0x154] sm:$0xf] }
 0x678   :  { %v3573_v43 = vadd.f32 %v3572_v3, %v3535_v51  ;;  %v5325_v51 = vld [vmem:[%s9606_s5 + $0x190] sm:$0xf]  ;;  %v5500_v3 = vld [vmem:[%s9606_s5 + $0x194] sm:$0xf0] }
 0x679   :  { %4190 = vmatpush.bf16.msra.mxu0 %v5334_v41  ;;  %v5295_v41 = vld [vmem:[%s9606_s5 + $0x158] sm:$0xf0] }
 0x67a   :  { %v3581_v21 = vpack.c.bf16 %v3573_v43, %v3573_v43  ;;  %v5326_v43 = vor.u32 %v5500_v3, %v5325_v51  ;;  %v5451_v51 = vld [vmem:[%s9606_s5 + $0x14] sm:$0xf]  ;;  %v5298_v3 = vor.u32 %v5491_v19, %v5295_v41 }
 0x67c   :  { %v3595_v40 = vunpack.c.l.b16 %v3581_v21  ;;  %v5463_v21 = vld [vmem:[%s9606_s5 + $0x74] sm:$0xf] }
 0x67d   :  { %v9013_v12 = vpop.permute.xlu2 %3633  ;;  %4191 = vmatpush.bf16.msra.mxu0 %v5326_v43  ;;  %v5135_v43 = vld [vmem:[%s9606_s5 + $0x18] sm:$0xf0] }
 0x67e   :  { %v9015_v37 = vpack.c.b16 %v3595_v40, %v3595_v40  ;;  %v5183_v40 = vld [vmem:[%s9606_s5 + $0x78] sm:$0xf0] }
 0x680   :  { %v3644_v36 = vrot.slane %v9015_v37, 1  ;;  %v3624_v17 = vshll.u32 %v9015_v37, 16  ;;  %v3628_v50 = vshrl.u32 %v9015_v37, 16 }
 0x682   :  { %3652 = vrot.lane.b32.xlu2 %v3644_v36, %s5631_s29  ;;  %v3626_v8 = vrot.slane %v3624_v17, 1  ;;  %v3665_v22 = vrot.slane %v3628_v50, 1  ;;  %v3666_v62 = vrot.slane %v3624_v17, 2  ;;  %v5317_v17 = vld [vmem:[%s9606_s5 + $0x180] sm:$0xf] }
 0x684   :  { %v3627_v44 = vsel %vm180_vm2, %v8855_v48, %v3626_v8  ;;  %v3630_v26 = vor.u32 %v3628_v50, %v3626_v8  ;;  %v3642_v48 = vrot.slane %v8850_v13, 1  ;;  %v3667_v60 = vor.u32 %v3666_v62, %v3665_v22  ;;  %v5498_v8 = vld [vmem:[%s9606_s5 + $0x184] sm:$0xf0]  ;;  %v5461_v50 = vld [vmem:[%s9606_s5 + $0x64] sm:$0xf] }
 0x685   :  { %v3632_v28 = vpop.permute.xlu1 %3631  ;;  %v9023_v49 = vpop.permute.xlu2 %3646  ;;  %3635 = vrot.lane.b32.xlu0 %v3627_v44, %s5630_s4  ;;  %v5318_v44 = vor.u32 %v5498_v8, %v5317_v17  ;;  %v5167_v62 = vld [vmem:[%s9606_s5 + $0x58] sm:$0xf0]  ;;  %v5489_v8 = vld [vmem:[%s9606_s5 + $0x144] sm:$0xf]  ;;  %vm4477_vm2 = vcmask 400384  }
 0x686   :  { %v9028_v55 = vsel %vm3684_vm5, %v8837_v18, %v3632_v28  ;;  %v3699_v6 = vsel %vm3697_vm3, %v3632_v28, %v9023_v49  ;;  %3637 = vrot.lane.b32.xlu1 %v3630_v26, %s5630_s4  ;;  %v3643_v24 = vsel %vm330_vm4, %v3640_v1, %v3642_v48  ;;  %v3645_v54 = vsel %vm330_vm4, %v3642_v48, %v3644_v36  ;;  %v5309_v1 = vld [vmem:[%s9606_s5 + $0x170] sm:$0xf]  ;;  %v5175_v26 = vld [vmem:[%s9606_s5 + $0x68] sm:$0xf0] }
 0x687   :  { %4109 = vmatmul.bf16.vlgmr.msrb.gmra.mxu0 %v9028_v55  ;;  %4137 = vmatmul.bf16.vlgmr.msrb.gmra.mxu1 %v3699_v6  ;;  %v3668_v59 = vsel %vm390_vm0, %v8864_v56, %v3667_v60  ;;  %v5301_v56 = vld [vmem:[%s9606_s5 + $0x160] sm:$0xf]  ;;  %v5310_v38 = vor.u32 %v5496_v10, %v5309_v1  ;;  %v5186_v36 = vor.u32 %v5463_v21, %v5183_v40  ;;  %vm3710_vm0 = vcmask 261120   ;;  %v5457_v10 = vld [vmem:[%s9606_s5 + $0x44] sm:$0xf] }
 0x688   :  { %4249 = vmatmul.bf16.vlgmr.msrb.gmra.mxu2 %v3699_v6  ;;  %v5302_v29 = vor.u32 %v5494_v53, %v5301_v56  ;;  %v5178_v6 = vor.u32 %v5461_v50, %v5175_v26  ;;  %4192 = vmatpush.bf16.msra.mxu0 %v5318_v44  ;;  %v5159_v56 = vld [vmem:[%s9606_s5 + $0x48] sm:$0xf0]  ;;  %v9183_v53 = vld [vmem:[%s9607_s6] sm:$0x3]  ;;  %v5499_v21 = vld [vmem:[%s9606_s5 + $0x194] sm:$0xf] }
 0x689   :  { %4157 = vmatpush.bf16.msrb.mxu3 %v5310_v38  ;;  %4213 = vmatpush.bf16.msra.mxu1 %v5186_v36  ;;  %v5505_v38 = vld [vmem:[%s9606_s5 + $0x1c4] sm:$0xf]  ;;  %v5162_v46 = vor.u32 %v5457_v10, %v5159_v56  ;;  %v9199_v5 = vperm.slane %v9183_v53, 0  ;;  %v5327_v40 = vld [vmem:[%s9606_s5 + $0x198] sm:$0xf0]  ;;  %v5138_v36 = vor.u32 %v5451_v51, %v5135_v43 }
 0x68a   :  { %v5330_v17 = vor.u32 %v5499_v21, %v5327_v40  ;;  %v5287_v50 = vld [vmem:[%s9606_s5 + $0x148] sm:$0xf0]  ;;  %v5449_v44 = vld [vmem:[%s9606_s5 + $0x4] sm:$0xf] }
 0x68b   :  { %v5127_v26 = vld [vmem:[%s9606_s5 + $0x8] sm:$0xf0] }
 0x68d   :  { %3669 = vrot.lane.b32.xlu0 %v8848_v57, %s5632_s23  ;;  %v9049_v57 = vsel %vm3684_vm5, %v8841_v31, %v9013_v12  ;;  %4158 = vmatpush.bf16.msrb.mxu3 %v5302_v29  ;;  %v5351_v29 = vld [vmem:[%s9606_s5 + $0x1c8] sm:$0xf0] }
 0x68e   :  { %3648 = vrot.lane.b32.xlu1 %v3643_v24, %s5631_s29  ;;  %v5459_v24 = vld [vmem:[%s9606_s5 + $0x54] sm:$0xf]  ;;  %4214 = vmatpush.bf16.msra.mxu1 %v5178_v6  ;;  %v5497_v6 = vld [vmem:[%s9606_s5 + $0x184] sm:$0xf] }
 0x691   :  { %4159 = vmatpush.bf16.msrb.mxu3 %v5294_v9  ;;  %v5354_v9 = vor.u32 %v5505_v38, %v5351_v29  ;;  %v5487_v38 = vld [vmem:[%s9606_s5 + $0x134] sm:$0xf]  ;;  %v5279_v29 = vld [vmem:[%s9606_s5 + $0x138] sm:$0xf0] }
 0x695   :  { %3650 = vrot.lane.b32.xlu0 %v3645_v54, %s5631_s29  ;;  %4160 = vmatpush.bf16.msrb.mxu3 %v5286_v30  ;;  %v5170_v54 = vor.u32 %v5459_v24, %v5167_v62  ;;  %v5319_v24 = vld [vmem:[%s9606_s5 + $0x188] sm:$0xf0] }
 0x696   :  { %3673 = vrot.lane.b32.xlu1 %v3668_v59, %s5632_s23  ;;  %v5359_v59 = vld [vmem:[%s9606_s5 + $0x1d8] sm:$0xf0]  ;;  %v5322_v10 = vor.u32 %v5497_v6, %v5319_v24 }
 0x697   :  { %4114 = vmatmul.bf16.gmra.mxu0 %v9049_v57  ;;  %4215 = vmatpush.bf16.msra.mxu1 %v5170_v54  ;;  %v5290_v54 = vor.u32 %v5489_v8, %v5287_v50 }
 0x699   :  { %4161 = vmatpush.bf16.msrb.mxu3 %v5278_v16  ;;  %v5455_v16 = vld [vmem:[%s9606_s5 + $0x34] sm:$0xf] }
 0x69a   :  { %v5154_v58 = vor.u32 %v5455_v16, %v5151_v34 }
 0x69b   :  { %4216 = vmatpush.bf16.msra.mxu1 %v5162_v46  ;;  %v3678_v46 = vrot.slane %v8841_v31, 2  ;;  %v5483_v31 = vld [vmem:[%s9606_s5 + $0x114] sm:$0xf] }
 0x69d   :  { %3675 = vrot.lane.b32.xlu0 %v3667_v60, %s5632_s23  ;;  %4162 = vmatpush.bf16.msrb.mxu3 %v5270_v45  ;;  %v5507_v60 = vld [vmem:[%s9606_s5 + $0x1d4] sm:$0xf]  ;;  %v5343_v45 = vld [vmem:[%s9606_s5 + $0x1b8] sm:$0xf0] }
 0x69e   :  { %v5362_v1 = vor.u32 %v5507_v60, %v5359_v59  ;;  %v5346_v23 = vor.u32 %v5503_v20, %v5343_v45  ;;  %v3672_v60 = vpop.permute.xlu2 %3671  ;;  %v5130_v59 = vor.u32 %v5449_v44, %v5127_v26 }
 0x69f   :  { %4217 = vmatpush.bf16.msra.mxu1 %v5154_v58 }
 0x6a0   :  { %5509 = vmatpush.bf16.msra.mxu2 %v5362_v1  ;;  %4299 = vmatpush.bf16.msrb.mxu0 %v5362_v1 }
 0x6a1   :  { %4163 = vmatpush.bf16.msrb.mxu3 %v5262_v14 }
 0x6a4   :  { %5510 = vmatpush.bf16.msra.mxu2 %v5354_v9  ;;  %4300 = vmatpush.bf16.msrb.mxu0 %v5354_v9  ;;  %v5271_v9 = vld [vmem:[%s9606_s5 + $0x128] sm:$0xf0] }
 0x6a5   :  { %4164 = vmatpush.bf16.msrb.mxu3 %v5254_v33  ;;  %v5143_v33 = vld [vmem:[%s9606_s5 + $0x28] sm:$0xf0] }
 0x6a6   :  { %v5146_v39 = vor.u32 %v5453_v32, %v5143_v33  ;;  %v3682_v32 = vrot.slane %v9015_v37, 2 }
 0x6a8   :  { %5511 = vmatpush.bf16.msra.mxu2 %v5346_v23  ;;  %4301 = vmatpush.bf16.msrb.mxu0 %v5346_v23  ;;  %v3680_v23 = vrot.slane %v8850_v13, 2 }
 0x6a9   :  { %4218 = vmatpush.bf16.msra.mxu1 %v5146_v39 }
 0x6aa   :  { %v3681_v42 = vsel %vm480_vm1, %v3678_v46, %v3680_v23 }
 0x6ac   :  { %5512 = vmatpush.bf16.msra.mxu2 %v5338_v61  ;;  %4302 = vmatpush.bf16.msrb.mxu0 %v5338_v61 }
 0x6ad   :  { %4219 = vmatpush.bf16.msra.mxu1 %v5138_v36 }
 0x6b0   :  { %5513 = vmatpush.bf16.msra.mxu2 %v5330_v17  ;;  %4303 = vmatpush.bf16.msrb.mxu0 %v5330_v17 }
 0x6b1   :  { %4220 = vmatpush.bf16.msra.mxu1 %v5130_v59 }
 0x6b4   :  { %5514 = vmatpush.bf16.msra.mxu2 %v5322_v10  ;;  %4304 = vmatpush.bf16.msrb.mxu0 %v5322_v10 }
 0x6dc   :  { %v3653_v45 = vpop.permute.xlu2 %3652 }
 0x6f7   :  { %v9149_v28 = vpop.permute.xlu0 %3635 }
 0x6f8   :  { %v9151_v48 = vpop.permute.xlu1 %3637  ;;  %v9156_v22 = vsel %vm3684_vm5, %v8850_v13, %v9149_v28 }
 0x6f9   :  { %4119 = vmatmul.bf16.gmra.mxu0 %v9156_v22  ;;  %v9243_v47 = vsel %vm3684_vm5, %v9015_v37, %v9151_v48  ;;  %v3708_v58 = vsel %vm3697_vm3, %v9151_v48, %v3653_v45  ;;  %v3683_v48 = vsel %vm480_vm1, %v3680_v23, %v3682_v32 }
 0x6ff   :  { %v3670_v2 = vpop.permute.xlu0 %3669 }
 0x700   :  { %v9190_v27 = vsel %vm3710_vm0, %v9023_v49, %v3670_v2  ;;  %v9192_v15 = vpop.permute.xlu1 %3648  ;;  %v5311_v49 = vld [vmem:[%s9606_s5 + $0x178] sm:$0xf0]  ;;  %v5282_v2 = vor.u32 %v5487_v38, %v5279_v29 }
 0x701   :  { %4165 = vmatmul.bf16.vlgmr.msrb.gmra.mxu3 %v9190_v27  ;;  %v3702_v30 = vsel %vm3697_vm3, %v9013_v12, %v9192_v15  ;;  %v5314_v12 = vor.u32 %v5495_v11, %v5311_v49  ;;  %v3715_v1 = vsel %vm3710_vm0, %v9192_v15, %v3672_v60  ;;  %v3677_v15 = vrot.slane %v8837_v18, 2  ;;  %v5263_v49 = vld [vmem:[%s9606_s5 + $0x118] sm:$0xf0]  ;;  %v5481_v18 = vld [vmem:[%s9606_s5 + $0x104] sm:$0xf] }
 0x702   :  { %4142 = vmatmul.bf16.gmra.mxu1 %v3702_v30  ;;  %4254 = vmatmul.bf16.gmra.mxu2 %v3702_v30  ;;  %v5266_v16 = vor.u32 %v5483_v31, %v5263_v49 }
 0x703   :  { %4269 = vmatpush.bf16.msra.mxu3 %v5314_v12  ;;  %v3679_v11 = vsel %vm480_vm1, %v3677_v15, %v3678_v46  ;;  %v5255_v12 = vld [vmem:[%s9606_s5 + $0x108] sm:$0xf0] }
 0x704   :  { %v4110_v0 = vpop.f32.mrf.mxu0  ;;  %v4138_v63 = vpop.f32.mrf.mxu1  ;;  %v5258_v20 = vor.u32 %v5481_v18, %v5255_v12 }
 0x705   :  { %v4111_v14 = vadd.f32 %v4110_v0, %v9199_v5 }
 0x707   :  { %v9238_v4 = vadd.f32 %v4138_v63, %v4111_v14  ;;  %4270 = vmatpush.bf16.msra.mxu3 %v5306_v7  ;;  %v3651_v62 = vpop.permute.xlu0 %3650 }
 0x708   :  { %v3705_v56 = vsel %vm3697_vm3, %v9149_v28, %v3651_v62  ;;  %v5485_v28 = vld [vmem:[%s9606_s5 + $0x124] sm:$0xf]  ;;  %v3674_v34 = vpop.permute.xlu1 %3673 }
 0x709   :  { %4124 = vmatmul.bf16.gmra.mxu0 %v9243_v47  ;;  %v5274_v30 = vor.u32 %v5485_v28, %v5271_v9  ;;  %v3718_v0 = vsel %vm3710_vm0, %v3651_v62, %v3674_v34 }
 0x70b   :  { %4271 = vmatpush.bf16.msra.mxu3 %v5298_v3  ;;  %v9333_v7 = vpop.f32.mrf.mxu2 }
 0x70c   :  { %v4112_v13 = vpop.f32.mrf.mxu0 }
 0x70d   :  { %v4113_v41 = vadd.f32 %v4112_v13, %v9199_v5 }
 0x70f   :  { %4272 = vmatpush.bf16.msra.mxu3 %v5290_v54  ;;  %v3676_v25 = vpop.permute.xlu0 %3675 }
 0x710   :  { %v3721_v14 = vsel %vm3710_vm0, %v3653_v45, %v3676_v25 }
 0x711   :  { %4170 = vmatmul.bf16.gmra.mxu3 %v3715_v1 }
 0x712   :  { %4147 = vmatmul.bf16.gmra.mxu1 %v3705_v56  ;;  %4259 = vmatmul.bf16.gmra.mxu2 %v3705_v56 }
 0x713   :  { %4273 = vmatpush.bf16.msra.mxu3 %v5282_v2  ;;  %v9336_v33 = vpop.f32.mrf.mxu2 }
 0x714   :  { %v4115_v37 = vpop.f32.mrf.mxu0 }
 0x717   :  { %4274 = vmatpush.bf16.msra.mxu3 %v5274_v30 }
 0x719   :  { %5363 = vmatmul.msk.bf16.vlgmr.msra.gmra.mxu0 %vm3684_vm5, %v3679_v11 }
 0x71b   :  { %4275 = vmatpush.bf16.msra.mxu3 %v5266_v16 }
 0x71f   :  { %4276 = vmatpush.bf16.msra.mxu3 %v5258_v20 }
 0x721   :  { %4175 = vmatmul.bf16.gmra.mxu3 %v3718_v0 }
 0x722   :  { %4152 = vmatmul.bf16.gmra.mxu1 %v3708_v58  ;;  %4264 = vmatmul.bf16.gmra.mxu2 %v3708_v58 }
 0x729   :  { %5364 = vmatmul.msk.bf16.gmra.mxu0 %vm3684_vm5, %v3681_v42 }
 0x731   :  { %4180 = vmatmul.bf16.gmra.mxu3 %v3721_v14 }
 0x732   :  { %4221 = vmatmul.bf16.vlgmr.msra.gmra.mxu1 %v9028_v55  ;;  %5370 = vmatmul.msk.bf16.vlgmr.msra.gmra.mxu2 %vm3684_vm5, %v3682_v32  ;;  %v4117_v55 = vpop.f32.mrf.mxu0 }
 0x739   :  { %5365 = vmatmul.msk.bf16.gmra.mxu0 %vm3684_vm5, %v3683_v48 }
 0x741   :  { %4277 = vmatmul.bf16.vlgmr.msra.gmra.mxu3 %v9190_v27 }
 0x742   :  { %4226 = vmatmul.bf16.gmra.mxu1 %v9049_v57  ;;  %v4140_v57 = vpop.f32.mrf.mxu1 }
 0x743   :  { %v4141_v3 = vadd.f32 %v4140_v57, %v4113_v41 }
 0x749   :  { %5366 = vmatmul.msk.bf16.gmra.mxu0 %vm3684_vm5, %v3682_v32 }
 0x751   :  { %4282 = vmatmul.bf16.gmra.mxu3 %v3715_v1 }
 0x752   :  { %4231 = vmatmul.bf16.gmra.mxu1 %v9156_v22  ;;  %v4116_v22 = vadd.f32 %v4115_v37, %v9199_v5 }
 0x759   :  { %5367 = vmatmul.msk.bf16.vlgmr.msrb.gmra.mxu0 %vm3684_vm5, %v3679_v11  ;;  %v4118_v11 = vadd.f32 %v4117_v55, %v9199_v5 }
 0x761   :  { %4287 = vmatmul.bf16.gmra.mxu3 %v3718_v0 }
 0x762   :  { %4236 = vmatmul.bf16.gmra.mxu1 %v9243_v47 }
 0x769   :  { %5368 = vmatmul.msk.bf16.gmra.mxu0 %vm3684_vm5, %v3681_v42 }
 0x771   :  { %4292 = vmatmul.bf16.gmra.mxu3 %v3721_v14 }
 0x776   :  { %v4120_v27 = vpop.f32.mrf.mxu0 }
 0x777   :  { %v4121_v32 = vadd.f32 %v4120_v27, %v9199_v5 }
 0x779   :  { %5369 = vmatmul.msk.bf16.gmra.mxu0 %vm3684_vm5, %v3683_v48 }
 0x77e   :  { %v9339_v52 = vpop.f32.mrf.mxu0 }
 0x77f   :  { %v4143_v35 = vpop.f32.mrf.mxu1 }
 0x780   :  { %v4144_v63 = vadd.f32 %v4143_v35, %v4116_v22 }
 0x784   :  { %v4166_v61 = vpop.f32.mrf.mxu3 }
 0x785   :  { %v4167_v39 = vadd.f32 %v4166_v61, %v9238_v4  ;;  %v9342_v47 = vpop.f32.mrf.mxu2  ;;  %v9376_v61 = vperm.slane %v9183_v53, 1 }
 0x786   :  { %v9344_v19 = vpop.f32.mrf.mxu0 }
 0x787   :  { %v4145_v51 = vpop.f32.mrf.mxu1 }
 0x788   :  { %v4146_v49 = vadd.f32 %v4145_v51, %v4118_v11 }
 0x78c   :  { %v4168_v43 = vpop.f32.mrf.mxu3 }
 0x78d   :  { %v4169_v21 = vadd.f32 %v4168_v43, %v4141_v3  ;;  %v9347_v40 = vpop.f32.mrf.mxu2 }
 0x78e   :  { %v4127_v36 = vpop.f32.mrf.mxu0 }
 0x78f   :  { %v4148_v17 = vpop.f32.mrf.mxu1 }
 0x790   :  { %v4149_v13 = vadd.f32 %v4148_v17, %v4121_v32 }
 0x794   :  { %v4171_v8 = vpop.f32.mrf.mxu3 }
 0x795   :  { %v9349_v50 = vpop.f32.mrf.mxu2  ;;  %v4172_v29 = vadd.f32 %v4171_v8, %v4144_v63 }
 0x796   :  { %v4194_v44 = vpop.f32.mrf.mxu0 }
 0x797   :  { %v4150_v26 = vpop.f32.mrf.mxu1  ;;  %v4195_v4 = vadd.f32 %v4194_v44, %v4167_v39 }
 0x799   :  { %v4325_v60 = vmax.f32 %v4195_v4, 0.0 }
 0x79b   :  { %v4353_v10 = vrot.slane %v4325_v60, 1 }
 0x79c   :  { %v4173_v6 = vpop.f32.mrf.mxu3 }
 0x79d   :  { %v9351_v24 = vpop.f32.mrf.mxu2  ;;  %v4174_v12 = vadd.f32 %v4173_v6, %v4146_v49 }
 0x79e   :  { %v4196_v62 = vpop.f32.mrf.mxu0 }
 0x79f   :  { %v4197_v54 = vadd.f32 %v4196_v62, %v4169_v21  ;;  %v9353_v59 = vpop.f32.mrf.mxu1  ;;  %v4123_v21 = vadd.f32 %v9339_v52, %v9199_v5 }
 0x7a1   :  { %v4327_v1 = vmax.f32 %v4197_v54, 0.0  ;;  %v4151_v44 = vadd.f32 %v4150_v26, %v4123_v21 }
 0x7a3   :  { %v4354_v56 = vrot.slane %v4327_v1, 1 }
 0x7a4   :  { %v4176_v38 = vpop.f32.mrf.mxu3 }
 0x7a5   :  { %v9355_v2 = vpop.f32.mrf.mxu2  ;;  %v4355_v46 = vsel %vm330_vm4, %v4353_v10, %v4354_v56  ;;  %v4177_v22 = vadd.f32 %v4176_v38, %v4149_v13 }
 0x7a6   :  { %v4199_v28 = vpop.f32.mrf.mxu0  ;;  %v9358_v9 = vmax.f32 %v4325_v60, %v4355_v46 }
 0x7a7   :  { %v4200_v15 = vadd.f32 %v4199_v28, %v4172_v29  ;;  %v4155_v30 = vpop.f32.mrf.mxu1 }
 0x7a8   :  { %v4421_v25 = vrot.slane %v9358_v9, 2 }
 0x7a9   :  { %v4329_v31 = vmax.f32 %v4200_v15, 0.0 }
 0x7ab   :  { %v4359_v16 = vrot.slane %v4329_v31, 1 }
 0x7ac   :  { %v4178_v18 = vpop.f32.mrf.mxu3 }
 0x7ad   :  { %v4267_v34 = vpop.f32.mrf.mxu2  ;;  %v4360_v20 = vsel %vm330_vm4, %v4354_v56, %v4359_v16  ;;  %v4179_v62 = vadd.f32 %v4178_v18, %v4151_v44 }
 0x7ae   :  { %v4201_v45 = vpop.f32.mrf.mxu0  ;;  %v9362_v0 = vmax.f32 %v4327_v1, %v4360_v20 }
 0x7af   :  { %v4202_v58 = vadd.f32 %v4201_v45, %v4174_v12  ;;  %v4222_v23 = vpop.f32.mrf.mxu1 }
 0x7b0   :  { %v4422_v42 = vrot.slane %v9362_v0, 2  ;;  %v4223_v56 = vadd.f32 %v4222_v23, %v9376_v61 }
 0x7b1   :  { %v4331_v14 = vmax.f32 %v4202_v58, 0.0 }
 0x7b2   :  { %v9368_v48 = vsel %vm480_vm1, %v4421_v25, %v4422_v42  ;;  %v4251_v30 = vadd.f32 %v9333_v7, %v4223_v56 }
 0x7b3   :  { %v4363_v37 = vrot.slane %v4331_v14, 1  ;;  %v4461_v55 = vmax.f32 %v9358_v9, %v9368_v48  ;;  %v9413_v9 = vld [vmem:[%s9608_s7] sm:$0xff] }
 0x7b4   :  { %v4181_v57 = vpop.f32.mrf.mxu3 }
 0x7b5   :  { %v9372_v35 = vpop.f32.mrf.mxu2  ;;  %v4364_v63 = vsel %vm330_vm4, %v4359_v16, %v4363_v37 }
 0x7b6   :  { %v4204_v39 = vpop.f32.mrf.mxu0  ;;  %v9378_v27 = vmax.f32 %v4329_v31, %v4364_v63 }
 0x7b7   :  { %v4205_v41 = vadd.f32 %v4204_v39, %v4177_v22  ;;  %v4224_v51 = vpop.f32.mrf.mxu1 }
 0x7b8   :  { %v4225_v3 = vadd.f32 %v4224_v51, %v9376_v61  ;;  %v4427_v43 = vrot.slane %v9378_v27, 2 }
 0x7b9   :  { %v4333_v36 = vmax.f32 %v4205_v41, 0.0 }
 0x7ba   :  { %v4253_v17 = vadd.f32 %v9336_v33, %v4225_v3  ;;  %v4428_v8 = vsel %vm480_vm1, %v4422_v42, %v4427_v43  ;;  %v4126_v33 = vadd.f32 %v9344_v19, %v9199_v5 }
 0x7bb   :  { %v4367_v53 = vrot.slane %v4333_v36, 1  ;;  %v4463_v4 = vmax.f32 %v9362_v0, %v4428_v8 }
 0x7bc   :  { %v4183_v6 = vpop.f32.mrf.mxu3  ;;  %v4154_v28 = vadd.f32 %v9353_v59, %v4126_v33 }
 0x7bd   :  { %v4323_v60 = vpop.f32.mrf.mxu2  ;;  %v4368_v54 = vsel %vm330_vm4, %v4363_v37, %v4367_v53 }
 0x7be   :  { %v4206_v1 = vpop.f32.mrf.mxu0  ;;  %v4399_v10 = vmax.f32 %v4331_v14, %v4368_v54  ;;  %v4182_v49 = vadd.f32 %v4181_v57, %v4154_v28 }
 0x7bf   :  { %v4207_v38 = vadd.f32 %v4206_v1, %v4179_v62  ;;  %v4227_v52 = vpop.f32.mrf.mxu1 }
 0x7c0   :  { %v4431_v29 = vrot.slane %v4399_v10, 2  ;;  %v4228_v44 = vadd.f32 %v4227_v52, %v9376_v61 }
 0x7c1   :  { %v4335_v46 = vmax.f32 %v4207_v38, 0.0 }
 0x7c2   :  { %v4432_v26 = vsel %vm480_vm1, %v4427_v43, %v4431_v29  ;;  %v4256_v54 = vadd.f32 %v9342_v47, %v4228_v44 }
 0x7c3   :  { %v4371_v15 = vrot.slane %v4335_v46, 1  ;;  %v4465_v11 = vmax.f32 %v9378_v27, %v4432_v26 }
 0x7c4   :  { %v4278_v31 = vpop.f32.mrf.mxu3 }
 0x7c5   :  { %v4279_v16 = vadd.f32 %v4278_v31, %v4251_v30  ;;  %v4372_v18 = vsel %vm330_vm4, %v4367_v53, %v4371_v15 }
 0x7c6   :  { %v4209_v12 = vpop.f32.mrf.mxu0  ;;  %v4401_v34 = vmax.f32 %v4333_v36, %v4372_v18 }
 0x7c7   :  { %v4210_v20 = vadd.f32 %v4209_v12, %v4182_v49  ;;  %v4229_v45 = vpop.f32.mrf.mxu1 }
 0x7c8   :  { %v4435_v5 = vrot.slane %v4401_v34, 2  ;;  %v4230_v52 = vadd.f32 %v4229_v45, %v9376_v61 }
 0x7c9   :  { %v4337_v19 = vmax.f32 %v4210_v20, 0.0 }
 0x7ca   :  { %v4436_v0 = vsel %vm480_vm1, %v4431_v29, %v4435_v5  ;;  %v4258_v48 = vadd.f32 %v9347_v40, %v4230_v52 }
 0x7cb   :  { %v4375_v58 = vrot.slane %v4337_v19, 1  ;;  %v4467_v59 = vmax.f32 %v4399_v10, %v4436_v0 }
 0x7cc   :  { %v4280_v23 = vpop.f32.mrf.mxu3 }
 0x7cd   :  { %v4405_v42 = vmax.f32 %v4337_v19, %v4375_v58  ;;  %v4376_v7 = vsel %vm330_vm4, %v4371_v15, %v4375_v58  ;;  %v4281_v36 = vadd.f32 %v4280_v23, %v4253_v17 }
 0x7ce   :  { %v4211_v25 = vpop.f32.mrf.mxu0  ;;  %v4403_v32 = vmax.f32 %v4335_v46, %v4376_v7 }
 0x7cf   :  { %v4443_v14 = vrot.slane %v4405_v42, 2  ;;  %v4232_v13 = vpop.f32.mrf.mxu1 }
 0x7d0   :  { %v4439_v37 = vrot.slane %v4403_v32, 2  ;;  %v4233_v31 = vadd.f32 %v4232_v13, %v9376_v61 }
 0x7d1   :  { %v4473_v57 = vmax.f32 %v4405_v42, %v4443_v14 }
 0x7d2   :  { %v4444_v22 = vsel %vm480_vm1, %v4439_v37, %v4443_v14  ;;  %v4440_v63 = vsel %vm480_vm1, %v4435_v5, %v4439_v37  ;;  %v4261_v40 = vadd.f32 %v9349_v50, %v4233_v31  ;;  %v4476_v50 = vld [vmem:[%s9608_s7 + $0x8] sm:$0xf]  ;;  %v4595_v31 = vld [vmem:[%s9609_s8 + $0x78] sm:$0xff] }
 0x7d3   :  { %5371 = vmatpush.msk.msrb.mxu1 %vm2909_vm10, %v4473_v57  ;;  %v4471_v39 = vmax.f32 %v4403_v32, %v4444_v22  ;;  %v4469_v27 = vmax.f32 %v4401_v34, %v4440_v63  ;;  %4614 = vmatpush.msrb.mxu3 %v4595_v31 }
 0x7d4   :  { %v4283_v41 = vpop.f32.mrf.mxu3 }
 0x7d5   :  { %4500 = vmatpush.msrb.mxu1 %v4471_v39  ;;  %v4284_v38 = vadd.f32 %v4283_v41, %v4256_v54 }
 0x7d6   :  { %v4306_v51 = vpop.f32.mrf.mxu0 }
 0x7d7   :  { %v4234_v3 = vpop.f32.mrf.mxu1  ;;  %4501 = vmatpush.msrb.mxu1 %v4469_v27  ;;  %v4307_v43 = vadd.f32 %v4306_v51, %v4279_v16 }
 0x7d8   :  { %v4235_v25 = vadd.f32 %v4234_v3, %v9376_v61 }
 0x7d9   :  { %4502 = vmatpush.msrb.mxu1 %v4467_v59  ;;  %v4326_v53 = vmax.f32 %v4307_v43, 0.0 }
 0x7da   :  { %v4263_v22 = vadd.f32 %v9351_v24, %v4235_v25  ;;  %v4599_v25 = vld [vmem:[%s9609_s8 + $0x98] sm:$0xff] }
 0x7db   :  { %4503 = vmatpush.msrb.mxu1 %v4465_v11  ;;  %v4356_v1 = vrot.slane %v4326_v53, 1 }
 0x7dc   :  { %v4285_v21 = vpop.f32.mrf.mxu3 }
 0x7dd   :  { %4504 = vmatpush.msrb.mxu1 %v4463_v4  ;;  %v4286_v28 = vadd.f32 %v4285_v21, %v4258_v48 }
 0x7de   :  { %v4308_v8 = vpop.f32.mrf.mxu0 }
 0x7df   :  { %v4309_v6 = vadd.f32 %v4308_v8, %v4281_v36  ;;  %v4237_v62 = vpop.f32.mrf.mxu1  ;;  %4505 = vmatpush.msrb.mxu1 %v4461_v55 }
 0x7e0   :  { %5372 = vmatmul.msk.f32.vlgmr.msrb.gmra.mxu1 %vm4477_vm2, %v9413_v9  ;;  %v4238_v49 = vadd.f32 %v4237_v62, %v9376_v61 }
 0x7e1   :  { %v4328_v60 = vmax.f32 %v4309_v6, 0.0 }
 0x7e2   :  { %v4266_v5 = vadd.f32 %v9355_v2, %v4238_v49  ;;  %v4594_v49 = vld [vmem:[%s9609_s8 + $0x70] sm:$0xff] }
 0x7e3   :  { %v4357_v10 = vrot.slane %v4328_v60, 1  ;;  %4615 = vmatpush.msrb.mxu3 %v4594_v49  ;;  %v4701_v49 = vld [vmem:[%s9611_s10 + $0x8] sm:$0xf] }
 0x7e4   :  { %v4288_v56 = vpop.f32.mrf.mxu3 }
 0x7e5   :  { %v4358_v17 = vsel %vm330_vm4, %v4356_v1, %v4357_v10  ;;  %v4289_v58 = vadd.f32 %v4288_v56, %v4261_v40 }
 0x7e6   :  { %v4311_v4 = vpop.f32.mrf.mxu0  ;;  %v9407_v29 = vmax.f32 %v4326_v53, %v4358_v17 }
 0x7e7   :  { %v4312_v33 = vadd.f32 %v4311_v4, %v4284_v38  ;;  %v4239_v46 = vpop.f32.mrf.mxu1 }
 0x7e8   :  { %v4424_v12 = vrot.slane %v9407_v29, 2  ;;  %5373 = vmatmul.msk.f32.gmra.mxu1 %vm4477_vm2, %v4476_v50 }
 0x7e9   :  { %v4330_v47 = vmax.f32 %v4312_v33, 0.0 }
 0x7eb   :  { %v4361_v55 = vrot.slane %v4330_v47, 1 }
 0x7ec   :  { %v4290_v26 = vpop.f32.mrf.mxu3 }
 0x7ed   :  { %v4362_v15 = vsel %vm330_vm4, %v4357_v10, %v4361_v55  ;;  %v4291_v41 = vadd.f32 %v4290_v26, %v4263_v22  ;;  %v4582_v22 = vld [vmem:[%s9609_s8 + $0x10] sm:$0xff] }
 0x7ee   :  { %v4313_v30 = vpop.f32.mrf.mxu0  ;;  %v4396_v11 = vmax.f32 %v4328_v60, %v4362_v15 }
 0x7ef   :  { %v4314_v16 = vadd.f32 %v4313_v30, %v4286_v28 }
 0x7f0   :  { %v4425_v18 = vrot.slane %v4396_v11, 2 }
 0x7f1   :  { %v4332_v34 = vmax.f32 %v4314_v16, 0.0  ;;  %v4593_v16 = vld [vmem:[%s9609_s8 + $0x68] sm:$0xff] }
 0x7f2   :  { %v4426_v20 = vsel %vm480_vm1, %v4424_v12, %v4425_v18  ;;  %4616 = vmatpush.msrb.mxu3 %v4593_v16 }
 0x7f3   :  { %v4365_v45 = vrot.slane %v4332_v34, 1  ;;  %v4462_v19 = vmax.f32 %v9407_v29, %v4426_v20 }
 0x7f4   :  { %v4293_v0 = vpop.f32.mrf.mxu3 }
 0x7f5   :  { %v4294_v59 = vadd.f32 %v4293_v0, %v4266_v5  ;;  %v4366_v23 = vsel %vm330_vm4, %v4361_v55, %v4365_v45  ;;  %v4591_v5 = vld [vmem:[%s9609_s8 + $0x58] sm:$0xff]  ;;  %v4590_v0 = vld [vmem:[%s9609_s8 + $0x50] sm:$0xff] }
 0x7f6   :  { %v4316_v42 = vpop.f32.mrf.mxu0  ;;  %v4398_v7 = vmax.f32 %v4330_v47, %v4366_v23  ;;  %v4589_v23 = vld [vmem:[%s9609_s8 + $0x48] sm:$0xff] }
 0x7f7   :  { %v4322_v32 = vadd.f32 %v9372_v35, %v4294_v59  ;;  %v4317_v14 = vadd.f32 %v4316_v42, %v4289_v58  ;;  %v4602_v58 = vld [vmem:[%s9609_s8 + $0xb0] sm:$0xff]  ;;  %v4601_v59 = vld [vmem:[%s9609_s8 + $0xa8] sm:$0xff]  ;;  %v4600_v42 = vld [vmem:[%s9609_s8 + $0xa0] sm:$0xff] }
 0x7f8   :  { %v4429_v13 = vrot.slane %v4398_v7, 2 }
 0x7f9   :  { %v4338_v2 = vmax.f32 %v4322_v32, 0.0  ;;  %v4334_v37 = vmax.f32 %v4317_v14, 0.0  ;;  %v4587_v32 = vld [vmem:[%s9609_s8 + $0x38] sm:$0xff]  ;;  %v4598_v14 = vld [vmem:[%s9609_s8 + $0x90] sm:$0xff] }
 0x7fa   :  { %v4430_v57 = vsel %vm480_vm1, %v4425_v18, %v4429_v13 }
 0x7fb   :  { %v4377_v63 = vrot.slane %v4338_v2, 1  ;;  %v4369_v39 = vrot.slane %v4334_v37, 1  ;;  %v4464_v27 = vmax.f32 %v4396_v11, %v4430_v57  ;;  %v4583_v57 = vld [vmem:[%s9609_s8 + $0x18] sm:$0xff] }
 0x7fc   :  { %v4295_v61 = vpop.f32.mrf.mxu3 }
 0x7fd   :  { %v4406_v35 = vmax.f32 %v4338_v2, %v4377_v63  ;;  %v4370_v51 = vsel %vm330_vm4, %v4365_v45, %v4369_v39  ;;  %v4592_v45 = vld [vmem:[%s9609_s8 + $0x60] sm:$0xff]  ;;  %v4585_v2 = vld [vmem:[%s9609_s8 + $0x28] sm:$0xff] }
 0x7fe   :  { %v4318_v3 = vpop.f32.mrf.mxu0  ;;  %v4400_v43 = vmax.f32 %v4332_v34, %v4370_v51  ;;  %4617 = vmatpush.msrb.mxu3 %v4592_v45 }
 0x7ff   :  { %v4445_v21 = vrot.slane %v4406_v35, 2  ;;  %v4319_v36 = vadd.f32 %v4318_v3, %v4291_v41 }
 0x800   :  { %v4433_v8 = vrot.slane %v4400_v43, 2  ;;  %4618 = vmatpush.msrb.mxu3 %v4591_v5 }
 0x801   :  { %v4474_v44 = vmax.f32 %v4406_v35, %v4445_v21  ;;  %v4336_v53 = vmax.f32 %v4319_v36, 0.0 }
 0x802   :  { %v4434_v6 = vsel %vm480_vm1, %v4429_v13, %v4433_v8  ;;  %4619 = vmatpush.msrb.mxu3 %v4590_v0  ;;  %v4586_v13 = vld [vmem:[%s9609_s8 + $0x30] sm:$0xff] }
 0x803   :  { %v4373_v62 = vrot.slane %v4336_v53, 1  ;;  %5374 = vmatpush.msk.msrb.mxu2 %vm2909_vm10, %v4474_v44  ;;  %v4466_v24 = vmax.f32 %v4398_v7, %v4434_v6  ;;  %v4588_v7 = vld [vmem:[%s9609_s8 + $0x40] sm:$0xff]  ;;  %vm4748_vm10 = vcmask 97280  }
 0x804   :  { %4620 = vmatpush.msrb.mxu3 %v4589_v23  ;;  %v4668_v6 = vld [vmem:[%s9610_s9 + $0x20] sm:$0xff] }
 0x805   :  { %v4378_v60 = vsel %vm330_vm4, %v4373_v62, %v4377_v63  ;;  %v4374_v54 = vsel %vm330_vm4, %v4369_v39, %v4373_v62  ;;  %v4581_v63 = vld [vmem:[%s9609_s8 + $0x8] sm:$0xff]  ;;  %v4596_v39 = vld [vmem:[%s9609_s8 + $0x80] sm:$0xff]  ;;  %v4667_v62 = vld [vmem:[%s9610_s9 + $0x18] sm:$0xff]  ;;  %vm4670_vm4 = vcmask 392192  }
 0x806   :  { %v4404_v1 = vmax.f32 %v4336_v53, %v4378_v60  ;;  %v4402_v10 = vmax.f32 %v4334_v37, %v4374_v54  ;;  %4621 = vmatpush.msrb.mxu3 %v4588_v7  ;;  %v4584_v37 = vld [vmem:[%s9609_s8 + $0x20] sm:$0xff]  ;;  %v4669_v53 = vld [vmem:[%s9610_s9 + $0x28] sm:$0xff] }
 0x807   :  { %v4665_v60 = vld [vmem:[%s9610_s9 + $0x8] sm:$0xff]  ;;  %v4664_v54 = vld [vmem:[%s9610_s9] sm:$0xff] }
 0x808   :  { %v4441_v56 = vrot.slane %v4404_v1, 2  ;;  %v4437_v38 = vrot.slane %v4402_v10, 2  ;;  %4622 = vmatpush.msrb.mxu3 %v4587_v32 }
 0x80a   :  { %v4446_v17 = vsel %vm480_vm1, %v4441_v56, %v4445_v21  ;;  %v4442_v4 = vsel %vm480_vm1, %v4437_v38, %v4441_v56  ;;  %v4438_v29 = vsel %vm480_vm1, %v4433_v8, %v4437_v38  ;;  %4623 = vmatpush.msrb.mxu3 %v4586_v13  ;;  %vm4604_vm1 = vcmask 498688  }
 0x80b   :  { %v4472_v52 = vmax.f32 %v4404_v1, %v4446_v17  ;;  %v4470_v33 = vmax.f32 %v4402_v10, %v4442_v4  ;;  %v4468_v46 = vmax.f32 %v4400_v43, %v4438_v29  ;;  %v4712_v17 = vld [vmem:[%s9612_s11 + $0x40] sm:$0xff]  ;;  %v4711_v4 = vld [vmem:[%s9612_s11 + $0x38] sm:$0xff]  ;;  %v4710_v29 = vld [vmem:[%s9612_s11 + $0x30] sm:$0xff] }
 0x80c   :  { %4624 = vmatpush.msrb.mxu3 %v4585_v2 }
 0x80d   :  { %4523 = vmatpush.msrb.mxu2 %v4472_v52  ;;  %v4709_v52 = vld [vmem:[%s9612_s11 + $0x28] sm:$0xff] }
 0x80e   :  { %4625 = vmatpush.msrb.mxu3 %v4584_v37 }
 0x80f   :  { %4524 = vmatpush.msrb.mxu2 %v4470_v33  ;;  %v4708_v33 = vld [vmem:[%s9612_s11 + $0x20] sm:$0xff] }
 0x810   :  { %4626 = vmatpush.msrb.mxu3 %v4583_v57 }
 0x811   :  { %4525 = vmatpush.msrb.mxu2 %v4468_v46  ;;  %v4707_v46 = vld [vmem:[%s9612_s11 + $0x18] sm:$0xff] }
 0x812   :  { %4627 = vmatpush.msrb.mxu3 %v4582_v22 }
 0x813   :  { %4526 = vmatpush.msrb.mxu2 %v4466_v24  ;;  %v4666_v24 = vld [vmem:[%s9610_s9 + $0x10] sm:$0xff] }
 0x814   :  { %4628 = vmatpush.msrb.mxu3 %v4581_v63 }
 0x815   :  { %4527 = vmatpush.msrb.mxu2 %v4464_v27  ;;  %v4580_v27 = vld [vmem:[%s9609_s8] sm:$0xff] }
 0x816   :  { %4629 = vmatpush.msrb.mxu3 %v4580_v27 }
 0x817   :  { %4528 = vmatpush.msrb.mxu2 %v4462_v19  ;;  %v4603_v19 = vld [vmem:[%s9609_s8 + $0xb8] sm:$0x1f] }
 0x818   :  { %5375 = vmatmul.msk.f32.vlgmr.msrb.gmra.mxu2 %vm4477_vm2, %v9413_v9  ;;  %5377 = vmatpush.msk.msra.mxu1 %vm3457_vm13, %v4603_v19 }
 0x819   :  { %4687 = vmatpush.msra.mxu2 %v4669_v53  ;;  %4727 = vmatpush.msra.mxu3 %v4712_v17 }
 0x81a   :  { %4646 = vmatpush.msra.mxu1 %v4602_v58 }
 0x81b   :  { %4688 = vmatpush.msra.mxu2 %v4668_v6  ;;  %4728 = vmatpush.msra.mxu3 %v4711_v4 }
 0x81c   :  { %4647 = vmatpush.msra.mxu1 %v4601_v59 }
 0x81d   :  { %4689 = vmatpush.msra.mxu2 %v4667_v62  ;;  %4729 = vmatpush.msra.mxu3 %v4710_v29 }
 0x81e   :  { %4648 = vmatpush.msra.mxu1 %v4600_v42 }
 0x81f   :  { %4690 = vmatpush.msra.mxu2 %v4666_v24  ;;  %4730 = vmatpush.msra.mxu3 %v4709_v52 }
 0x820   :  { %5376 = vmatmul.msk.f32.gmra.mxu2 %vm4477_vm2, %v4476_v50  ;;  %4649 = vmatpush.msra.mxu1 %v4599_v25  ;;  %v4597_v50 = vld [vmem:[%s9609_s8 + $0x88] sm:$0xff] }
 0x821   :  { %4691 = vmatpush.msra.mxu2 %v4665_v60  ;;  %4731 = vmatpush.msra.mxu3 %v4708_v33 }
 0x822   :  { %4650 = vmatpush.msra.mxu1 %v4598_v14 }
 0x823   :  { %4692 = vmatpush.msra.mxu2 %v4664_v54  ;;  %4732 = vmatpush.msra.mxu3 %v4707_v46 }
 0x824   :  { %4651 = vmatpush.msra.mxu1 %v4597_v50 }
 0x826   :  { %4652 = vmatpush.msra.mxu1 %v4596_v39 }
 0x85d   :  { %v4507_v47 = vpop.f32.mrf.mxu1 }
 0x85e   :  { %4540 = vrot.lane.b32.xlu1 %v4507_v47, %s5628_s18 }
 0x865   :  { %v4510_v48 = vpop.f32.mrf.mxu1 }
 0x866   :  { %4544 = vrot.lane.b32.xlu0 %v4510_v48, %s5628_s18 }
 0x89b   :  { %v4530_v55 = vpop.f32.mrf.mxu2 }
 0x89c   :  { %4542 = vrot.lane.b32.xlu2 %v4530_v55, %s5628_s18 }
 0x8a3   :  { %v4533_v26 = vpop.f32.mrf.mxu2 }
 0x8a4   :  { %4546 = vrot.lane.b32.xlu1 %v4533_v26, %s5628_s18 }
 0x8d0   :  { %v4541_v28 = vpop.permute.xlu1 %4540 }
 0x8d8   :  { %v4545_v18 = vpop.permute.xlu0 %4544 }
 0x8f6   :  { %v4543_v15 = vpop.permute.xlu2 %4542 }
 0x8f7   :  { %v9450_v30 = vmax.f32 %v4530_v55, %v4543_v15  ;;  %v4548_v9 = vsel %vm3210_vm12, %v4541_v28, %v4543_v15  ;;  %v4705_v15 = vld [vmem:[%s9612_s11 + $0x8] sm:$0xff] }
 0x8f8   :  { %v9453_v11 = vmax.f32 %v4507_v47, %v4548_v9  ;;  %v4706_v47 = vld [vmem:[%s9612_s11 + $0x10] sm:$0xff]  ;;  %v4700_v9 = vld [vmem:[%s9611_s10] sm:$0xff]  ;;  %s4783_s10 = sshll.u32 %s5633_s27, 4  ;;  %s4784_s10 = int_to_ptr.vmem [resolvable:$true] %s4783_s10 }
 0x8f9   :  { %4564 = vrot.lane.b32.xlu0 %v9450_v30, %s5629_s3  ;;  %4733 = vmatpush.msra.mxu3 %v4706_v47 }
 0x8fa   :  { %4562 = vrot.lane.b32.xlu2 %v9453_v11, %s5629_s3 }
 0x8fb   :  { %4734 = vmatpush.msra.mxu3 %v4705_v15 }
 0x916   :  { %v4547_v12 = vpop.permute.xlu1 %4546 }
 0x917   :  { %v4557_v34 = vmax.f32 %v4533_v26, %v4547_v12  ;;  %v4549_v20 = vsel %vm3210_vm12, %v4545_v18, %v4547_v12 }
 0x918   :  { %v4556_v40 = vmax.f32 %v4510_v48, %v4549_v20  ;;  %v4743_v20 = vld [vmem:[%s9613_s12] sm:$0x3] }
 0x919   :  { %4568 = vrot.lane.b32.xlu2 %v4557_v34, %s5629_s3 }
 0x91a   :  { %4566 = vrot.lane.b32.xlu1 %v4556_v40, %s5629_s3 }
 0x954   :  { %v4563_v61 = vpop.permute.xlu2 %4562 }
 0x96b   :  { %v4565_v41 = vpop.permute.xlu0 %4564 }
 0x96c   :  { %v4570_v35 = vsel %vm3330_vm15, %v4563_v61, %v4565_v41  ;;  %v4577_v51 = vmax.f32 %v9450_v30, %v4565_v41  ;;  %v4704_v30 = vld [vmem:[%s9612_s11] sm:$0xff] }
 0x96d   :  { %v4576_v3 = vmax.f32 %v9453_v11, %v4570_v35  ;;  %4735 = vmatpush.msra.mxu3 %v4704_v30 }
 0x96e   :  { %5378 = vmatmul.msk.f32.vlgmr.msra.gmra.mxu1 %vm4604_vm1, %v4577_v51 }
 0x96f   :  { %4630 = vmatmul.f32.vlgmr.msrb.gmra.mxu3 %v4576_v3 }
 0x973   :  { %v4569_v43 = vpop.permute.xlu2 %4568 }
 0x974   :  { %v4579_v21 = vmax.f32 %v4557_v34, %v4569_v43 }
 0x976   :  { %5379 = vmatmul.msk.f32.gmra.mxu1 %vm4604_vm1, %v4579_v21 }
 0x98c   :  { %v4567_v36 = vpop.permute.xlu1 %4566 }
 0x98d   :  { %v4571_v8 = vsel %vm3330_vm15, %v4567_v36, %v4569_v43 }
 0x98e   :  { %v4578_v44 = vmax.f32 %v4556_v40, %v4571_v8  ;;  %v5595_v40 = vld [vmem:[%s9614_s13] ss:$0 sm:$0xff] }
 0x990   :  { %4633 = vmatmul.f32.gmra.mxu3 %v4578_v44 }
 0x9eb   :  { %v4654_v1 = vpop.f32.mrf.mxu1 }
 0x9f2   :  { %v4631_v10 = vpop.f32.mrf.mxu3 }
 0x9f3   :  { %v4655_v56 = vadd.f32 %v4654_v1, %v4631_v10  ;;  %v4657_v48 = vpop.f32.mrf.mxu1 }
 0x9f5   :  { %vm4660_vm6 = vcmp.gt.f32.partialorder %v4655_v56, 0.0 }
 0x9f6   :  { %v4662_v38 = vsel %vm4660_vm6, %v4655_v56, 0.0 }
 0x9f7   :  { %5380 = vmatmul.msk.f32.vlgmr.msra.gmra.mxu2 %vm4670_vm4, %v4662_v38 }
 0xa13   :  { %v4634_v55 = vpop.f32.mrf.mxu3 }
 0xa14   :  { %v4658_v26 = vadd.f32 %v4657_v48, %v4634_v55 }
 0xa16   :  { %vm4661_vm7 = vcmp.gt.f32.partialorder %v4658_v26, 0.0 }
 0xa17   :  { %v4663_v28 = vsel %vm4661_vm7, %v4658_v26, 0.0 }
 0xa18   :  { %5381 = vmatmul.msk.f32.gmra.mxu2 %vm4670_vm4, %v4663_v28 }
 0xa7a   :  { %v4694_v11 = vpop.f32.mrf.mxu2 }
 0xa7b   :  { %v4702_v31 = vmul.f32 %v4700_v9, %v4694_v11 }
 0xa7d   :  { %5382 = vmatmul.msk.f32.vlgmr.msra.gmra.mxu3 %vm4713_vm8, %v4702_v31 }
 0xa9b   :  { %v4697_v16 = vpop.f32.mrf.mxu2 }
 0xa9c   :  { %v4703_v18 = vmul.f32 %v4701_v49, %v4697_v16 }
 0xa9e   :  { %5383 = vmatmul.msk.f32.gmra.mxu3 %vm4713_vm8, %v4703_v18 }
 0xb00   :  { %v4737_v12 = vpop.f32.mrf.mxu3 }
 0xb21   :  { %v4740_v34 = vpop.f32.mrf.mxu3 }
 0xb22   :  { %5384 = vmatpush.msk.msrb.mxu1 %vm4752_vm9, %v4740_v34 }
 0xb24   :  { %4771 = vmatpush.msrb.mxu1 %v4737_v12 }
 0xb25   :  { %5385 = vmatmul.msk.f32.vlgmr.msrb.gmra.mxu1 %vm4748_vm10, %v4743_v20 }
 0xba2   :  { %v4773_v45 = vpop.f32.mrf.mxu1 }
 0xba3   :  { %v4774_v5 = vadd.f32 %v5595_v40, %v4773_v45 }
 0xba5   :  { %4777 = vst.msk [vmem:[#allocation2] sm:$0x3] %vm4776_vm11, %v4774_v5 }
 0xba6   :  { %4788 = dma.vmem_to_hbm [thread:$0]  %s4784_s10, 32, %s4786_s1, [#allocation3]  }
 0xba7   :  { %5622 = dma.done.wait [#allocation3], 32  }
 0xba8   :  { %5623 = vsyncadd [#allocation3], 4294967264 }
 0xba9   :  { %4793 = vsyncpa [#allocation3], 1 }

</bundles_post_ra>
